<compile_context>
chip_gen: v6e
topology: v6e:2x2x1
jax: 0.10.0
libtpu: 0.0.40
codegen_flags: <defaults>
</compile_context>

<pallas_src>
import math
from functools import partial

import jax
import jax.numpy as jnp
from jax.experimental import pallas as pl
from jax.experimental.pallas import tpu as pltpu  # noqa: F401  (TPU backend)

# ---- small, module-consistent config (scaled down from d_model=512 etc.) ----
D_MODEL = 128          # lane-dense (multiple of 128); divisible by N_HEADS
N_HEADS = 8
HEAD_DIM = D_MODEL // N_HEADS           # 16
DIM_FF = 4 * D_MODEL                    # keeps the module's 512->2048 (4x) ratio
NUM_LAYERS = 3
BATCH = 1              # NOTE: PyTorch's PositionalEncoding slices pe by dim-0
SEQ = 8                # (the batch axis); with BATCH=1 only pe[0] is added,
LN_EPS = 1e-5          # exactly reproducing the module's behavior.
V_PAD = 128            # LM-head output padded to a full lane group


def _layer_norm(v, g, b):
    """f32 layernorm; rsqrt + sum*(1/D) (EUP/VPU friendly). Biased var = PyTorch."""
    inv_d = 1.0 / D_MODEL
    mu = jnp.sum(v, axis=-1, keepdims=True) * inv_d
    d = v - mu
    var = jnp.sum(d * d, axis=-1, keepdims=True) * inv_d
    return d * jax.lax.rsqrt(var + LN_EPS) * g + b


def transformer_kernel(
    x_ref,                                   # (S, D)  f32 embedded + PE input
    wqkv_ref, bqkv_ref,                      # fused QKV: (L, D, 3D) bf16, (L,1,3D) f32
    wo_ref, bo_ref,                          # output proj: (L, D, D) bf16, (L,1,D) f32
    g1_ref, be1_ref,                         # layernorm1 gamma/beta
    w1_ref, b1_ref, w2_ref, b2_ref,          # feed-forward
    g2_ref, be2_ref,                         # layernorm2 gamma/beta
    wfc_ref, bfc_ref,                        # LM head (output padded to V_PAD)
    out_ref,                                 # (S, V_PAD) f32
):
    S = x_ref.shape[0]
    inv_scale = 1.0 / math.sqrt(float(HEAD_DIM))
    x = x_ref[...]                           # (S, D) f32 residual-stream carry

    for l in range(NUM_LAYERS):              # layers unrolled; weights stay resident
        xb = x.astype(jnp.bfloat16)

        # ---- fused QKV projection: one (S,128)@(128,384) MXU pass per layer ----
        qkv = jnp.dot(xb, wqkv_ref[l], preferred_element_type=jnp.float32) + bqkv_ref[l]
        qkv_b = qkv.astype(jnp.bfloat16)     # single f32->bf16 pack for q, k and v
        qb = qkv_b[:, 0 * D_MODEL:1 * D_MODEL]   # lane-aligned 128-wide slices
        kb = qkv_b[:, 1 * D_MODEL:2 * D_MODEL]
        vb = qkv_b[:, 2 * D_MODEL:3 * D_MODEL]

        # ---- per-head score matmuls (MXU), softmax batched across heads ----
        score_rows = []
        for h in range(N_HEADS):
            sl = slice(h * HEAD_DIM, (h + 1) * HEAD_DIM)
            score_rows.append(jnp.einsum('qd,kd->qk', qb[:, sl], kb[:, sl],
                                         preferred_element_type=jnp.float32))
        scores = jnp.concatenate(score_rows, axis=0) * inv_scale      # (H*S, S) f32
        scores = scores - jnp.max(scores, axis=-1, keepdims=True)
        e = jnp.exp(scores)
        attn = (e * pl.reciprocal(jnp.sum(e, axis=-1, keepdims=True), approx=False)
                ).astype(jnp.bfloat16)                                # one cast

        # ---- per-head ctx, combined into one (S,128) tile, single Wo matmul ----
        ctx_cols = []
        for h in range(N_HEADS):
            sl = slice(h * HEAD_DIM, (h + 1) * HEAD_DIM)
            ctx_cols.append(jnp.dot(attn[h * S:(h + 1) * S, :], vb[:, sl],
                                    preferred_element_type=jnp.float32))
        ctx = jnp.concatenate(ctx_cols, axis=1).astype(jnp.bfloat16)  # combine_heads
        attn_out = jnp.dot(ctx, wo_ref[l],
                           preferred_element_type=jnp.float32) + bo_ref[l]

        x = _layer_norm(x + attn_out, g1_ref[l], be1_ref[l])

        # ---- feed forward ----
        xb = x.astype(jnp.bfloat16)
        h1 = jnp.maximum(
            jnp.dot(xb, w1_ref[l], preferred_element_type=jnp.float32) + b1_ref[l],
            0.0)
        ff = jnp.dot(h1.astype(jnp.bfloat16), w2_ref[l],
                     preferred_element_type=jnp.float32) + b2_ref[l]
        x = _layer_norm(x + ff, g2_ref[l], be2_ref[l])

    # ---- final LM head, lane-dense (V padded to 128; pad sliced in wrapper) ----
    out_ref[...] = jnp.dot(x.astype(jnp.bfloat16), wfc_ref[...],
                           preferred_element_type=jnp.float32) + bfc_ref[...]


def prepare_kernel_params(p):
    """One-time weight prep (hoisted out of the per-call hot path):
    bf16 casts, QKV fusion into (L, D, 3D), and the zero-padded LM head."""
    bf = jnp.bfloat16
    V = p['wfc'].shape[1]
    wfc = jnp.zeros((D_MODEL, V_PAD), jnp.float32).at[:, :V].set(p['wfc']).astype(bf)
    bfc = jnp.zeros((1, V_PAD), jnp.float32).at[:, :V].set(p['bfc'])
    kp = {
        'embedding': p['embedding'],
        'pe': p['pe'],
        'wqkv': jnp.concatenate([p['wq'], p['wk'], p['wv']], axis=2).astype(bf),
        'bqkv': jnp.concatenate([p['bq'], p['bk'], p['bv']], axis=2),
        'wo': p['wo'].astype(bf), 'bo': p['bo'],
        'g1': p['g1'], 'be1': p['be1'],
        'w1': p['w1'].astype(bf), 'b1': p['b1'],
        'w2': p['w2'].astype(bf), 'b2': p['b2'],
        'g2': p['g2'], 'be2': p['be2'],
        'wfc': wfc, 'bfc': bfc,
    }
    return jax.tree_util.tree_map(jax.block_until_ready, kp)


@partial(jax.jit, static_argnums=(2,))
def transformer_forward(token_ids, kp, vocab_size):
    # --- glue: embedding gather, sqrt(d_model) scale, positional encoding ---
    x = kp['embedding'][token_ids] * jnp.sqrt(jnp.float32(D_MODEL))      # (B,S,D)
    x = x + kp['pe'][: x.shape[0], :]   # exact PyTorch broadcast (slices dim-0)
    # TODO(synk): nn.Dropout(0.1) is stochastic (train mode); eval-mode identity used.
    B, S, D = x.shape
    assert B == 1, "PositionalEncoding's dim-0 slice only broadcasts for batch=1"
    x2 = x[0].astype(jnp.float32)                                        # (S, D)

    # No grid: everything (weights < 2 MiB) lives in VMEM for the whole call.
    out = pl.pallas_call(
        transformer_kernel,
        out_shape=jax.ShapeDtypeStruct((S, V_PAD), jnp.float32),
    )(x2,
      kp['wqkv'], kp['bqkv'], kp['wo'], kp['bo'],
      kp['g1'], kp['be1'], kp['w1'], kp['b1'], kp['w2'], kp['b2'],
      kp['g2'], kp['be2'], kp['wfc'], kp['bfc'])

    return out[None, :, :vocab_size]                                     # (B,S,V)


def reference_forward(token_ids, p):
    """Pure-JAX f32 reference with PyTorch-identical math (eval-mode dropout)."""
    x = p['embedding'][token_ids] * jnp.sqrt(jnp.float32(D_MODEL))
    x = x + p['pe'][: x.shape[0], :]
    B, S, D = x.shape
    H, hd = N_HEADS, HEAD_DIM

    def ln(v, g, b):
        mu = jnp.mean(v, -1, keepdims=True)
        var = jnp.mean((v - mu) ** 2, -1, keepdims=True)
        return (v - mu) / jnp.sqrt(var + LN_EPS) * g + b

    for l in range(NUM_LAYERS):
        q = x @ p['wq'][l] + p['bq'][l]
        k = x @ p['wk'][l] + p['bk'][l]
        v = x @ p['wv'][l] + p['bv'][l]
        split = lambda t: t.reshape(B, S, H, hd).transpose(0, 2, 1, 3)
        qh, kh, vh = split(q), split(k), split(v)
        scores = jnp.einsum('bhqd,bhkd->bhqk', qh, kh) / jnp.sqrt(jnp.float32(hd))
        attn = jax.nn.softmax(scores, axis=-1)
        ctx = jnp.einsum('bhqk,bhkd->bhqd', attn, vh)
        ctx = ctx.transpose(0, 2, 1, 3).reshape(B, S, D)
        x = ln(x + (ctx @ p['wo'][l] + p['bo'][l]), p['g1'][l], p['be1'][l])
        h1 = jax.nn.relu(x @ p['w1'][l] + p['b1'][l])
        x = ln(x + (h1 @ p['w2'][l] + p['b2'][l]), p['g2'][l], p['be2'][l])
    return x @ p['wfc'] + p['bfc']


def init_params(key, vocab_size):
    p = {}
    p['embedding'] = 0.1 * jax.random.normal(
        jax.random.fold_in(key, 1), (vocab_size, D_MODEL), jnp.float32)

    # positional encoding buffer, exactly as in the PyTorch module
    position = jnp.arange(1000, dtype=jnp.float32)[:, None]
    div_term = jnp.exp(jnp.arange(0, D_MODEL, 2, dtype=jnp.float32)
                       * (-math.log(10000.0) / D_MODEL))
    pe = jnp.zeros((1000, D_MODEL), jnp.float32)
    pe = pe.at[:, 0::2].set(jnp.sin(position * div_term))
    pe = pe.at[:, 1::2].set(jnp.cos(position * div_term))
    p['pe'] = pe

    layer_shapes = {
        'wq': (D_MODEL, D_MODEL), 'bq': (1, D_MODEL),
        'wk': (D_MODEL, D_MODEL), 'bk': (1, D_MODEL),
        'wv': (D_MODEL, D_MODEL), 'bv': (1, D_MODEL),
        'wo': (D_MODEL, D_MODEL), 'bo': (1, D_MODEL),
        'g1': (1, D_MODEL), 'be1': (1, D_MODEL),
        'w1': (D_MODEL, DIM_FF), 'b1': (1, DIM_FF),
        'w2': (DIM_FF, D_MODEL), 'b2': (1, D_MODEL),
        'g2': (1, D_MODEL), 'be2': (1, D_MODEL),
    }
    for idx, (name, shape) in enumerate(layer_shapes.items()):
        per_layer = []
        for l in range(NUM_LAYERS):
            k = jax.random.fold_in(key, 1000 + idx * NUM_LAYERS + l)
            if name in ('g1', 'g2'):
                arr = 1.0 + 0.01 * jax.random.normal(k, shape, jnp.float32)
            else:
                arr = 0.05 * jax.random.normal(k, shape, jnp.float32)
            per_layer.append(arr)
        p[name] = jnp.stack(per_layer)                    # (L, *shape)

    p['wfc'] = 0.05 * jax.random.normal(
        jax.random.fold_in(key, 5000), (D_MODEL, vocab_size), jnp.float32)
    p['bfc'] = 0.05 * jax.random.normal(
        jax.random.fold_in(key, 5001), (1, vocab_size), jnp.float32)
    return p


if __name__ == "__main__":
    key = jax.random.PRNGKey(0)

    # vocab exactly as in the PyTorch script
    text = 'Das ist ein Beispieltext.'
    tokens = text.split()
    vocab = sorted(set(tokens))
    vocab_size = len(vocab)        # 4

    params = init_params(key, vocab_size)
    kparams = prepare_kernel_params(params)     # one-time bf16 cast / fuse / pad
    token_ids = jax.random.randint(jax.random.fold_in(key, 777),
                                   (BATCH, SEQ), 0, vocab_size)

    out = transformer_forward(token_ids, kparams, vocab_size)
    out = jax.block_until_ready(out)

    ref = reference_forward(token_ids, params)
    assert out.shape == (BATCH, SEQ, vocab_size)
    # kernel uses bf16 matmul operands (f32 accumulation) vs the pure-f32 reference
    err = float(jnp.max(jnp.abs(out - ref)))
    assert err < 5e-2, f"mismatch vs reference: {err}"
    print("KERNEL_OK")
</pallas_src>

<mosaic_0001>
module attributes {stable_mosaic.version = 11 : i64} {
  func.func @transformer_kernel(%arg0: memref<8x128xf32, #tpu.memory_space<vmem>>, %arg1: memref<3x128x384xbf16, #tpu.memory_space<vmem>>, %arg2: memref<3x1x384xf32, #tpu.memory_space<vmem>>, %arg3: memref<3x128x128xbf16, #tpu.memory_space<vmem>>, %arg4: memref<3x1x128xf32, #tpu.memory_space<vmem>>, %arg5: memref<3x1x128xf32, #tpu.memory_space<vmem>>, %arg6: memref<3x1x128xf32, #tpu.memory_space<vmem>>, %arg7: memref<3x128x512xbf16, #tpu.memory_space<vmem>>, %arg8: memref<3x1x512xf32, #tpu.memory_space<vmem>>, %arg9: memref<3x512x128xbf16, #tpu.memory_space<vmem>>, %arg10: memref<3x1x128xf32, #tpu.memory_space<vmem>>, %arg11: memref<3x1x128xf32, #tpu.memory_space<vmem>>, %arg12: memref<3x1x128xf32, #tpu.memory_space<vmem>>, %arg13: memref<128x128xbf16, #tpu.memory_space<vmem>>, %arg14: memref<1x128xf32, #tpu.memory_space<vmem>>, %arg15: memref<8x128xf32, #tpu.memory_space<vmem>>) attributes {dimension_semantics = [], scalar_prefetch = 0 : i64, scratch_operands = 0 : i64, tpu.core_type = #tpu.core_type<tc>} {
    %c0 = arith.constant 0 : index
    %c0_0 = arith.constant 0 : index
    %0 = vector.load %arg0[%c0, %c0_0] : memref<8x128xf32, #tpu.memory_space<vmem>>, vector<8x128xf32>
    %1 = arith.truncf %0 : vector<8x128xf32> to vector<8x128xbf16>
    %c0_1 = arith.constant 0 : index
    %c0_2 = arith.constant 0 : index
    %c0_3 = arith.constant 0 : index
    %2 = vector.load %arg1[%c0_1, %c0_2, %c0_3] : memref<3x128x384xbf16, #tpu.memory_space<vmem>>, vector<1x128x384xbf16>
    %3 = vector.shape_cast %2 : vector<1x128x384xbf16> to vector<128x384xbf16>
    %cst = arith.constant dense<0.000000e+00> : vector<8x384xf32>
    %4 = tpu.matmul %1, %3, %cst {dimension_numbers = #tpu.dot_dimension_numbers<[1], [0], [0], [1], [0, 0, 1, 1], [], []>} : vector<8x128xbf16>, vector<128x384xbf16>, vector<8x384xf32> -> vector<8x384xf32>
    %c0_4 = arith.constant 0 : index
    %c0_5 = arith.constant 0 : index
    %c0_6 = arith.constant 0 : index
    %5 = vector.load %arg2[%c0_4, %c0_5, %c0_6] : memref<3x1x384xf32, #tpu.memory_space<vmem>>, vector<1x1x384xf32>
    %6 = vector.shape_cast %5 : vector<1x1x384xf32> to vector<1x384xf32>
    %7 = vector.broadcast %6 : vector<1x384xf32> to vector<8x384xf32>
    %8 = arith.addf %4, %7 : vector<8x384xf32>
    %9 = arith.truncf %8 : vector<8x384xf32> to vector<8x384xbf16>
    %10 = vector.extract_strided_slice %9 {offsets = [0, 0], sizes = [8, 128], strides = [1, 1]} : vector<8x384xbf16> to vector<8x128xbf16>
    %11 = vector.extract_strided_slice %9 {offsets = [0, 128], sizes = [8, 128], strides = [1, 1]} : vector<8x384xbf16> to vector<8x128xbf16>
    %12 = vector.extract_strided_slice %9 {offsets = [0, 256], sizes = [8, 128], strides = [1, 1]} : vector<8x384xbf16> to vector<8x128xbf16>
    %13 = vector.extract_strided_slice %10 {offsets = [0, 0], sizes = [8, 16], strides = [1, 1]} : vector<8x128xbf16> to vector<8x16xbf16>
    %14 = vector.extract_strided_slice %11 {offsets = [0, 0], sizes = [8, 16], strides = [1, 1]} : vector<8x128xbf16> to vector<8x16xbf16>
    "tpu.trace_start"() <{level = 10 : i32, message = "qd,kd->qk"}> : () -> ()
    %cst_7 = arith.constant dense<0.000000e+00> : vector<8x8xf32>
    %15 = tpu.matmul %13, %14, %cst_7 {dimension_numbers = #tpu.dot_dimension_numbers<[1], [1], [0], [0], [0, 0, 1, 0], [], []>} : vector<8x16xbf16>, vector<8x16xbf16>, vector<8x8xf32> -> vector<8x8xf32>
    "tpu.trace_stop"() : () -> ()
    %16 = vector.extract_strided_slice %10 {offsets = [0, 16], sizes = [8, 16], strides = [1, 1]} : vector<8x128xbf16> to vector<8x16xbf16>
    %17 = vector.extract_strided_slice %11 {offsets = [0, 16], sizes = [8, 16], strides = [1, 1]} : vector<8x128xbf16> to vector<8x16xbf16>
    "tpu.trace_start"() <{level = 10 : i32, message = "qd,kd->qk"}> : () -> ()
    %cst_8 = arith.constant dense<0.000000e+00> : vector<8x8xf32>
    %18 = tpu.matmul %16, %17, %cst_8 {dimension_numbers = #tpu.dot_dimension_numbers<[1], [1], [0], [0], [0, 0, 1, 0], [], []>} : vector<8x16xbf16>, vector<8x16xbf16>, vector<8x8xf32> -> vector<8x8xf32>
    "tpu.trace_stop"() : () -> ()
    %19 = vector.extract_strided_slice %10 {offsets = [0, 32], sizes = [8, 16], strides = [1, 1]} : vector<8x128xbf16> to vector<8x16xbf16>
    %20 = vector.extract_strided_slice %11 {offsets = [0, 32], sizes = [8, 16], strides = [1, 1]} : vector<8x128xbf16> to vector<8x16xbf16>
    "tpu.trace_start"() <{level = 10 : i32, message = "qd,kd->qk"}> : () -> ()
    %cst_9 = arith.constant dense<0.000000e+00> : vector<8x8xf32>
    %21 = tpu.matmul %19, %20, %cst_9 {dimension_numbers = #tpu.dot_dimension_numbers<[1], [1], [0], [0], [0, 0, 1, 0], [], []>} : vector<8x16xbf16>, vector<8x16xbf16>, vector<8x8xf32> -> vector<8x8xf32>
    "tpu.trace_stop"() : () -> ()
    %22 = vector.extract_strided_slice %10 {offsets = [0, 48], sizes = [8, 16], strides = [1, 1]} : vector<8x128xbf16> to vector<8x16xbf16>
    %23 = vector.extract_strided_slice %11 {offsets = [0, 48], sizes = [8, 16], strides = [1, 1]} : vector<8x128xbf16> to vector<8x16xbf16>
    "tpu.trace_start"() <{level = 10 : i32, message = "qd,kd->qk"}> : () -> ()
    %cst_10 = arith.constant dense<0.000000e+00> : vector<8x8xf32>
    %24 = tpu.matmul %22, %23, %cst_10 {dimension_numbers = #tpu.dot_dimension_numbers<[1], [1], [0], [0], [0, 0, 1, 0], [], []>} : vector<8x16xbf16>, vector<8x16xbf16>, vector<8x8xf32> -> vector<8x8xf32>
    "tpu.trace_stop"() : () -> ()
    %25 = vector.extract_strided_slice %10 {offsets = [0, 64], sizes = [8, 16], strides = [1, 1]} : vector<8x128xbf16> to vector<8x16xbf16>
    %26 = vector.extract_strided_slice %11 {offsets = [0, 64], sizes = [8, 16], strides = [1, 1]} : vector<8x128xbf16> to vector<8x16xbf16>
    "tpu.trace_start"() <{level = 10 : i32, message = "qd,kd->qk"}> : () -> ()
    %cst_11 = arith.constant dense<0.000000e+00> : vector<8x8xf32>
    %27 = tpu.matmul %25, %26, %cst_11 {dimension_numbers = #tpu.dot_dimension_numbers<[1], [1], [0], [0], [0, 0, 1, 0], [], []>} : vector<8x16xbf16>, vector<8x16xbf16>, vector<8x8xf32> -> vector<8x8xf32>
    "tpu.trace_stop"() : () -> ()
    %28 = vector.extract_strided_slice %10 {offsets = [0, 80], sizes = [8, 16], strides = [1, 1]} : vector<8x128xbf16> to vector<8x16xbf16>
    %29 = vector.extract_strided_slice %11 {offsets = [0, 80], sizes = [8, 16], strides = [1, 1]} : vector<8x128xbf16> to vector<8x16xbf16>
    "tpu.trace_start"() <{level = 10 : i32, message = "qd,kd->qk"}> : () -> ()
    %cst_12 = arith.constant dense<0.000000e+00> : vector<8x8xf32>
    %30 = tpu.matmul %28, %29, %cst_12 {dimension_numbers = #tpu.dot_dimension_numbers<[1], [1], [0], [0], [0, 0, 1, 0], [], []>} : vector<8x16xbf16>, vector<8x16xbf16>, vector<8x8xf32> -> vector<8x8xf32>
    "tpu.trace_stop"() : () -> ()
    %31 = vector.extract_strided_slice %10 {offsets = [0, 96], sizes = [8, 16], strides = [1, 1]} : vector<8x128xbf16> to vector<8x16xbf16>
    %32 = vector.extract_strided_slice %11 {offsets = [0, 96], sizes = [8, 16], strides = [1, 1]} : vector<8x128xbf16> to vector<8x16xbf16>
    "tpu.trace_start"() <{level = 10 : i32, message = "qd,kd->qk"}> : () -> ()
    %cst_13 = arith.constant dense<0.000000e+00> : vector<8x8xf32>
    %33 = tpu.matmul %31, %32, %cst_13 {dimension_numbers = #tpu.dot_dimension_numbers<[1], [1], [0], [0], [0, 0, 1, 0], [], []>} : vector<8x16xbf16>, vector<8x16xbf16>, vector<8x8xf32> -> vector<8x8xf32>
    "tpu.trace_stop"() : () -> ()
    %34 = vector.extract_strided_slice %10 {offsets = [0, 112], sizes = [8, 16], strides = [1, 1]} : vector<8x128xbf16> to vector<8x16xbf16>
    %35 = vector.extract_strided_slice %11 {offsets = [0, 112], sizes = [8, 16], strides = [1, 1]} : vector<8x128xbf16> to vector<8x16xbf16>
    "tpu.trace_start"() <{level = 10 : i32, message = "qd,kd->qk"}> : () -> ()
    %cst_14 = arith.constant dense<0.000000e+00> : vector<8x8xf32>
    %36 = tpu.matmul %34, %35, %cst_14 {dimension_numbers = #tpu.dot_dimension_numbers<[1], [1], [0], [0], [0, 0, 1, 0], [], []>} : vector<8x16xbf16>, vector<8x16xbf16>, vector<8x8xf32> -> vector<8x8xf32>
    "tpu.trace_stop"() : () -> ()
    %37 = tpu.concatenate %15, %18, %21, %24, %27, %30, %33, %36 in 0 : vector<8x8xf32>, vector<8x8xf32>, vector<8x8xf32>, vector<8x8xf32>, vector<8x8xf32>, vector<8x8xf32>, vector<8x8xf32>, vector<8x8xf32> -> vector<64x8xf32>
    %cst_15 = arith.constant 2.500000e-01 : f32
    %38 = vector.broadcast %cst_15 : f32 to vector<64x8xf32>
    %39 = arith.mulf %37, %38 : vector<64x8xf32>
    %cst_16 = arith.constant dense<0xFF800000> : vector<64xf32>
    %40 = vector.multi_reduction <maximumf>, %39, %cst_16 [1] : vector<64x8xf32> to vector<64xf32>
    %41 = vector.shape_cast %40 : vector<64xf32> to vector<64x1xf32>
    %42 = vector.broadcast %41 : vector<64x1xf32> to vector<64x8xf32>
    %43 = arith.subf %39, %42 : vector<64x8xf32>
    %44 = math.exp %43 : vector<64x8xf32>
    %cst_17 = arith.constant dense<0.000000e+00> : vector<64xf32>
    %45 = vector.multi_reduction <add>, %44, %cst_17 [1] : vector<64x8xf32> to vector<64xf32>
    %46 = vector.shape_cast %45 : vector<64xf32> to vector<64x1xf32>
    %47 = tpu.reciprocal %46 : vector<64x1xf32> -> vector<64x1xf32>
    %48 = vector.broadcast %47 : vector<64x1xf32> to vector<64x8xf32>
    %49 = arith.mulf %44, %48 : vector<64x8xf32>
    %50 = arith.truncf %49 : vector<64x8xf32> to vector<64x8xbf16>
    %51 = vector.extract_strided_slice %50 {offsets = [0, 0], sizes = [8, 8], strides = [1, 1]} : vector<64x8xbf16> to vector<8x8xbf16>
    %52 = vector.extract_strided_slice %12 {offsets = [0, 0], sizes = [8, 16], strides = [1, 1]} : vector<8x128xbf16> to vector<8x16xbf16>
    %cst_18 = arith.constant dense<0.000000e+00> : vector<8x16xf32>
    %53 = tpu.matmul %51, %52, %cst_18 {dimension_numbers = #tpu.dot_dimension_numbers<[1], [0], [0], [1], [0, 0, 1, 1], [], []>} : vector<8x8xbf16>, vector<8x16xbf16>, vector<8x16xf32> -> vector<8x16xf32>
    %54 = vector.extract_strided_slice %50 {offsets = [8, 0], sizes = [8, 8], strides = [1, 1]} : vector<64x8xbf16> to vector<8x8xbf16>
    %55 = vector.extract_strided_slice %12 {offsets = [0, 16], sizes = [8, 16], strides = [1, 1]} : vector<8x128xbf16> to vector<8x16xbf16>
    %cst_19 = arith.constant dense<0.000000e+00> : vector<8x16xf32>
    %56 = tpu.matmul %54, %55, %cst_19 {dimension_numbers = #tpu.dot_dimension_numbers<[1], [0], [0], [1], [0, 0, 1, 1], [], []>} : vector<8x8xbf16>, vector<8x16xbf16>, vector<8x16xf32> -> vector<8x16xf32>
    %57 = vector.extract_strided_slice %50 {offsets = [16, 0], sizes = [8, 8], strides = [1, 1]} : vector<64x8xbf16> to vector<8x8xbf16>
    %58 = vector.extract_strided_slice %12 {offsets = [0, 32], sizes = [8, 16], strides = [1, 1]} : vector<8x128xbf16> to vector<8x16xbf16>
    %cst_20 = arith.constant dense<0.000000e+00> : vector<8x16xf32>
    %59 = tpu.matmul %57, %58, %cst_20 {dimension_numbers = #tpu.dot_dimension_numbers<[1], [0], [0], [1], [0, 0, 1, 1], [], []>} : vector<8x8xbf16>, vector<8x16xbf16>, vector<8x16xf32> -> vector<8x16xf32>
    %60 = vector.extract_strided_slice %50 {offsets = [24, 0], sizes = [8, 8], strides = [1, 1]} : vector<64x8xbf16> to vector<8x8xbf16>
    %61 = vector.extract_strided_slice %12 {offsets = [0, 48], sizes = [8, 16], strides = [1, 1]} : vector<8x128xbf16> to vector<8x16xbf16>
    %cst_21 = arith.constant dense<0.000000e+00> : vector<8x16xf32>
    %62 = tpu.matmul %60, %61, %cst_21 {dimension_numbers = #tpu.dot_dimension_numbers<[1], [0], [0], [1], [0, 0, 1, 1], [], []>} : vector<8x8xbf16>, vector<8x16xbf16>, vector<8x16xf32> -> vector<8x16xf32>
    %63 = vector.extract_strided_slice %50 {offsets = [32, 0], sizes = [8, 8], strides = [1, 1]} : vector<64x8xbf16> to vector<8x8xbf16>
    %64 = vector.extract_strided_slice %12 {offsets = [0, 64], sizes = [8, 16], strides = [1, 1]} : vector<8x128xbf16> to vector<8x16xbf16>
    %cst_22 = arith.constant dense<0.000000e+00> : vector<8x16xf32>
    %65 = tpu.matmul %63, %64, %cst_22 {dimension_numbers = #tpu.dot_dimension_numbers<[1], [0], [0], [1], [0, 0, 1, 1], [], []>} : vector<8x8xbf16>, vector<8x16xbf16>, vector<8x16xf32> -> vector<8x16xf32>
    %66 = vector.extract_strided_slice %50 {offsets = [40, 0], sizes = [8, 8], strides = [1, 1]} : vector<64x8xbf16> to vector<8x8xbf16>
    %67 = vector.extract_strided_slice %12 {offsets = [0, 80], sizes = [8, 16], strides = [1, 1]} : vector<8x128xbf16> to vector<8x16xbf16>
    %cst_23 = arith.constant dense<0.000000e+00> : vector<8x16xf32>
    %68 = tpu.matmul %66, %67, %cst_23 {dimension_numbers = #tpu.dot_dimension_numbers<[1], [0], [0], [1], [0, 0, 1, 1], [], []>} : vector<8x8xbf16>, vector<8x16xbf16>, vector<8x16xf32> -> vector<8x16xf32>
    %69 = vector.extract_strided_slice %50 {offsets = [48, 0], sizes = [8, 8], strides = [1, 1]} : vector<64x8xbf16> to vector<8x8xbf16>
    %70 = vector.extract_strided_slice %12 {offsets = [0, 96], sizes = [8, 16], strides = [1, 1]} : vector<8x128xbf16> to vector<8x16xbf16>
    %cst_24 = arith.constant dense<0.000000e+00> : vector<8x16xf32>
    %71 = tpu.matmul %69, %70, %cst_24 {dimension_numbers = #tpu.dot_dimension_numbers<[1], [0], [0], [1], [0, 0, 1, 1], [], []>} : vector<8x8xbf16>, vector<8x16xbf16>, vector<8x16xf32> -> vector<8x16xf32>
    %72 = vector.extract_strided_slice %50 {offsets = [56, 0], sizes = [8, 8], strides = [1, 1]} : vector<64x8xbf16> to vector<8x8xbf16>
    %73 = vector.extract_strided_slice %12 {offsets = [0, 112], sizes = [8, 16], strides = [1, 1]} : vector<8x128xbf16> to vector<8x16xbf16>
    %cst_25 = arith.constant dense<0.000000e+00> : vector<8x16xf32>
    %74 = tpu.matmul %72, %73, %cst_25 {dimension_numbers = #tpu.dot_dimension_numbers<[1], [0], [0], [1], [0, 0, 1, 1], [], []>} : vector<8x8xbf16>, vector<8x16xbf16>, vector<8x16xf32> -> vector<8x16xf32>
    %75 = tpu.concatenate %53, %56, %59, %62, %65, %68, %71, %74 in 1 : vector<8x16xf32>, vector<8x16xf32>, vector<8x16xf32>, vector<8x16xf32>, vector<8x16xf32>, vector<8x16xf32>, vector<8x16xf32>, vector<8x16xf32> -> vector<8x128xf32>
    %76 = arith.truncf %75 : vector<8x128xf32> to vector<8x128xbf16>
    %c0_26 = arith.constant 0 : index
    %c0_27 = arith.constant 0 : index
    %c0_28 = arith.constant 0 : index
    %77 = vector.load %arg3[%c0_26, %c0_27, %c0_28] : memref<3x128x128xbf16, #tpu.memory_space<vmem>>, vector<1x128x128xbf16>
    %78 = vector.shape_cast %77 : vector<1x128x128xbf16> to vector<128x128xbf16>
    %cst_29 = arith.constant dense<0.000000e+00> : vector<8x128xf32>
    %79 = tpu.matmul %76, %78, %cst_29 {dimension_numbers = #tpu.dot_dimension_numbers<[1], [0], [0], [1], [0, 0, 1, 1], [], []>} : vector<8x128xbf16>, vector<128x128xbf16>, vector<8x128xf32> -> vector<8x128xf32>
    %c0_30 = arith.constant 0 : index
    %c0_31 = arith.constant 0 : index
    %c0_32 = arith.constant 0 : index
    %80 = vector.load %arg4[%c0_30, %c0_31, %c0_32] : memref<3x1x128xf32, #tpu.memory_space<vmem>>, vector<1x1x128xf32>
    %81 = vector.shape_cast %80 : vector<1x1x128xf32> to vector<1x128xf32>
    %82 = vector.broadcast %81 : vector<1x128xf32> to vector<8x128xf32>
    %83 = arith.addf %79, %82 : vector<8x128xf32>
    %84 = arith.addf %0, %83 : vector<8x128xf32>
    %c0_33 = arith.constant 0 : index
    %c0_34 = arith.constant 0 : index
    %c0_35 = arith.constant 0 : index
    %85 = vector.load %arg5[%c0_33, %c0_34, %c0_35] : memref<3x1x128xf32, #tpu.memory_space<vmem>>, vector<1x1x128xf32>
    %86 = vector.shape_cast %85 : vector<1x1x128xf32> to vector<1x128xf32>
    %c0_36 = arith.constant 0 : index
    %c0_37 = arith.constant 0 : index
    %c0_38 = arith.constant 0 : index
    %87 = vector.load %arg6[%c0_36, %c0_37, %c0_38] : memref<3x1x128xf32, #tpu.memory_space<vmem>>, vector<1x1x128xf32>
    %88 = vector.shape_cast %87 : vector<1x1x128xf32> to vector<1x128xf32>
    %cst_39 = arith.constant dense<0.000000e+00> : vector<8xf32>
    %89 = vector.multi_reduction <add>, %84, %cst_39 [1] : vector<8x128xf32> to vector<8xf32>
    %90 = vector.shape_cast %89 : vector<8xf32> to vector<8x1xf32>
    %cst_40 = arith.constant 7.812500e-03 : f32
    %91 = vector.broadcast %cst_40 : f32 to vector<8x1xf32>
    %92 = arith.mulf %90, %91 : vector<8x1xf32>
    %93 = vector.broadcast %92 : vector<8x1xf32> to vector<8x128xf32>
    %94 = arith.subf %84, %93 : vector<8x128xf32>
    %95 = arith.mulf %94, %94 : vector<8x128xf32>
    %cst_41 = arith.constant dense<0.000000e+00> : vector<8xf32>
    %96 = vector.multi_reduction <add>, %95, %cst_41 [1] : vector<8x128xf32> to vector<8xf32>
    %97 = vector.shape_cast %96 : vector<8xf32> to vector<8x1xf32>
    %cst_42 = arith.constant 7.812500e-03 : f32
    %98 = vector.broadcast %cst_42 : f32 to vector<8x1xf32>
    %99 = arith.mulf %97, %98 : vector<8x1xf32>
    %cst_43 = arith.constant 9.99999974E-6 : f32
    %100 = vector.broadcast %cst_43 : f32 to vector<8x1xf32>
    %101 = arith.addf %99, %100 : vector<8x1xf32>
    %102 = math.rsqrt %101 : vector<8x1xf32>
    %103 = vector.broadcast %102 : vector<8x1xf32> to vector<8x128xf32>
    %104 = arith.mulf %94, %103 : vector<8x128xf32>
    %105 = vector.broadcast %86 : vector<1x128xf32> to vector<8x128xf32>
    %106 = arith.mulf %104, %105 : vector<8x128xf32>
    %107 = vector.broadcast %88 : vector<1x128xf32> to vector<8x128xf32>
    %108 = arith.addf %106, %107 : vector<8x128xf32>
    %109 = arith.truncf %108 : vector<8x128xf32> to vector<8x128xbf16>
    %c0_44 = arith.constant 0 : index
    %c0_45 = arith.constant 0 : index
    %c0_46 = arith.constant 0 : index
    %110 = vector.load %arg7[%c0_44, %c0_45, %c0_46] : memref<3x128x512xbf16, #tpu.memory_space<vmem>>, vector<1x128x512xbf16>
    %111 = vector.shape_cast %110 : vector<1x128x512xbf16> to vector<128x512xbf16>
    %cst_47 = arith.constant dense<0.000000e+00> : vector<8x512xf32>
    %112 = tpu.matmul %109, %111, %cst_47 {dimension_numbers = #tpu.dot_dimension_numbers<[1], [0], [0], [1], [0, 0, 1, 1], [], []>} : vector<8x128xbf16>, vector<128x512xbf16>, vector<8x512xf32> -> vector<8x512xf32>
    %c0_48 = arith.constant 0 : index
    %c0_49 = arith.constant 0 : index
    %c0_50 = arith.constant 0 : index
    %113 = vector.load %arg8[%c0_48, %c0_49, %c0_50] : memref<3x1x512xf32, #tpu.memory_space<vmem>>, vector<1x1x512xf32>
    %114 = vector.shape_cast %113 : vector<1x1x512xf32> to vector<1x512xf32>
    %115 = vector.broadcast %114 : vector<1x512xf32> to vector<8x512xf32>
    %116 = arith.addf %112, %115 : vector<8x512xf32>
    %cst_51 = arith.constant 0.000000e+00 : f32
    %117 = vector.broadcast %cst_51 : f32 to vector<8x512xf32>
    %118 = arith.maximumf %116, %117 : vector<8x512xf32>
    %119 = arith.truncf %118 : vector<8x512xf32> to vector<8x512xbf16>
    %c0_52 = arith.constant 0 : index
    %c0_53 = arith.constant 0 : index
    %c0_54 = arith.constant 0 : index
    %120 = vector.load %arg9[%c0_52, %c0_53, %c0_54] : memref<3x512x128xbf16, #tpu.memory_space<vmem>>, vector<1x512x128xbf16>
    %121 = vector.shape_cast %120 : vector<1x512x128xbf16> to vector<512x128xbf16>
    %cst_55 = arith.constant dense<0.000000e+00> : vector<8x128xf32>
    %122 = tpu.matmul %119, %121, %cst_55 {dimension_numbers = #tpu.dot_dimension_numbers<[1], [0], [0], [1], [0, 0, 1, 1], [], []>} : vector<8x512xbf16>, vector<512x128xbf16>, vector<8x128xf32> -> vector<8x128xf32>
    %c0_56 = arith.constant 0 : index
    %c0_57 = arith.constant 0 : index
    %c0_58 = arith.constant 0 : index
    %123 = vector.load %arg10[%c0_56, %c0_57, %c0_58] : memref<3x1x128xf32, #tpu.memory_space<vmem>>, vector<1x1x128xf32>
    %124 = vector.shape_cast %123 : vector<1x1x128xf32> to vector<1x128xf32>
    %125 = vector.broadcast %124 : vector<1x128xf32> to vector<8x128xf32>
    %126 = arith.addf %122, %125 : vector<8x128xf32>
    %127 = arith.addf %108, %126 : vector<8x128xf32>
    %c0_59 = arith.constant 0 : index
    %c0_60 = arith.constant 0 : index
    %c0_61 = arith.constant 0 : index
    %128 = vector.load %arg11[%c0_59, %c0_60, %c0_61] : memref<3x1x128xf32, #tpu.memory_space<vmem>>, vector<1x1x128xf32>
    %129 = vector.shape_cast %128 : vector<1x1x128xf32> to vector<1x128xf32>
    %c0_62 = arith.constant 0 : index
    %c0_63 = arith.constant 0 : index
    %c0_64 = arith.constant 0 : index
    %130 = vector.load %arg12[%c0_62, %c0_63, %c0_64] : memref<3x1x128xf32, #tpu.memory_space<vmem>>, vector<1x1x128xf32>
    %131 = vector.shape_cast %130 : vector<1x1x128xf32> to vector<1x128xf32>
    %cst_65 = arith.constant dense<0.000000e+00> : vector<8xf32>
    %132 = vector.multi_reduction <add>, %127, %cst_65 [1] : vector<8x128xf32> to vector<8xf32>
    %133 = vector.shape_cast %132 : vector<8xf32> to vector<8x1xf32>
    %cst_66 = arith.constant 7.812500e-03 : f32
    %134 = vector.broadcast %cst_66 : f32 to vector<8x1xf32>
    %135 = arith.mulf %133, %134 : vector<8x1xf32>
    %136 = vector.broadcast %135 : vector<8x1xf32> to vector<8x128xf32>
    %137 = arith.subf %127, %136 : vector<8x128xf32>
    %138 = arith.mulf %137, %137 : vector<8x128xf32>
    %cst_67 = arith.constant dense<0.000000e+00> : vector<8xf32>
    %139 = vector.multi_reduction <add>, %138, %cst_67 [1] : vector<8x128xf32> to vector<8xf32>
    %140 = vector.shape_cast %139 : vector<8xf32> to vector<8x1xf32>
    %cst_68 = arith.constant 7.812500e-03 : f32
    %141 = vector.broadcast %cst_68 : f32 to vector<8x1xf32>
    %142 = arith.mulf %140, %141 : vector<8x1xf32>
    %cst_69 = arith.constant 9.99999974E-6 : f32
    %143 = vector.broadcast %cst_69 : f32 to vector<8x1xf32>
    %144 = arith.addf %142, %143 : vector<8x1xf32>
    %145 = math.rsqrt %144 : vector<8x1xf32>
    %146 = vector.broadcast %145 : vector<8x1xf32> to vector<8x128xf32>
    %147 = arith.mulf %137, %146 : vector<8x128xf32>
    %148 = vector.broadcast %129 : vector<1x128xf32> to vector<8x128xf32>
    %149 = arith.mulf %147, %148 : vector<8x128xf32>
    %150 = vector.broadcast %131 : vector<1x128xf32> to vector<8x128xf32>
    %151 = arith.addf %149, %150 : vector<8x128xf32>
    %152 = arith.truncf %151 : vector<8x128xf32> to vector<8x128xbf16>
    %c1 = arith.constant 1 : index
    %c0_70 = arith.constant 0 : index
    %c0_71 = arith.constant 0 : index
    %153 = vector.load %arg1[%c1, %c0_70, %c0_71] : memref<3x128x384xbf16, #tpu.memory_space<vmem>>, vector<1x128x384xbf16>
    %154 = vector.shape_cast %153 : vector<1x128x384xbf16> to vector<128x384xbf16>
    %cst_72 = arith.constant dense<0.000000e+00> : vector<8x384xf32>
    %155 = tpu.matmul %152, %154, %cst_72 {dimension_numbers = #tpu.dot_dimension_numbers<[1], [0], [0], [1], [0, 0, 1, 1], [], []>} : vector<8x128xbf16>, vector<128x384xbf16>, vector<8x384xf32> -> vector<8x384xf32>
    %c1_73 = arith.constant 1 : index
    %c0_74 = arith.constant 0 : index
    %c0_75 = arith.constant 0 : index
    %156 = vector.load %arg2[%c1_73, %c0_74, %c0_75] : memref<3x1x384xf32, #tpu.memory_space<vmem>>, vector<1x1x384xf32>
    %157 = vector.shape_cast %156 : vector<1x1x384xf32> to vector<1x384xf32>
    %158 = vector.broadcast %157 : vector<1x384xf32> to vector<8x384xf32>
    %159 = arith.addf %155, %158 : vector<8x384xf32>
    %160 = arith.truncf %159 : vector<8x384xf32> to vector<8x384xbf16>
    %161 = vector.extract_strided_slice %160 {offsets = [0, 0], sizes = [8, 128], strides = [1, 1]} : vector<8x384xbf16> to vector<8x128xbf16>
    %162 = vector.extract_strided_slice %160 {offsets = [0, 128], sizes = [8, 128], strides = [1, 1]} : vector<8x384xbf16> to vector<8x128xbf16>
    %163 = vector.extract_strided_slice %160 {offsets = [0, 256], sizes = [8, 128], strides = [1, 1]} : vector<8x384xbf16> to vector<8x128xbf16>
    %164 = vector.extract_strided_slice %161 {offsets = [0, 0], sizes = [8, 16], strides = [1, 1]} : vector<8x128xbf16> to vector<8x16xbf16>
    %165 = vector.extract_strided_slice %162 {offsets = [0, 0], sizes = [8, 16], strides = [1, 1]} : vector<8x128xbf16> to vector<8x16xbf16>
    "tpu.trace_start"() <{level = 10 : i32, message = "qd,kd->qk"}> : () -> ()
    %cst_76 = arith.constant dense<0.000000e+00> : vector<8x8xf32>
    %166 = tpu.matmul %164, %165, %cst_76 {dimension_numbers = #tpu.dot_dimension_numbers<[1], [1], [0], [0], [0, 0, 1, 0], [], []>} : vector<8x16xbf16>, vector<8x16xbf16>, vector<8x8xf32> -> vector<8x8xf32>
    "tpu.trace_stop"() : () -> ()
    %167 = vector.extract_strided_slice %161 {offsets = [0, 16], sizes = [8, 16], strides = [1, 1]} : vector<8x128xbf16> to vector<8x16xbf16>
    %168 = vector.extract_strided_slice %162 {offsets = [0, 16], sizes = [8, 16], strides = [1, 1]} : vector<8x128xbf16> to vector<8x16xbf16>
    "tpu.trace_start"() <{level = 10 : i32, message = "qd,kd->qk"}> : () -> ()
    %cst_77 = arith.constant dense<0.000000e+00> : vector<8x8xf32>
    %169 = tpu.matmul %167, %168, %cst_77 {dimension_numbers = #tpu.dot_dimension_numbers<[1], [1], [0], [0], [0, 0, 1, 0], [], []>} : vector<8x16xbf16>, vector<8x16xbf16>, vector<8x8xf32> -> vector<8x8xf32>
    "tpu.trace_stop"() : () -> ()
    %170 = vector.extract_strided_slice %161 {offsets = [0, 32], sizes = [8, 16], strides = [1, 1]} : vector<8x128xbf16> to vector<8x16xbf16>
    %171 = vector.extract_strided_slice %162 {offsets = [0, 32], sizes = [8, 16], strides = [1, 1]} : vector<8x128xbf16> to vector<8x16xbf16>
    "tpu.trace_start"() <{level = 10 : i32, message = "qd,kd->qk"}> : () -> ()
    %cst_78 = arith.constant dense<0.000000e+00> : vector<8x8xf32>
    %172 = tpu.matmul %170, %171, %cst_78 {dimension_numbers = #tpu.dot_dimension_numbers<[1], [1], [0], [0], [0, 0, 1, 0], [], []>} : vector<8x16xbf16>, vector<8x16xbf16>, vector<8x8xf32> -> vector<8x8xf32>
    "tpu.trace_stop"() : () -> ()
    %173 = vector.extract_strided_slice %161 {offsets = [0, 48], sizes = [8, 16], strides = [1, 1]} : vector<8x128xbf16> to vector<8x16xbf16>
    %174 = vector.extract_strided_slice %162 {offsets = [0, 48], sizes = [8, 16], strides = [1, 1]} : vector<8x128xbf16> to vector<8x16xbf16>
    "tpu.trace_start"() <{level = 10 : i32, message = "qd,kd->qk"}> : () -> ()
    %cst_79 = arith.constant dense<0.000000e+00> : vector<8x8xf32>
    %175 = tpu.matmul %173, %174, %cst_79 {dimension_numbers = #tpu.dot_dimension_numbers<[1], [1], [0], [0], [0, 0, 1, 0], [], []>} : vector<8x16xbf16>, vector<8x16xbf16>, vector<8x8xf32> -> vector<8x8xf32>
    "tpu.trace_stop"() : () -> ()
    %176 = vector.extract_strided_slice %161 {offsets = [0, 64], sizes = [8, 16], strides = [1, 1]} : vector<8x128xbf16> to vector<8x16xbf16>
    %177 = vector.extract_strided_slice %162 {offsets = [0, 64], sizes = [8, 16], strides = [1, 1]} : vector<8x128xbf16> to vector<8x16xbf16>
    "tpu.trace_start"() <{level = 10 : i32, message = "qd,kd->qk"}> : () -> ()
    %cst_80 = arith.constant dense<0.000000e+00> : vector<8x8xf32>
    %178 = tpu.matmul %176, %177, %cst_80 {dimension_numbers = #tpu.dot_dimension_numbers<[1], [1], [0], [0], [0, 0, 1, 0], [], []>} : vector<8x16xbf16>, vector<8x16xbf16>, vector<8x8xf32> -> vector<8x8xf32>
    "tpu.trace_stop"() : () -> ()
    %179 = vector.extract_strided_slice %161 {offsets = [0, 80], sizes = [8, 16], strides = [1, 1]} : vector<8x128xbf16> to vector<8x16xbf16>
    %180 = vector.extract_strided_slice %162 {offsets = [0, 80], sizes = [8, 16], strides = [1, 1]} : vector<8x128xbf16> to vector<8x16xbf16>
    "tpu.trace_start"() <{level = 10 : i32, message = "qd,kd->qk"}> : () -> ()
    %cst_81 = arith.constant dense<0.000000e+00> : vector<8x8xf32>
    %181 = tpu.matmul %179, %180, %cst_81 {dimension_numbers = #tpu.dot_dimension_numbers<[1], [1], [0], [0], [0, 0, 1, 0], [], []>} : vector<8x16xbf16>, vector<8x16xbf16>, vector<8x8xf32> -> vector<8x8xf32>
    "tpu.trace_stop"() : () -> ()
    %182 = vector.extract_strided_slice %161 {offsets = [0, 96], sizes = [8, 16], strides = [1, 1]} : vector<8x128xbf16> to vector<8x16xbf16>
    %183 = vector.extract_strided_slice %162 {offsets = [0, 96], sizes = [8, 16], strides = [1, 1]} : vector<8x128xbf16> to vector<8x16xbf16>
    "tpu.trace_start"() <{level = 10 : i32, message = "qd,kd->qk"}> : () -> ()
    %cst_82 = arith.constant dense<0.000000e+00> : vector<8x8xf32>
    %184 = tpu.matmul %182, %183, %cst_82 {dimension_numbers = #tpu.dot_dimension_numbers<[1], [1], [0], [0], [0, 0, 1, 0], [], []>} : vector<8x16xbf16>, vector<8x16xbf16>, vector<8x8xf32> -> vector<8x8xf32>
    "tpu.trace_stop"() : () -> ()
    %185 = vector.extract_strided_slice %161 {offsets = [0, 112], sizes = [8, 16], strides = [1, 1]} : vector<8x128xbf16> to vector<8x16xbf16>
    %186 = vector.extract_strided_slice %162 {offsets = [0, 112], sizes = [8, 16], strides = [1, 1]} : vector<8x128xbf16> to vector<8x16xbf16>
    "tpu.trace_start"() <{level = 10 : i32, message = "qd,kd->qk"}> : () -> ()
    %cst_83 = arith.constant dense<0.000000e+00> : vector<8x8xf32>
    %187 = tpu.matmul %185, %186, %cst_83 {dimension_numbers = #tpu.dot_dimension_numbers<[1], [1], [0], [0], [0, 0, 1, 0], [], []>} : vector<8x16xbf16>, vector<8x16xbf16>, vector<8x8xf32> -> vector<8x8xf32>
    "tpu.trace_stop"() : () -> ()
    %188 = tpu.concatenate %166, %169, %172, %175, %178, %181, %184, %187 in 0 : vector<8x8xf32>, vector<8x8xf32>, vector<8x8xf32>, vector<8x8xf32>, vector<8x8xf32>, vector<8x8xf32>, vector<8x8xf32>, vector<8x8xf32> -> vector<64x8xf32>
    %cst_84 = arith.constant 2.500000e-01 : f32
    %189 = vector.broadcast %cst_84 : f32 to vector<64x8xf32>
    %190 = arith.mulf %188, %189 : vector<64x8xf32>
    %cst_85 = arith.constant dense<0xFF800000> : vector<64xf32>
    %191 = vector.multi_reduction <maximumf>, %190, %cst_85 [1] : vector<64x8xf32> to vector<64xf32>
    %192 = vector.shape_cast %191 : vector<64xf32> to vector<64x1xf32>
    %193 = vector.broadcast %192 : vector<64x1xf32> to vector<64x8xf32>
    %194 = arith.subf %190, %193 : vector<64x8xf32>
    %195 = math.exp %194 : vector<64x8xf32>
    %cst_86 = arith.constant dense<0.000000e+00> : vector<64xf32>
    %196 = vector.multi_reduction <add>, %195, %cst_86 [1] : vector<64x8xf32> to vector<64xf32>
    %197 = vector.shape_cast %196 : vector<64xf32> to vector<64x1xf32>
    %198 = tpu.reciprocal %197 : vector<64x1xf32> -> vector<64x1xf32>
    %199 = vector.broadcast %198 : vector<64x1xf32> to vector<64x8xf32>
    %200 = arith.mulf %195, %199 : vector<64x8xf32>
    %201 = arith.truncf %200 : vector<64x8xf32> to vector<64x8xbf16>
    %202 = vector.extract_strided_slice %201 {offsets = [0, 0], sizes = [8, 8], strides = [1, 1]} : vector<64x8xbf16> to vector<8x8xbf16>
    %203 = vector.extract_strided_slice %163 {offsets = [0, 0], sizes = [8, 16], strides = [1, 1]} : vector<8x128xbf16> to vector<8x16xbf16>
    %cst_87 = arith.constant dense<0.000000e+00> : vector<8x16xf32>
    %204 = tpu.matmul %202, %203, %cst_87 {dimension_numbers = #tpu.dot_dimension_numbers<[1], [0], [0], [1], [0, 0, 1, 1], [], []>} : vector<8x8xbf16>, vector<8x16xbf16>, vector<8x16xf32> -> vector<8x16xf32>
    %205 = vector.extract_strided_slice %201 {offsets = [8, 0], sizes = [8, 8], strides = [1, 1]} : vector<64x8xbf16> to vector<8x8xbf16>
    %206 = vector.extract_strided_slice %163 {offsets = [0, 16], sizes = [8, 16], strides = [1, 1]} : vector<8x128xbf16> to vector<8x16xbf16>
    %cst_88 = arith.constant dense<0.000000e+00> : vector<8x16xf32>
    %207 = tpu.matmul %205, %206, %cst_88 {dimension_numbers = #tpu.dot_dimension_numbers<[1], [0], [0], [1], [0, 0, 1, 1], [], []>} : vector<8x8xbf16>, vector<8x16xbf16>, vector<8x16xf32> -> vector<8x16xf32>
    %208 = vector.extract_strided_slice %201 {offsets = [16, 0], sizes = [8, 8], strides = [1, 1]} : vector<64x8xbf16> to vector<8x8xbf16>
    %209 = vector.extract_strided_slice %163 {offsets = [0, 32], sizes = [8, 16], strides = [1, 1]} : vector<8x128xbf16> to vector<8x16xbf16>
    %cst_89 = arith.constant dense<0.000000e+00> : vector<8x16xf32>
    %210 = tpu.matmul %208, %209, %cst_89 {dimension_numbers = #tpu.dot_dimension_numbers<[1], [0], [0], [1], [0, 0, 1, 1], [], []>} : vector<8x8xbf16>, vector<8x16xbf16>, vector<8x16xf32> -> vector<8x16xf32>
    %211 = vector.extract_strided_slice %201 {offsets = [24, 0], sizes = [8, 8], strides = [1, 1]} : vector<64x8xbf16> to vector<8x8xbf16>
    %212 = vector.extract_strided_slice %163 {offsets = [0, 48], sizes = [8, 16], strides = [1, 1]} : vector<8x128xbf16> to vector<8x16xbf16>
    %cst_90 = arith.constant dense<0.000000e+00> : vector<8x16xf32>
    %213 = tpu.matmul %211, %212, %cst_90 {dimension_numbers = #tpu.dot_dimension_numbers<[1], [0], [0], [1], [0, 0, 1, 1], [], []>} : vector<8x8xbf16>, vector<8x16xbf16>, vector<8x16xf32> -> vector<8x16xf32>
    %214 = vector.extract_strided_slice %201 {offsets = [32, 0], sizes = [8, 8], strides = [1, 1]} : vector<64x8xbf16> to vector<8x8xbf16>
    %215 = vector.extract_strided_slice %163 {offsets = [0, 64], sizes = [8, 16], strides = [1, 1]} : vector<8x128xbf16> to vector<8x16xbf16>
    %cst_91 = arith.constant dense<0.000000e+00> : vector<8x16xf32>
    %216 = tpu.matmul %214, %215, %cst_91 {dimension_numbers = #tpu.dot_dimension_numbers<[1], [0], [0], [1], [0, 0, 1, 1], [], []>} : vector<8x8xbf16>, vector<8x16xbf16>, vector<8x16xf32> -> vector<8x16xf32>
    %217 = vector.extract_strided_slice %201 {offsets = [40, 0], sizes = [8, 8], strides = [1, 1]} : vector<64x8xbf16> to vector<8x8xbf16>
    %218 = vector.extract_strided_slice %163 {offsets = [0, 80], sizes = [8, 16], strides = [1, 1]} : vector<8x128xbf16> to vector<8x16xbf16>
    %cst_92 = arith.constant dense<0.000000e+00> : vector<8x16xf32>
    %219 = tpu.matmul %217, %218, %cst_92 {dimension_numbers = #tpu.dot_dimension_numbers<[1], [0], [0], [1], [0, 0, 1, 1], [], []>} : vector<8x8xbf16>, vector<8x16xbf16>, vector<8x16xf32> -> vector<8x16xf32>
    %220 = vector.extract_strided_slice %201 {offsets = [48, 0], sizes = [8, 8], strides = [1, 1]} : vector<64x8xbf16> to vector<8x8xbf16>
    %221 = vector.extract_strided_slice %163 {offsets = [0, 96], sizes = [8, 16], strides = [1, 1]} : vector<8x128xbf16> to vector<8x16xbf16>
    %cst_93 = arith.constant dense<0.000000e+00> : vector<8x16xf32>
    %222 = tpu.matmul %220, %221, %cst_93 {dimension_numbers = #tpu.dot_dimension_numbers<[1], [0], [0], [1], [0, 0, 1, 1], [], []>} : vector<8x8xbf16>, vector<8x16xbf16>, vector<8x16xf32> -> vector<8x16xf32>
    %223 = vector.extract_strided_slice %201 {offsets = [56, 0], sizes = [8, 8], strides = [1, 1]} : vector<64x8xbf16> to vector<8x8xbf16>
    %224 = vector.extract_strided_slice %163 {offsets = [0, 112], sizes = [8, 16], strides = [1, 1]} : vector<8x128xbf16> to vector<8x16xbf16>
    %cst_94 = arith.constant dense<0.000000e+00> : vector<8x16xf32>
    %225 = tpu.matmul %223, %224, %cst_94 {dimension_numbers = #tpu.dot_dimension_numbers<[1], [0], [0], [1], [0, 0, 1, 1], [], []>} : vector<8x8xbf16>, vector<8x16xbf16>, vector<8x16xf32> -> vector<8x16xf32>
    %226 = tpu.concatenate %204, %207, %210, %213, %216, %219, %222, %225 in 1 : vector<8x16xf32>, vector<8x16xf32>, vector<8x16xf32>, vector<8x16xf32>, vector<8x16xf32>, vector<8x16xf32>, vector<8x16xf32>, vector<8x16xf32> -> vector<8x128xf32>
    %227 = arith.truncf %226 : vector<8x128xf32> to vector<8x128xbf16>
    %c1_95 = arith.constant 1 : index
    %c0_96 = arith.constant 0 : index
    %c0_97 = arith.constant 0 : index
    %228 = vector.load %arg3[%c1_95, %c0_96, %c0_97] : memref<3x128x128xbf16, #tpu.memory_space<vmem>>, vector<1x128x128xbf16>
    %229 = vector.shape_cast %228 : vector<1x128x128xbf16> to vector<128x128xbf16>
    %cst_98 = arith.constant dense<0.000000e+00> : vector<8x128xf32>
    %230 = tpu.matmul %227, %229, %cst_98 {dimension_numbers = #tpu.dot_dimension_numbers<[1], [0], [0], [1], [0, 0, 1, 1], [], []>} : vector<8x128xbf16>, vector<128x128xbf16>, vector<8x128xf32> -> vector<8x128xf32>
    %c1_99 = arith.constant 1 : index
    %c0_100 = arith.constant 0 : index
    %c0_101 = arith.constant 0 : index
    %231 = vector.load %arg4[%c1_99, %c0_100, %c0_101] : memref<3x1x128xf32, #tpu.memory_space<vmem>>, vector<1x1x128xf32>
    %232 = vector.shape_cast %231 : vector<1x1x128xf32> to vector<1x128xf32>
    %233 = vector.broadcast %232 : vector<1x128xf32> to vector<8x128xf32>
    %234 = arith.addf %230, %233 : vector<8x128xf32>
    %235 = arith.addf %151, %234 : vector<8x128xf32>
    %c1_102 = arith.constant 1 : index
    %c0_103 = arith.constant 0 : index
    %c0_104 = arith.constant 0 : index
    %236 = vector.load %arg5[%c1_102, %c0_103, %c0_104] : memref<3x1x128xf32, #tpu.memory_space<vmem>>, vector<1x1x128xf32>
    %237 = vector.shape_cast %236 : vector<1x1x128xf32> to vector<1x128xf32>
    %c1_105 = arith.constant 1 : index
    %c0_106 = arith.constant 0 : index
    %c0_107 = arith.constant 0 : index
    %238 = vector.load %arg6[%c1_105, %c0_106, %c0_107] : memref<3x1x128xf32, #tpu.memory_space<vmem>>, vector<1x1x128xf32>
    %239 = vector.shape_cast %238 : vector<1x1x128xf32> to vector<1x128xf32>
    %cst_108 = arith.constant dense<0.000000e+00> : vector<8xf32>
    %240 = vector.multi_reduction <add>, %235, %cst_108 [1] : vector<8x128xf32> to vector<8xf32>
    %241 = vector.shape_cast %240 : vector<8xf32> to vector<8x1xf32>
    %cst_109 = arith.constant 7.812500e-03 : f32
    %242 = vector.broadcast %cst_109 : f32 to vector<8x1xf32>
    %243 = arith.mulf %241, %242 : vector<8x1xf32>
    %244 = vector.broadcast %243 : vector<8x1xf32> to vector<8x128xf32>
    %245 = arith.subf %235, %244 : vector<8x128xf32>
    %246 = arith.mulf %245, %245 : vector<8x128xf32>
    %cst_110 = arith.constant dense<0.000000e+00> : vector<8xf32>
    %247 = vector.multi_reduction <add>, %246, %cst_110 [1] : vector<8x128xf32> to vector<8xf32>
    %248 = vector.shape_cast %247 : vector<8xf32> to vector<8x1xf32>
    %cst_111 = arith.constant 7.812500e-03 : f32
    %249 = vector.broadcast %cst_111 : f32 to vector<8x1xf32>
    %250 = arith.mulf %248, %249 : vector<8x1xf32>
    %cst_112 = arith.constant 9.99999974E-6 : f32
    %251 = vector.broadcast %cst_112 : f32 to vector<8x1xf32>
    %252 = arith.addf %250, %251 : vector<8x1xf32>
    %253 = math.rsqrt %252 : vector<8x1xf32>
    %254 = vector.broadcast %253 : vector<8x1xf32> to vector<8x128xf32>
    %255 = arith.mulf %245, %254 : vector<8x128xf32>
    %256 = vector.broadcast %237 : vector<1x128xf32> to vector<8x128xf32>
    %257 = arith.mulf %255, %256 : vector<8x128xf32>
    %258 = vector.broadcast %239 : vector<1x128xf32> to vector<8x128xf32>
    %259 = arith.addf %257, %258 : vector<8x128xf32>
    %260 = arith.truncf %259 : vector<8x128xf32> to vector<8x128xbf16>
    %c1_113 = arith.constant 1 : index
    %c0_114 = arith.constant 0 : index
    %c0_115 = arith.constant 0 : index
    %261 = vector.load %arg7[%c1_113, %c0_114, %c0_115] : memref<3x128x512xbf16, #tpu.memory_space<vmem>>, vector<1x128x512xbf16>
    %262 = vector.shape_cast %261 : vector<1x128x512xbf16> to vector<128x512xbf16>
    %cst_116 = arith.constant dense<0.000000e+00> : vector<8x512xf32>
    %263 = tpu.matmul %260, %262, %cst_116 {dimension_numbers = #tpu.dot_dimension_numbers<[1], [0], [0], [1], [0, 0, 1, 1], [], []>} : vector<8x128xbf16>, vector<128x512xbf16>, vector<8x512xf32> -> vector<8x512xf32>
    %c1_117 = arith.constant 1 : index
    %c0_118 = arith.constant 0 : index
    %c0_119 = arith.constant 0 : index
    %264 = vector.load %arg8[%c1_117, %c0_118, %c0_119] : memref<3x1x512xf32, #tpu.memory_space<vmem>>, vector<1x1x512xf32>
    %265 = vector.shape_cast %264 : vector<1x1x512xf32> to vector<1x512xf32>
    %266 = vector.broadcast %265 : vector<1x512xf32> to vector<8x512xf32>
    %267 = arith.addf %263, %266 : vector<8x512xf32>
    %cst_120 = arith.constant 0.000000e+00 : f32
    %268 = vector.broadcast %cst_120 : f32 to vector<8x512xf32>
    %269 = arith.maximumf %267, %268 : vector<8x512xf32>
    %270 = arith.truncf %269 : vector<8x512xf32> to vector<8x512xbf16>
    %c1_121 = arith.constant 1 : index
    %c0_122 = arith.constant 0 : index
    %c0_123 = arith.constant 0 : index
    %271 = vector.load %arg9[%c1_121, %c0_122, %c0_123] : memref<3x512x128xbf16, #tpu.memory_space<vmem>>, vector<1x512x128xbf16>
    %272 = vector.shape_cast %271 : vector<1x512x128xbf16> to vector<512x128xbf16>
    %cst_124 = arith.constant dense<0.000000e+00> : vector<8x128xf32>
    %273 = tpu.matmul %270, %272, %cst_124 {dimension_numbers = #tpu.dot_dimension_numbers<[1], [0], [0], [1], [0, 0, 1, 1], [], []>} : vector<8x512xbf16>, vector<512x128xbf16>, vector<8x128xf32> -> vector<8x128xf32>
    %c1_125 = arith.constant 1 : index
    %c0_126 = arith.constant 0 : index
    %c0_127 = arith.constant 0 : index
    %274 = vector.load %arg10[%c1_125, %c0_126, %c0_127] : memref<3x1x128xf32, #tpu.memory_space<vmem>>, vector<1x1x128xf32>
    %275 = vector.shape_cast %274 : vector<1x1x128xf32> to vector<1x128xf32>
    %276 = vector.broadcast %275 : vector<1x128xf32> to vector<8x128xf32>
    %277 = arith.addf %273, %276 : vector<8x128xf32>
    %278 = arith.addf %259, %277 : vector<8x128xf32>
    %c1_128 = arith.constant 1 : index
    %c0_129 = arith.constant 0 : index
    %c0_130 = arith.constant 0 : index
    %279 = vector.load %arg11[%c1_128, %c0_129, %c0_130] : memref<3x1x128xf32, #tpu.memory_space<vmem>>, vector<1x1x128xf32>
    %280 = vector.shape_cast %279 : vector<1x1x128xf32> to vector<1x128xf32>
    %c1_131 = arith.constant 1 : index
    %c0_132 = arith.constant 0 : index
    %c0_133 = arith.constant 0 : index
    %281 = vector.load %arg12[%c1_131, %c0_132, %c0_133] : memref<3x1x128xf32, #tpu.memory_space<vmem>>, vector<1x1x128xf32>
    %282 = vector.shape_cast %281 : vector<1x1x128xf32> to vector<1x128xf32>
    %cst_134 = arith.constant dense<0.000000e+00> : vector<8xf32>
    %283 = vector.multi_reduction <add>, %278, %cst_134 [1] : vector<8x128xf32> to vector<8xf32>
    %284 = vector.shape_cast %283 : vector<8xf32> to vector<8x1xf32>
    %cst_135 = arith.constant 7.812500e-03 : f32
    %285 = vector.broadcast %cst_135 : f32 to vector<8x1xf32>
    %286 = arith.mulf %284, %285 : vector<8x1xf32>
    %287 = vector.broadcast %286 : vector<8x1xf32> to vector<8x128xf32>
    %288 = arith.subf %278, %287 : vector<8x128xf32>
    %289 = arith.mulf %288, %288 : vector<8x128xf32>
    %cst_136 = arith.constant dense<0.000000e+00> : vector<8xf32>
    %290 = vector.multi_reduction <add>, %289, %cst_136 [1] : vector<8x128xf32> to vector<8xf32>
    %291 = vector.shape_cast %290 : vector<8xf32> to vector<8x1xf32>
    %cst_137 = arith.constant 7.812500e-03 : f32
    %292 = vector.broadcast %cst_137 : f32 to vector<8x1xf32>
    %293 = arith.mulf %291, %292 : vector<8x1xf32>
    %cst_138 = arith.constant 9.99999974E-6 : f32
    %294 = vector.broadcast %cst_138 : f32 to vector<8x1xf32>
    %295 = arith.addf %293, %294 : vector<8x1xf32>
    %296 = math.rsqrt %295 : vector<8x1xf32>
    %297 = vector.broadcast %296 : vector<8x1xf32> to vector<8x128xf32>
    %298 = arith.mulf %288, %297 : vector<8x128xf32>
    %299 = vector.broadcast %280 : vector<1x128xf32> to vector<8x128xf32>
    %300 = arith.mulf %298, %299 : vector<8x128xf32>
    %301 = vector.broadcast %282 : vector<1x128xf32> to vector<8x128xf32>
    %302 = arith.addf %300, %301 : vector<8x128xf32>
    %303 = arith.truncf %302 : vector<8x128xf32> to vector<8x128xbf16>
    %c2 = arith.constant 2 : index
    %c0_139 = arith.constant 0 : index
    %c0_140 = arith.constant 0 : index
    %304 = vector.load %arg1[%c2, %c0_139, %c0_140] : memref<3x128x384xbf16, #tpu.memory_space<vmem>>, vector<1x128x384xbf16>
    %305 = vector.shape_cast %304 : vector<1x128x384xbf16> to vector<128x384xbf16>
    %cst_141 = arith.constant dense<0.000000e+00> : vector<8x384xf32>
    %306 = tpu.matmul %303, %305, %cst_141 {dimension_numbers = #tpu.dot_dimension_numbers<[1], [0], [0], [1], [0, 0, 1, 1], [], []>} : vector<8x128xbf16>, vector<128x384xbf16>, vector<8x384xf32> -> vector<8x384xf32>
    %c2_142 = arith.constant 2 : index
    %c0_143 = arith.constant 0 : index
    %c0_144 = arith.constant 0 : index
    %307 = vector.load %arg2[%c2_142, %c0_143, %c0_144] : memref<3x1x384xf32, #tpu.memory_space<vmem>>, vector<1x1x384xf32>
    %308 = vector.shape_cast %307 : vector<1x1x384xf32> to vector<1x384xf32>
    %309 = vector.broadcast %308 : vector<1x384xf32> to vector<8x384xf32>
    %310 = arith.addf %306, %309 : vector<8x384xf32>
    %311 = arith.truncf %310 : vector<8x384xf32> to vector<8x384xbf16>
    %312 = vector.extract_strided_slice %311 {offsets = [0, 0], sizes = [8, 128], strides = [1, 1]} : vector<8x384xbf16> to vector<8x128xbf16>
    %313 = vector.extract_strided_slice %311 {offsets = [0, 128], sizes = [8, 128], strides = [1, 1]} : vector<8x384xbf16> to vector<8x128xbf16>
    %314 = vector.extract_strided_slice %311 {offsets = [0, 256], sizes = [8, 128], strides = [1, 1]} : vector<8x384xbf16> to vector<8x128xbf16>
    %315 = vector.extract_strided_slice %312 {offsets = [0, 0], sizes = [8, 16], strides = [1, 1]} : vector<8x128xbf16> to vector<8x16xbf16>
    %316 = vector.extract_strided_slice %313 {offsets = [0, 0], sizes = [8, 16], strides = [1, 1]} : vector<8x128xbf16> to vector<8x16xbf16>
    "tpu.trace_start"() <{level = 10 : i32, message = "qd,kd->qk"}> : () -> ()
    %cst_145 = arith.constant dense<0.000000e+00> : vector<8x8xf32>
    %317 = tpu.matmul %315, %316, %cst_145 {dimension_numbers = #tpu.dot_dimension_numbers<[1], [1], [0], [0], [0, 0, 1, 0], [], []>} : vector<8x16xbf16>, vector<8x16xbf16>, vector<8x8xf32> -> vector<8x8xf32>
    "tpu.trace_stop"() : () -> ()
    %318 = vector.extract_strided_slice %312 {offsets = [0, 16], sizes = [8, 16], strides = [1, 1]} : vector<8x128xbf16> to vector<8x16xbf16>
    %319 = vector.extract_strided_slice %313 {offsets = [0, 16], sizes = [8, 16], strides = [1, 1]} : vector<8x128xbf16> to vector<8x16xbf16>
    "tpu.trace_start"() <{level = 10 : i32, message = "qd,kd->qk"}> : () -> ()
    %cst_146 = arith.constant dense<0.000000e+00> : vector<8x8xf32>
    %320 = tpu.matmul %318, %319, %cst_146 {dimension_numbers = #tpu.dot_dimension_numbers<[1], [1], [0], [0], [0, 0, 1, 0], [], []>} : vector<8x16xbf16>, vector<8x16xbf16>, vector<8x8xf32> -> vector<8x8xf32>
    "tpu.trace_stop"() : () -> ()
    %321 = vector.extract_strided_slice %312 {offsets = [0, 32], sizes = [8, 16], strides = [1, 1]} : vector<8x128xbf16> to vector<8x16xbf16>
    %322 = vector.extract_strided_slice %313 {offsets = [0, 32], sizes = [8, 16], strides = [1, 1]} : vector<8x128xbf16> to vector<8x16xbf16>
    "tpu.trace_start"() <{level = 10 : i32, message = "qd,kd->qk"}> : () -> ()
    %cst_147 = arith.constant dense<0.000000e+00> : vector<8x8xf32>
    %323 = tpu.matmul %321, %322, %cst_147 {dimension_numbers = #tpu.dot_dimension_numbers<[1], [1], [0], [0], [0, 0, 1, 0], [], []>} : vector<8x16xbf16>, vector<8x16xbf16>, vector<8x8xf32> -> vector<8x8xf32>
    "tpu.trace_stop"() : () -> ()
    %324 = vector.extract_strided_slice %312 {offsets = [0, 48], sizes = [8, 16], strides = [1, 1]} : vector<8x128xbf16> to vector<8x16xbf16>
    %325 = vector.extract_strided_slice %313 {offsets = [0, 48], sizes = [8, 16], strides = [1, 1]} : vector<8x128xbf16> to vector<8x16xbf16>
    "tpu.trace_start"() <{level = 10 : i32, message = "qd,kd->qk"}> : () -> ()
    %cst_148 = arith.constant dense<0.000000e+00> : vector<8x8xf32>
    %326 = tpu.matmul %324, %325, %cst_148 {dimension_numbers = #tpu.dot_dimension_numbers<[1], [1], [0], [0], [0, 0, 1, 0], [], []>} : vector<8x16xbf16>, vector<8x16xbf16>, vector<8x8xf32> -> vector<8x8xf32>
    "tpu.trace_stop"() : () -> ()
    %327 = vector.extract_strided_slice %312 {offsets = [0, 64], sizes = [8, 16], strides = [1, 1]} : vector<8x128xbf16> to vector<8x16xbf16>
    %328 = vector.extract_strided_slice %313 {offsets = [0, 64], sizes = [8, 16], strides = [1, 1]} : vector<8x128xbf16> to vector<8x16xbf16>
    "tpu.trace_start"() <{level = 10 : i32, message = "qd,kd->qk"}> : () -> ()
    %cst_149 = arith.constant dense<0.000000e+00> : vector<8x8xf32>
    %329 = tpu.matmul %327, %328, %cst_149 {dimension_numbers = #tpu.dot_dimension_numbers<[1], [1], [0], [0], [0, 0, 1, 0], [], []>} : vector<8x16xbf16>, vector<8x16xbf16>, vector<8x8xf32> -> vector<8x8xf32>
    "tpu.trace_stop"() : () -> ()
    %330 = vector.extract_strided_slice %312 {offsets = [0, 80], sizes = [8, 16], strides = [1, 1]} : vector<8x128xbf16> to vector<8x16xbf16>
    %331 = vector.extract_strided_slice %313 {offsets = [0, 80], sizes = [8, 16], strides = [1, 1]} : vector<8x128xbf16> to vector<8x16xbf16>
    "tpu.trace_start"() <{level = 10 : i32, message = "qd,kd->qk"}> : () -> ()
    %cst_150 = arith.constant dense<0.000000e+00> : vector<8x8xf32>
    %332 = tpu.matmul %330, %331, %cst_150 {dimension_numbers = #tpu.dot_dimension_numbers<[1], [1], [0], [0], [0, 0, 1, 0], [], []>} : vector<8x16xbf16>, vector<8x16xbf16>, vector<8x8xf32> -> vector<8x8xf32>
    "tpu.trace_stop"() : () -> ()
    %333 = vector.extract_strided_slice %312 {offsets = [0, 96], sizes = [8, 16], strides = [1, 1]} : vector<8x128xbf16> to vector<8x16xbf16>
    %334 = vector.extract_strided_slice %313 {offsets = [0, 96], sizes = [8, 16], strides = [1, 1]} : vector<8x128xbf16> to vector<8x16xbf16>
    "tpu.trace_start"() <{level = 10 : i32, message = "qd,kd->qk"}> : () -> ()
    %cst_151 = arith.constant dense<0.000000e+00> : vector<8x8xf32>
    %335 = tpu.matmul %333, %334, %cst_151 {dimension_numbers = #tpu.dot_dimension_numbers<[1], [1], [0], [0], [0, 0, 1, 0], [], []>} : vector<8x16xbf16>, vector<8x16xbf16>, vector<8x8xf32> -> vector<8x8xf32>
    "tpu.trace_stop"() : () -> ()
    %336 = vector.extract_strided_slice %312 {offsets = [0, 112], sizes = [8, 16], strides = [1, 1]} : vector<8x128xbf16> to vector<8x16xbf16>
    %337 = vector.extract_strided_slice %313 {offsets = [0, 112], sizes = [8, 16], strides = [1, 1]} : vector<8x128xbf16> to vector<8x16xbf16>
    "tpu.trace_start"() <{level = 10 : i32, message = "qd,kd->qk"}> : () -> ()
    %cst_152 = arith.constant dense<0.000000e+00> : vector<8x8xf32>
    %338 = tpu.matmul %336, %337, %cst_152 {dimension_numbers = #tpu.dot_dimension_numbers<[1], [1], [0], [0], [0, 0, 1, 0], [], []>} : vector<8x16xbf16>, vector<8x16xbf16>, vector<8x8xf32> -> vector<8x8xf32>
    "tpu.trace_stop"() : () -> ()
    %339 = tpu.concatenate %317, %320, %323, %326, %329, %332, %335, %338 in 0 : vector<8x8xf32>, vector<8x8xf32>, vector<8x8xf32>, vector<8x8xf32>, vector<8x8xf32>, vector<8x8xf32>, vector<8x8xf32>, vector<8x8xf32> -> vector<64x8xf32>
    %cst_153 = arith.constant 2.500000e-01 : f32
    %340 = vector.broadcast %cst_153 : f32 to vector<64x8xf32>
    %341 = arith.mulf %339, %340 : vector<64x8xf32>
    %cst_154 = arith.constant dense<0xFF800000> : vector<64xf32>
    %342 = vector.multi_reduction <maximumf>, %341, %cst_154 [1] : vector<64x8xf32> to vector<64xf32>
    %343 = vector.shape_cast %342 : vector<64xf32> to vector<64x1xf32>
    %344 = vector.broadcast %343 : vector<64x1xf32> to vector<64x8xf32>
    %345 = arith.subf %341, %344 : vector<64x8xf32>
    %346 = math.exp %345 : vector<64x8xf32>
    %cst_155 = arith.constant dense<0.000000e+00> : vector<64xf32>
    %347 = vector.multi_reduction <add>, %346, %cst_155 [1] : vector<64x8xf32> to vector<64xf32>
    %348 = vector.shape_cast %347 : vector<64xf32> to vector<64x1xf32>
    %349 = tpu.reciprocal %348 : vector<64x1xf32> -> vector<64x1xf32>
    %350 = vector.broadcast %349 : vector<64x1xf32> to vector<64x8xf32>
    %351 = arith.mulf %346, %350 : vector<64x8xf32>
    %352 = arith.truncf %351 : vector<64x8xf32> to vector<64x8xbf16>
    %353 = vector.extract_strided_slice %352 {offsets = [0, 0], sizes = [8, 8], strides = [1, 1]} : vector<64x8xbf16> to vector<8x8xbf16>
    %354 = vector.extract_strided_slice %314 {offsets = [0, 0], sizes = [8, 16], strides = [1, 1]} : vector<8x128xbf16> to vector<8x16xbf16>
    %cst_156 = arith.constant dense<0.000000e+00> : vector<8x16xf32>
    %355 = tpu.matmul %353, %354, %cst_156 {dimension_numbers = #tpu.dot_dimension_numbers<[1], [0], [0], [1], [0, 0, 1, 1], [], []>} : vector<8x8xbf16>, vector<8x16xbf16>, vector<8x16xf32> -> vector<8x16xf32>
    %356 = vector.extract_strided_slice %352 {offsets = [8, 0], sizes = [8, 8], strides = [1, 1]} : vector<64x8xbf16> to vector<8x8xbf16>
    %357 = vector.extract_strided_slice %314 {offsets = [0, 16], sizes = [8, 16], strides = [1, 1]} : vector<8x128xbf16> to vector<8x16xbf16>
    %cst_157 = arith.constant dense<0.000000e+00> : vector<8x16xf32>
    %358 = tpu.matmul %356, %357, %cst_157 {dimension_numbers = #tpu.dot_dimension_numbers<[1], [0], [0], [1], [0, 0, 1, 1], [], []>} : vector<8x8xbf16>, vector<8x16xbf16>, vector<8x16xf32> -> vector<8x16xf32>
    %359 = vector.extract_strided_slice %352 {offsets = [16, 0], sizes = [8, 8], strides = [1, 1]} : vector<64x8xbf16> to vector<8x8xbf16>
    %360 = vector.extract_strided_slice %314 {offsets = [0, 32], sizes = [8, 16], strides = [1, 1]} : vector<8x128xbf16> to vector<8x16xbf16>
    %cst_158 = arith.constant dense<0.000000e+00> : vector<8x16xf32>
    %361 = tpu.matmul %359, %360, %cst_158 {dimension_numbers = #tpu.dot_dimension_numbers<[1], [0], [0], [1], [0, 0, 1, 1], [], []>} : vector<8x8xbf16>, vector<8x16xbf16>, vector<8x16xf32> -> vector<8x16xf32>
    %362 = vector.extract_strided_slice %352 {offsets = [24, 0], sizes = [8, 8], strides = [1, 1]} : vector<64x8xbf16> to vector<8x8xbf16>
    %363 = vector.extract_strided_slice %314 {offsets = [0, 48], sizes = [8, 16], strides = [1, 1]} : vector<8x128xbf16> to vector<8x16xbf16>
    %cst_159 = arith.constant dense<0.000000e+00> : vector<8x16xf32>
    %364 = tpu.matmul %362, %363, %cst_159 {dimension_numbers = #tpu.dot_dimension_numbers<[1], [0], [0], [1], [0, 0, 1, 1], [], []>} : vector<8x8xbf16>, vector<8x16xbf16>, vector<8x16xf32> -> vector<8x16xf32>
    %365 = vector.extract_strided_slice %352 {offsets = [32, 0], sizes = [8, 8], strides = [1, 1]} : vector<64x8xbf16> to vector<8x8xbf16>
    %366 = vector.extract_strided_slice %314 {offsets = [0, 64], sizes = [8, 16], strides = [1, 1]} : vector<8x128xbf16> to vector<8x16xbf16>
    %cst_160 = arith.constant dense<0.000000e+00> : vector<8x16xf32>
    %367 = tpu.matmul %365, %366, %cst_160 {dimension_numbers = #tpu.dot_dimension_numbers<[1], [0], [0], [1], [0, 0, 1, 1], [], []>} : vector<8x8xbf16>, vector<8x16xbf16>, vector<8x16xf32> -> vector<8x16xf32>
    %368 = vector.extract_strided_slice %352 {offsets = [40, 0], sizes = [8, 8], strides = [1, 1]} : vector<64x8xbf16> to vector<8x8xbf16>
    %369 = vector.extract_strided_slice %314 {offsets = [0, 80], sizes = [8, 16], strides = [1, 1]} : vector<8x128xbf16> to vector<8x16xbf16>
    %cst_161 = arith.constant dense<0.000000e+00> : vector<8x16xf32>
    %370 = tpu.matmul %368, %369, %cst_161 {dimension_numbers = #tpu.dot_dimension_numbers<[1], [0], [0], [1], [0, 0, 1, 1], [], []>} : vector<8x8xbf16>, vector<8x16xbf16>, vector<8x16xf32> -> vector<8x16xf32>
    %371 = vector.extract_strided_slice %352 {offsets = [48, 0], sizes = [8, 8], strides = [1, 1]} : vector<64x8xbf16> to vector<8x8xbf16>
    %372 = vector.extract_strided_slice %314 {offsets = [0, 96], sizes = [8, 16], strides = [1, 1]} : vector<8x128xbf16> to vector<8x16xbf16>
    %cst_162 = arith.constant dense<0.000000e+00> : vector<8x16xf32>
    %373 = tpu.matmul %371, %372, %cst_162 {dimension_numbers = #tpu.dot_dimension_numbers<[1], [0], [0], [1], [0, 0, 1, 1], [], []>} : vector<8x8xbf16>, vector<8x16xbf16>, vector<8x16xf32> -> vector<8x16xf32>
    %374 = vector.extract_strided_slice %352 {offsets = [56, 0], sizes = [8, 8], strides = [1, 1]} : vector<64x8xbf16> to vector<8x8xbf16>
    %375 = vector.extract_strided_slice %314 {offsets = [0, 112], sizes = [8, 16], strides = [1, 1]} : vector<8x128xbf16> to vector<8x16xbf16>
    %cst_163 = arith.constant dense<0.000000e+00> : vector<8x16xf32>
    %376 = tpu.matmul %374, %375, %cst_163 {dimension_numbers = #tpu.dot_dimension_numbers<[1], [0], [0], [1], [0, 0, 1, 1], [], []>} : vector<8x8xbf16>, vector<8x16xbf16>, vector<8x16xf32> -> vector<8x16xf32>
    %377 = tpu.concatenate %355, %358, %361, %364, %367, %370, %373, %376 in 1 : vector<8x16xf32>, vector<8x16xf32>, vector<8x16xf32>, vector<8x16xf32>, vector<8x16xf32>, vector<8x16xf32>, vector<8x16xf32>, vector<8x16xf32> -> vector<8x128xf32>
    %378 = arith.truncf %377 : vector<8x128xf32> to vector<8x128xbf16>
    %c2_164 = arith.constant 2 : index
    %c0_165 = arith.constant 0 : index
    %c0_166 = arith.constant 0 : index
    %379 = vector.load %arg3[%c2_164, %c0_165, %c0_166] : memref<3x128x128xbf16, #tpu.memory_space<vmem>>, vector<1x128x128xbf16>
    %380 = vector.shape_cast %379 : vector<1x128x128xbf16> to vector<128x128xbf16>
    %cst_167 = arith.constant dense<0.000000e+00> : vector<8x128xf32>
    %381 = tpu.matmul %378, %380, %cst_167 {dimension_numbers = #tpu.dot_dimension_numbers<[1], [0], [0], [1], [0, 0, 1, 1], [], []>} : vector<8x128xbf16>, vector<128x128xbf16>, vector<8x128xf32> -> vector<8x128xf32>
    %c2_168 = arith.constant 2 : index
    %c0_169 = arith.constant 0 : index
    %c0_170 = arith.constant 0 : index
    %382 = vector.load %arg4[%c2_168, %c0_169, %c0_170] : memref<3x1x128xf32, #tpu.memory_space<vmem>>, vector<1x1x128xf32>
    %383 = vector.shape_cast %382 : vector<1x1x128xf32> to vector<1x128xf32>
    %384 = vector.broadcast %383 : vector<1x128xf32> to vector<8x128xf32>
    %385 = arith.addf %381, %384 : vector<8x128xf32>
    %386 = arith.addf %302, %385 : vector<8x128xf32>
    %c2_171 = arith.constant 2 : index
    %c0_172 = arith.constant 0 : index
    %c0_173 = arith.constant 0 : index
    %387 = vector.load %arg5[%c2_171, %c0_172, %c0_173] : memref<3x1x128xf32, #tpu.memory_space<vmem>>, vector<1x1x128xf32>
    %388 = vector.shape_cast %387 : vector<1x1x128xf32> to vector<1x128xf32>
    %c2_174 = arith.constant 2 : index
    %c0_175 = arith.constant 0 : index
    %c0_176 = arith.constant 0 : index
    %389 = vector.load %arg6[%c2_174, %c0_175, %c0_176] : memref<3x1x128xf32, #tpu.memory_space<vmem>>, vector<1x1x128xf32>
    %390 = vector.shape_cast %389 : vector<1x1x128xf32> to vector<1x128xf32>
    %cst_177 = arith.constant dense<0.000000e+00> : vector<8xf32>
    %391 = vector.multi_reduction <add>, %386, %cst_177 [1] : vector<8x128xf32> to vector<8xf32>
    %392 = vector.shape_cast %391 : vector<8xf32> to vector<8x1xf32>
    %cst_178 = arith.constant 7.812500e-03 : f32
    %393 = vector.broadcast %cst_178 : f32 to vector<8x1xf32>
    %394 = arith.mulf %392, %393 : vector<8x1xf32>
    %395 = vector.broadcast %394 : vector<8x1xf32> to vector<8x128xf32>
    %396 = arith.subf %386, %395 : vector<8x128xf32>
    %397 = arith.mulf %396, %396 : vector<8x128xf32>
    %cst_179 = arith.constant dense<0.000000e+00> : vector<8xf32>
    %398 = vector.multi_reduction <add>, %397, %cst_179 [1] : vector<8x128xf32> to vector<8xf32>
    %399 = vector.shape_cast %398 : vector<8xf32> to vector<8x1xf32>
    %cst_180 = arith.constant 7.812500e-03 : f32
    %400 = vector.broadcast %cst_180 : f32 to vector<8x1xf32>
    %401 = arith.mulf %399, %400 : vector<8x1xf32>
    %cst_181 = arith.constant 9.99999974E-6 : f32
    %402 = vector.broadcast %cst_181 : f32 to vector<8x1xf32>
    %403 = arith.addf %401, %402 : vector<8x1xf32>
    %404 = math.rsqrt %403 : vector<8x1xf32>
    %405 = vector.broadcast %404 : vector<8x1xf32> to vector<8x128xf32>
    %406 = arith.mulf %396, %405 : vector<8x128xf32>
    %407 = vector.broadcast %388 : vector<1x128xf32> to vector<8x128xf32>
    %408 = arith.mulf %406, %407 : vector<8x128xf32>
    %409 = vector.broadcast %390 : vector<1x128xf32> to vector<8x128xf32>
    %410 = arith.addf %408, %409 : vector<8x128xf32>
    %411 = arith.truncf %410 : vector<8x128xf32> to vector<8x128xbf16>
    %c2_182 = arith.constant 2 : index
    %c0_183 = arith.constant 0 : index
    %c0_184 = arith.constant 0 : index
    %412 = vector.load %arg7[%c2_182, %c0_183, %c0_184] : memref<3x128x512xbf16, #tpu.memory_space<vmem>>, vector<1x128x512xbf16>
    %413 = vector.shape_cast %412 : vector<1x128x512xbf16> to vector<128x512xbf16>
    %cst_185 = arith.constant dense<0.000000e+00> : vector<8x512xf32>
    %414 = tpu.matmul %411, %413, %cst_185 {dimension_numbers = #tpu.dot_dimension_numbers<[1], [0], [0], [1], [0, 0, 1, 1], [], []>} : vector<8x128xbf16>, vector<128x512xbf16>, vector<8x512xf32> -> vector<8x512xf32>
    %c2_186 = arith.constant 2 : index
    %c0_187 = arith.constant 0 : index
    %c0_188 = arith.constant 0 : index
    %415 = vector.load %arg8[%c2_186, %c0_187, %c0_188] : memref<3x1x512xf32, #tpu.memory_space<vmem>>, vector<1x1x512xf32>
    %416 = vector.shape_cast %415 : vector<1x1x512xf32> to vector<1x512xf32>
    %417 = vector.broadcast %416 : vector<1x512xf32> to vector<8x512xf32>
    %418 = arith.addf %414, %417 : vector<8x512xf32>
    %cst_189 = arith.constant 0.000000e+00 : f32
    %419 = vector.broadcast %cst_189 : f32 to vector<8x512xf32>
    %420 = arith.maximumf %418, %419 : vector<8x512xf32>
    %421 = arith.truncf %420 : vector<8x512xf32> to vector<8x512xbf16>
    %c2_190 = arith.constant 2 : index
    %c0_191 = arith.constant 0 : index
    %c0_192 = arith.constant 0 : index
    %422 = vector.load %arg9[%c2_190, %c0_191, %c0_192] : memref<3x512x128xbf16, #tpu.memory_space<vmem>>, vector<1x512x128xbf16>
    %423 = vector.shape_cast %422 : vector<1x512x128xbf16> to vector<512x128xbf16>
    %cst_193 = arith.constant dense<0.000000e+00> : vector<8x128xf32>
    %424 = tpu.matmul %421, %423, %cst_193 {dimension_numbers = #tpu.dot_dimension_numbers<[1], [0], [0], [1], [0, 0, 1, 1], [], []>} : vector<8x512xbf16>, vector<512x128xbf16>, vector<8x128xf32> -> vector<8x128xf32>
    %c2_194 = arith.constant 2 : index
    %c0_195 = arith.constant 0 : index
    %c0_196 = arith.constant 0 : index
    %425 = vector.load %arg10[%c2_194, %c0_195, %c0_196] : memref<3x1x128xf32, #tpu.memory_space<vmem>>, vector<1x1x128xf32>
    %426 = vector.shape_cast %425 : vector<1x1x128xf32> to vector<1x128xf32>
    %427 = vector.broadcast %426 : vector<1x128xf32> to vector<8x128xf32>
    %428 = arith.addf %424, %427 : vector<8x128xf32>
    %429 = arith.addf %410, %428 : vector<8x128xf32>
    %c2_197 = arith.constant 2 : index
    %c0_198 = arith.constant 0 : index
    %c0_199 = arith.constant 0 : index
    %430 = vector.load %arg11[%c2_197, %c0_198, %c0_199] : memref<3x1x128xf32, #tpu.memory_space<vmem>>, vector<1x1x128xf32>
    %431 = vector.shape_cast %430 : vector<1x1x128xf32> to vector<1x128xf32>
    %c2_200 = arith.constant 2 : index
    %c0_201 = arith.constant 0 : index
    %c0_202 = arith.constant 0 : index
    %432 = vector.load %arg12[%c2_200, %c0_201, %c0_202] : memref<3x1x128xf32, #tpu.memory_space<vmem>>, vector<1x1x128xf32>
    %433 = vector.shape_cast %432 : vector<1x1x128xf32> to vector<1x128xf32>
    %cst_203 = arith.constant dense<0.000000e+00> : vector<8xf32>
    %434 = vector.multi_reduction <add>, %429, %cst_203 [1] : vector<8x128xf32> to vector<8xf32>
    %435 = vector.shape_cast %434 : vector<8xf32> to vector<8x1xf32>
    %cst_204 = arith.constant 7.812500e-03 : f32
    %436 = vector.broadcast %cst_204 : f32 to vector<8x1xf32>
    %437 = arith.mulf %435, %436 : vector<8x1xf32>
    %438 = vector.broadcast %437 : vector<8x1xf32> to vector<8x128xf32>
    %439 = arith.subf %429, %438 : vector<8x128xf32>
    %440 = arith.mulf %439, %439 : vector<8x128xf32>
    %cst_205 = arith.constant dense<0.000000e+00> : vector<8xf32>
    %441 = vector.multi_reduction <add>, %440, %cst_205 [1] : vector<8x128xf32> to vector<8xf32>
    %442 = vector.shape_cast %441 : vector<8xf32> to vector<8x1xf32>
    %cst_206 = arith.constant 7.812500e-03 : f32
    %443 = vector.broadcast %cst_206 : f32 to vector<8x1xf32>
    %444 = arith.mulf %442, %443 : vector<8x1xf32>
    %cst_207 = arith.constant 9.99999974E-6 : f32
    %445 = vector.broadcast %cst_207 : f32 to vector<8x1xf32>
    %446 = arith.addf %444, %445 : vector<8x1xf32>
    %447 = math.rsqrt %446 : vector<8x1xf32>
    %448 = vector.broadcast %447 : vector<8x1xf32> to vector<8x128xf32>
    %449 = arith.mulf %439, %448 : vector<8x128xf32>
    %450 = vector.broadcast %431 : vector<1x128xf32> to vector<8x128xf32>
    %451 = arith.mulf %449, %450 : vector<8x128xf32>
    %452 = vector.broadcast %433 : vector<1x128xf32> to vector<8x128xf32>
    %453 = arith.addf %451, %452 : vector<8x128xf32>
    %454 = arith.truncf %453 : vector<8x128xf32> to vector<8x128xbf16>
    %c0_208 = arith.constant 0 : index
    %c0_209 = arith.constant 0 : index
    %455 = vector.load %arg13[%c0_208, %c0_209] : memref<128x128xbf16, #tpu.memory_space<vmem>>, vector<128x128xbf16>
    %cst_210 = arith.constant dense<0.000000e+00> : vector<8x128xf32>
    %456 = tpu.matmul %454, %455, %cst_210 {dimension_numbers = #tpu.dot_dimension_numbers<[1], [0], [0], [1], [0, 0, 1, 1], [], []>} : vector<8x128xbf16>, vector<128x128xbf16>, vector<8x128xf32> -> vector<8x128xf32>
    %c0_211 = arith.constant 0 : index
    %c0_212 = arith.constant 0 : index
    %457 = vector.load %arg14[%c0_211, %c0_212] : memref<1x128xf32, #tpu.memory_space<vmem>>, vector<1x128xf32>
    %458 = vector.broadcast %457 : vector<1x128xf32> to vector<8x128xf32>
    %459 = arith.addf %456, %458 : vector<8x128xf32>
    %c0_213 = arith.constant 0 : index
    %c0_214 = arith.constant 0 : index
    %460 = vector.load %arg15[%c0_213, %c0_214] : memref<8x128xf32, #tpu.memory_space<vmem>>, vector<8x128xf32>
    tpu.vector_store %arg15[%c0_213, %c0_214], %459 {strides = array<i32>} : memref<8x128xf32, #tpu.memory_space<vmem>>, vector<8x128xf32>,
    return
  }
}

</mosaic_0001>

<bundles_post_ra>
// kernel: transformer_forward.1
= control target key start
LH: loop header
LB: loop body
LE: loop exit
PB: predicated region body
PF: predicated region fallthrough
CT: control target
= control target key end

     0   :  { %20 = vsyncpa [#allocation3], 0  ;;  %s8821_s0 = inlined_call_operand.vmem [shape: f32[8,128], index: 0, kind: input, shape index: {}]   ;;  %s8822_s1 = inlined_call_operand.hbm [shape: bf16[3,128,384], index: 1, kind: input, shape index: {}]   ;;  %s8823_s2 = inlined_call_operand.vmem [shape: f32[3,1,384], index: 2, kind: input, shape index: {}]   ;;  %s8824_s3 = inlined_call_operand.hbm [shape: bf16[3,128,128], index: 3, kind: input, shape index: {}]   ;;  %s8825_s4 = inlined_call_operand.vmem [shape: f32[3,1,128], index: 4, kind: input, shape index: {}]   ;;  %s8826_s5 = inlined_call_operand.vmem [shape: f32[3,1,128], index: 5, kind: input, shape index: {}]   ;;  %s8827_s6 = inlined_call_operand.vmem [shape: f32[3,1,128], index: 6, kind: input, shape index: {}]   ;;  %s8828_s7 = inlined_call_operand.hbm [shape: bf16[3,128,512], index: 7, kind: input, shape index: {}]   ;;  %s8829_s8 = inlined_call_operand.vmem [shape: f32[3,1,512], index: 8, kind: input, shape index: {}]   ;;  %s8830_s9 = inlined_call_operand.hbm [shape: bf16[3,512,128], index: 9, kind: input, shape index: {}]   ;;  %s8831_s10 = inlined_call_operand.vmem [shape: f32[3,1,128], index: 10, kind: input, shape index: {}]   ;;  %s8832_s11 = inlined_call_operand.vmem [shape: f32[3,1,128], index: 11, kind: input, shape index: {}]   ;;  %s8833_s12 = inlined_call_operand.vmem [shape: f32[3,1,128], index: 12, kind: input, shape index: {}]   ;;  %s8834_s13 = inlined_call_operand.vmem [shape: bf16[128,128], index: 13, kind: input, shape index: {}]   ;;  %s8835_s14 = inlined_call_operand.vmem [shape: f32[1,128], index: 14, kind: input, shape index: {}]   ;;  %s8836_s15 = inlined_call_operand.vmem [shape: f32[8,128], index: 15, kind: output, shape index: {}]  }
   0x1   :  { %21 = vsyncpa [#allocation5], 0 }
   0x2   :  { %22 = vsyncpa [#allocation8], 0  ;;  %s7945_s18 = smov [#allocation4]  }
   0x3   :  { %s44_s19 = sshll.u32 %s7945_s18, 4  ;;  %s45_s19 = int_to_ptr.vmem [resolvable:$true] %s44_s19 }
   0x4   :  { %s7867_s20 = scalar_lea.vmem %s45_s19, 3072  ;;  %p7872_p1 = scmp.lt.s32.totalorder %s45_s19, %s45_s19 }
   0x5   :  { %p7868_p0 = scmp.ne.s32.totalorder %s45_s19, %s7867_s20  ;;  %p7873_p2 = scmp.lt.s32.totalorder %s7867_s20, %s7867_s20 }
   0x7   :  { %p7874_p3 = por %p7873_p2, %p7872_p1 }
   0x9   :  { %p7875_p4 = pnand %p7874_p3, %p7868_p0 }
   0xb   :  { %7878 = shalt.err (!%p7875_p4)
}
   0xc   :  { %s7946_s21 = smov 64   ;;  %s7947_s22 = smov 4  }
   0xd   :  { %50 = dma.hbm_to_vmem [thread:$0]  %s8824_s3, 3072, %s45_s19, [#allocation5], %s7946_s21, %s7946_s21, %s7947_s22  }
   0xe   :  { %s7948_s25 = smov [#allocation2]  }
   0xf   :  { %s30_s26 = sshll.u32 %s7948_s25, 4  ;;  %s31_s26 = int_to_ptr.vmem [resolvable:$true] %s30_s26 }
  0x10   :  { %s7887_s27 = scalar_lea.vmem %s31_s26, 9216  ;;  %p7892_p6 = scmp.lt.s32.totalorder %s31_s26, %s31_s26 }
  0x11   :  { %p7888_p5 = scmp.ne.s32.totalorder %s31_s26, %s7887_s27  ;;  %p7893_p7 = scmp.lt.s32.totalorder %s7887_s27, %s7887_s27 }
  0x13   :  { %p7894_p8 = por %p7893_p7, %p7892_p6 }
  0x15   :  { %p7895_p9 = pnand %p7894_p8, %p7888_p5 }
  0x17   :  { %7898 = shalt.err (!%p7895_p9)
}
  0x18   :  { %s7949_s28 = smov 192   ;;  %s7950_s29 = smov 12  }
  0x19   :  { %36 = dma.hbm_to_vmem [thread:$0]  %s8822_s1, 9216, %s31_s26, [#allocation3], %s7949_s28, %s7949_s28, %s7950_s29  }
  0x1a   :  { %s7951_s17 = smov [#allocation6]  }
  0x1b   :  { %s62_s18 = sshll.u32 %s7951_s17, 4  ;;  %s63_s18 = int_to_ptr.vmem [resolvable:$true] %s62_s18 }
  0x1c   :  { %s7907_s3 = scalar_lea.vmem %s63_s18, 12288  ;;  %p7912_p11 = scmp.lt.s32.totalorder %s63_s18, %s63_s18 }
  0x1d   :  { %p7908_p10 = scmp.ne.s32.totalorder %s63_s18, %s7907_s3  ;;  %p7913_p12 = scmp.lt.s32.totalorder %s7907_s3, %s7907_s3 }
  0x1f   :  { %p7914_p13 = por %p7913_p12, %p7912_p11 }
  0x21   :  { %p7915_p0 = pnand %p7914_p13, %p7908_p10 }
  0x23   :  { %7918 = shalt.err (!%p7915_p0)
}
  0x24   :  { %s7952_s19 = smov 256   ;;  %s7953_s20 = smov 16  }
  0x25   :  { %68 = dma.hbm_to_vmem [thread:$0]  %s8828_s7, 12288, %s63_s18, [#allocation5], %s7952_s19, %s7952_s19, %s7953_s20  }
  0x26   :  { %s7954_s25 = smov [#allocation7]  }
  0x27   :  { %s76_s27 = sshll.u32 %s7954_s25, 4  ;;  %s77_s27 = int_to_ptr.vmem [resolvable:$true] %s76_s27 }
  0x28   :  { %s7927_s1 = scalar_lea.vmem %s77_s27, 12288  ;;  %p7932_p2 = scmp.lt.s32.totalorder %s77_s27, %s77_s27 }
  0x29   :  { %p7928_p1 = scmp.ne.s32.totalorder %s77_s27, %s7927_s1  ;;  %p7933_p3 = scmp.lt.s32.totalorder %s7927_s1, %s7927_s1 }
  0x2b   :  { %p7934_p4 = por %p7933_p3, %p7932_p2 }
  0x2d   :  { %p7935_p5 = pnand %p7934_p4, %p7928_p1 }
  0x2f   :  { %7938 = shalt.err (!%p7935_p5)
}
  0x30   :  { %82 = dma.hbm_to_vmem [thread:$0]  %s8830_s9, 12288, %s77_s27, [#allocation8], %s7946_s21, %s7946_s21, %s7947_s22  }
  0x31   :  { %7939 = dma.done.wait [#allocation3], 9216  }
  0x32   :  { %7940 = vsyncadd [#allocation3], 4294958080 }
  0x33   :  { %7941 = dma.done.wait [#allocation5], 15360  }
  0x34   :  { %7942 = vsyncadd [#allocation5], 4294951936 }
  0x35   :  { %7943 = dma.done.wait [#allocation8], 12288  }
  0x36   :  { %7944 = vsyncadd [#allocation8], 4294955008  ;;  %v7955_v0 = vmov 0   ;;  %v7382_v1 = vld [vmem:[#allocation2 + $0xac] ss:$12 sps:$4 sm:$0xff]   ;;  %v106_v17 = vld [vmem:[%s8821_s0] sm:$0xff]  ;;  %v142_v28 = vlaneseq }
  0x37   :  { %317 = vmatprep.mubr.bf16.mxu0 %v7955_v0  ;;  %v7384_v2 = vld [vmem:[#allocation2 + $0xa8] ss:$12 sps:$4 sm:$0xff]   ;;  %285 = vmatprep.subr.bf16.mxu0 %v7382_v1  ;;  %v7387_v4 = vld [vmem:[#allocation2 + $0x90] ss:$12 sps:$4 sm:$0xff]   ;;  %v7390_v6 = vld [vmem:[#allocation2 + $0x78] ss:$12 sps:$4 sm:$0xff]   ;;  %v107_v18 = vpack.c.bf16 %v106_v17, %v106_v17 }
  0x38   :  { %v7385_v3 = vld [vmem:[#allocation2 + $0x94] ss:$12 sps:$4 sm:$0xff]   ;;  %286 = vmatpush1.bf16.msra.mxu0 %v7384_v2  ;;  %v7388_v5 = vld [vmem:[#allocation2 + $0x7c] ss:$12 sps:$4 sm:$0xff]   ;;  %v7391_v7 = vld [vmem:[#allocation2 + $0x64] ss:$12 sps:$4 sm:$0xff]  }
  0x39   :  { %287 = vmatprep.subr.bf16.mxu0 %v7385_v3  ;;  %v7393_v8 = vld [vmem:[#allocation2 + $0x60] ss:$12 sps:$4 sm:$0xff]   ;;  %v7396_v10 = vld [vmem:[#allocation2 + $0x48] ss:$12 sps:$4 sm:$0xff]   ;;  %v7399_v12 = vld [vmem:[#allocation2 + $0x30] ss:$12 sps:$4 sm:$0xff]  }
  0x3a   :  { %v7394_v9 = vld [vmem:[#allocation2 + $0x4c] ss:$12 sps:$4 sm:$0xff]   ;;  %v7397_v11 = vld [vmem:[#allocation2 + $0x34] ss:$12 sps:$4 sm:$0xff]   ;;  %v7400_v13 = vld [vmem:[#allocation2 + $0x1c] ss:$12 sps:$4 sm:$0xff]  }
  0x3b   :  { %v7402_v14 = vld [vmem:[#allocation2 + $0x18] ss:$12 sps:$4 sm:$0xff]   ;;  %v7405_v16 = vld [vmem:[#allocation2] ss:$12 sps:$4 sm:$0xff]   ;;  %v7956_v19 = vmov 0.0   ;;  %vm7957_vm0 = vmmov 0  }
  0x3c   :  { %288 = vmatpush1.bf16.msra.mxu0 %v7387_v4  ;;  %v7403_v15 = vld [vmem:[#allocation2 + $0x4] ss:$12 sps:$4 sm:$0xff]   ;;  %6936 = vmatprep.subr.bf16.mxu1 %v7956_v19  ;;  %v7408_v22 = vld [vmem:[#allocation2 + $0x80] ss:$12 sps:$4 sm:$0xff]   ;;  %v7409_v23 = vld [vmem:[#allocation2 + $0x68] ss:$12 sps:$4 sm:$0xff]  }
  0x3d   :  { %289 = vmatprep.subr.bf16.mxu0 %v7388_v5  ;;  %6952 = vmatprep.mubr.msk.bf16.mxu1 %vm7957_vm0, %v7956_v19  ;;  %v7406_v20 = vld [vmem:[#allocation2 + $0xb0] ss:$12 sps:$4 sm:$0xff]   ;;  %v7407_v21 = vld [vmem:[#allocation2 + $0x98] ss:$12 sps:$4 sm:$0xff]   ;;  %v7412_v26 = vld [vmem:[#allocation2 + $0x20] ss:$12 sps:$4 sm:$0xff]  }
  0x3e   :  { %6937 = vmatpush3.bf16.msra.mxu1 %v7406_v20  ;;  %v7410_v24 = vld [vmem:[#allocation2 + $0x50] ss:$12 sps:$4 sm:$0xff]   ;;  %v7411_v25 = vld [vmem:[#allocation2 + $0x38] ss:$12 sps:$4 sm:$0xff]   ;;  %v7413_v27 = vld [vmem:[#allocation2 + $0x8] ss:$12 sps:$4 sm:$0xff]  }
  0x3f   :  { %6938 = vmatprep.subr.bf16.mxu1 %v7956_v19  ;;  %v8082_v29 = vshrl.u32 %v142_v28, 7  ;;  %v140_v32 = vld [vmem:[%s8823_s2] sm:$0x7]  ;;  %vm369_vm1 = vcmask 130048   ;;  %s7958_s30 = smov 96   ;;  %s7959_s16 = smov 112  }
  0x40   :  { %290 = vmatpush1.bf16.msra.mxu0 %v7390_v6  ;;  %s7960_s17 = smov 80   ;;  %s7961_s18 = smov 48   ;;  %vm872_vm2 = vcmask 1043456   ;;  %vm776_vm3 = vcmask 64512   ;;  %vm1290_vm4 = vcmask 261120   ;;  %vm1292_vm5 = vcmask 392192  }
  0x41   :  { %291 = vmatprep.subr.bf16.mxu0 %v7391_v7  ;;  %v8085_v30 = vsub.s32 1, %v8082_v29  ;;  %v8088_v31 = vsub.s32 0, %v8082_v29  ;;  %s7962_s3 = smov 32   ;;  %v8115_v46 = vsub.s32 2, %v8082_v29  ;;  %vm1294_vm6 = vcmask 523264  }
  0x42   :  { %6939 = vmatpush3.bf16.msra.mxu1 %v7407_v21  ;;  %vm1296_vm7 = vcmask 654336   ;;  %vm1298_vm8 = vcmask 785408   ;;  %vm1300_vm9 = vcmask 916480  }
  0x43   :  { %6940 = vmatprep.subr.bf16.mxu1 %v7956_v19  ;;  %v149_v33 = vrot.slane %v140_v32, %v8085_v30  ;;  %v145_v35 = vrot.slane %v140_v32, %v8088_v31  ;;  %v153_v51 = vrot.slane %v140_v32, %v8115_v46 }
  0x44   :  { %292 = vmatpush1.bf16.msra.mxu0 %v7393_v8 }
  0x45   :  { %293 = vmatprep.subr.bf16.mxu0 %v7394_v9 }
  0x46   :  { %6941 = vmatpush3.bf16.msra.mxu1 %v7408_v22 }
  0x47   :  { %6942 = vmatprep.subr.bf16.mxu1 %v7956_v19 }
  0x48   :  { %294 = vmatpush1.bf16.msra.mxu0 %v7396_v10 }
  0x49   :  { %295 = vmatprep.subr.bf16.mxu0 %v7397_v11 }
  0x4a   :  { %6943 = vmatpush3.bf16.msra.mxu1 %v7409_v23 }
  0x4b   :  { %6944 = vmatprep.subr.bf16.mxu1 %v7956_v19 }
  0x4c   :  { %296 = vmatpush1.bf16.msra.mxu0 %v7399_v12 }
  0x4d   :  { %297 = vmatprep.subr.bf16.mxu0 %v7400_v13 }
  0x4e   :  { %6945 = vmatpush3.bf16.msra.mxu1 %v7410_v24 }
  0x4f   :  { %6946 = vmatprep.subr.bf16.mxu1 %v7956_v19 }
  0x50   :  { %298 = vmatpush1.bf16.msra.mxu0 %v7402_v14 }
  0x51   :  { %299 = vmatprep.subr.bf16.mxu0 %v7403_v15 }
  0x52   :  { %6947 = vmatpush3.bf16.msra.mxu1 %v7411_v25 }
  0x53   :  { %6948 = vmatprep.subr.bf16.mxu1 %v7956_v19 }
  0x54   :  { %300 = vmatpush1.bf16.msra.mxu0 %v7405_v16 }
  0x55   :  { %6956 = vmatprep.subr.bf16.mxu0 %v7956_v19 }
  0x56   :  { %6949 = vmatpush3.bf16.msra.mxu1 %v7412_v26 }
  0x57   :  { %318 = vmatmul.mubr.bf16.vlgmr.msra.gmra.mxu0 %v107_v18  ;;  %6950 = vmatprep.subr.bf16.mxu1 %v7956_v19 }
  0x58   :  { %6958 = vmatprep.mubr.msk.bf16.mxu0 %vm7957_vm0, %v7956_v19 }
  0x5a   :  { %6951 = vmatpush3.bf16.msra.mxu1 %v7413_v27 }
  0x5b   :  { %6962 = vmatprep.subr.bf16.mxu1 %v7956_v19 }
  0x5d   :  { %6953 = vmatmul.mubr.bf16.vlgmr.msra.gmra.mxu1 %v107_v18 }
  0x5e   :  { %6964 = vmatprep.mubr.msk.bf16.mxu1 %vm7957_vm0, %v7956_v19 }
 0x117   :  { %v319_v34 = vpop.f32.mrf.mxu0 }
 0x118   :  { %v320_v39 = vadd.f32 %v319_v34, %v145_v35 }
 0x119   :  { %v321_v36 = vpop.f32.mrf.mxu0 }
 0x11a   :  { %v322_v37 = vadd.f32 %v321_v36, %v149_v33  ;;  %v366_v43 = vpack.c.bf16 %v320_v39, %v320_v39 }
 0x11b   :  { %v323_v38 = vpop.f32.mrf.mxu0 }
 0x11c   :  { %v367_v40 = vpack.c.bf16 %v322_v37, %v322_v37 }
 0x11d   :  { %v324_v41 = vpop.f32.mrf.mxu0  ;;  %v360_v52 = vpop.f32.mrf.mxu1 }
 0x11e   :  { %470 = vrot.lane.b32.xlu1 %v367_v40, %s7958_s30  ;;  %420 = vrot.lane.b32.xlu0 %v367_v40, %s7959_s16  ;;  %v374_v42 = vsel %vm369_vm1, %v367_v40, 0  ;;  %v361_v55 = vadd.f32 %v360_v52, %v153_v51 }
 0x11f   :  { %6957 = vmatpush3.bf16.xpose.msra.mxu0 %v374_v42  ;;  %v6954_v57 = vpop.f32.mrf.mxu1 }
 0x120   :  { %6968 = vmatprep.subr.bf16.mxu0 %v7956_v19  ;;  %v8127_v58 = vpack.c.bf16 %v361_v55, %v361_v55 }
 0x121   :  { %v363_v59 = vpop.f32.mrf.mxu1 }
 0x122   :  { %520 = vrot.lane.b32.xlu1 %v367_v40, %s7960_s17  ;;  %417 = vrot.lane.b32.xlu0 %v366_v43, %s7959_s16  ;;  %v874_v8 = vsel %vm872_vm2, %v8127_v58, 0 }
 0x123   :  { %v6955_v63 = vpop.f32.mrf.mxu1 }
 0x126   :  { %518 = vrot.lane.b32.xlu1 %v366_v43, %s7960_s17  ;;  %468 = vrot.lane.b32.xlu0 %v366_v43, %s7958_s30 }
 0x127   :  { %6959 = vmatmul.mubr.msk.bf16.vlgmr.msra.gmra.mxu0 %vm369_vm1, %v366_v43 }
 0x128   :  { %6970 = vmatprep.mubr.msk.bf16.mxu0 %vm7957_vm0, %v7956_v19 }
 0x12a   :  { %620 = vrot.lane.b32.xlu1 %v367_v40, %s7961_s18  ;;  %570 = vrot.lane.b32.xlu0 %v367_v40, %s7946_s21 }
 0x12e   :  { %618 = vrot.lane.b32.xlu1 %v366_v43, %s7961_s18  ;;  %568 = vrot.lane.b32.xlu0 %v366_v43, %s7946_s21 }
 0x132   :  { %720 = vrot.lane.b32.xlu1 %v367_v40, %s7953_s20  ;;  %670 = vrot.lane.b32.xlu0 %v367_v40, %s7962_s3 }
 0x136   :  { %718 = vrot.lane.b32.xlu1 %v366_v43, %s7953_s20  ;;  %668 = vrot.lane.b32.xlu0 %v366_v43, %s7962_s3 }
 0x13a   :  { %919 = vrot.lane.b32.xlu1 %v8127_v58, %s7959_s16 }
 0x190   :  { %v471_v44 = vpop.permute.xlu1 %470  ;;  %v421_v45 = vpop.permute.xlu0 %420 }
 0x191   :  { %v476_v47 = vsel %vm369_vm1, %v471_v44, 0  ;;  %v426_v48 = vsel %vm369_vm1, %v421_v45, 0 }
 0x192   :  { %6963 = vmatpush3.bf16.xpose.msra.mxu1 %v426_v48  ;;  %6969 = vmatpush3.bf16.xpose.msra.mxu0 %v476_v47 }
 0x193   :  { %6974 = vmatprep.subr.bf16.mxu1 %v7956_v19  ;;  %6980 = vmatprep.subr.bf16.mxu0 %v7956_v19 }
 0x194   :  { %v521_v49 = vpop.permute.xlu1 %520  ;;  %v418_v50 = vpop.permute.xlu0 %417 }
 0x195   :  { %v526_v56 = vsel %vm369_vm1, %v521_v49, 0 }
 0x198   :  { %v519_v53 = vpop.permute.xlu1 %518  ;;  %v469_v54 = vpop.permute.xlu0 %468 }
 0x199   :  { %6965 = vmatmul.mubr.msk.bf16.vlgmr.msra.gmra.mxu1 %vm369_vm1, %v418_v50  ;;  %6971 = vmatmul.mubr.msk.bf16.vlgmr.msra.gmra.mxu0 %vm369_vm1, %v469_v54 }
 0x19a   :  { %6975 = vmatpush3.bf16.xpose.msra.mxu1 %v526_v56  ;;  %6976 = vmatprep.mubr.msk.bf16.mxu1 %vm7957_vm0, %v7956_v19 }
 0x19b   :  { %6986 = vmatprep.subr.bf16.mxu1 %v7956_v19  ;;  %6982 = vmatprep.mubr.msk.bf16.mxu0 %vm7957_vm0, %v7956_v19 }
 0x19c   :  { %v621_v60 = vpop.permute.xlu1 %620  ;;  %v571_v61 = vpop.permute.xlu0 %570 }
 0x19d   :  { %v576_v62 = vsel %vm369_vm1, %v571_v61, 0  ;;  %v626_v3 = vsel %vm369_vm1, %v621_v60, 0 }
 0x19e   :  { %6981 = vmatpush3.bf16.xpose.msra.mxu0 %v576_v62 }
 0x19f   :  { %6992 = vmatprep.subr.bf16.mxu0 %v7956_v19 }
 0x1a0   :  { %v619_v1 = vpop.permute.xlu1 %618  ;;  %v569_v2 = vpop.permute.xlu0 %568 }
 0x1a1   :  { %6977 = vmatmul.mubr.msk.bf16.vlgmr.msra.gmra.mxu1 %vm369_vm1, %v519_v53 }
 0x1a2   :  { %6987 = vmatpush3.bf16.xpose.msra.mxu1 %v626_v3  ;;  %6988 = vmatprep.mubr.msk.bf16.mxu1 %vm7957_vm0, %v7956_v19 }
 0x1a3   :  { %6998 = vmatprep.subr.bf16.mxu1 %v7956_v19 }
 0x1a4   :  { %v671_v4 = vpop.permute.xlu0 %670  ;;  %v721_v6 = vpop.permute.xlu1 %720 }
 0x1a5   :  { %v676_v5 = vsel %vm369_vm1, %v671_v4, 0  ;;  %6983 = vmatmul.mubr.msk.bf16.vlgmr.msra.gmra.mxu0 %vm369_vm1, %v569_v2  ;;  %v726_v7 = vsel %vm369_vm1, %v721_v6, 0 }
 0x1a6   :  { %6993 = vmatpush3.bf16.xpose.msra.mxu0 %v676_v5  ;;  %6994 = vmatprep.mubr.msk.bf16.mxu0 %vm7957_vm0, %v7956_v19 }
 0x1a7   :  { %7004 = vmatprep.subr.bf16.mxu0 %v7956_v19 }
 0x1a8   :  { %v669_v9 = vpop.permute.xlu0 %668  ;;  %v719_v10 = vpop.permute.xlu1 %718 }
 0x1a9   :  { %6989 = vmatmul.mubr.msk.bf16.vlgmr.msra.gmra.mxu1 %vm369_vm1, %v619_v1 }
 0x1aa   :  { %6999 = vmatpush3.bf16.xpose.msra.mxu1 %v726_v7  ;;  %7000 = vmatprep.mubr.msk.bf16.mxu1 %vm7957_vm0, %v7956_v19 }
 0x1ab   :  { %7010 = vmatprep.subr.bf16.mxu1 %v7956_v19 }
 0x1ac   :  { %v920_v17 = vpop.permute.xlu1 %919 }
 0x1ad   :  { %6995 = vmatmul.mubr.msk.bf16.vlgmr.msra.gmra.mxu0 %vm369_vm1, %v669_v9  ;;  %v925_v18 = vsel %vm872_vm2, %v920_v17, 0 }
 0x1ae   :  { %7005 = vmatpush3.bf16.msra.mxu0 %v874_v8  ;;  %7006 = vmatprep.mubr.msk.bf16.mxu0 %vm7957_vm0, %v7956_v19 }
 0x1af   :  { %7016 = vmatprep.subr.bf16.mxu0 %v7956_v19 }
 0x1b1   :  { %7001 = vmatmul.mubr.msk.bf16.vlgmr.msra.gmra.mxu1 %vm369_vm1, %v719_v10 }
 0x1b2   :  { %7012 = vmatprep.mubr.msk.bf16.mxu1 %vm7957_vm0, %v7956_v19  ;;  %7011 = vmatpush3.bf16.msra.mxu1 %v925_v18 }
 0x1b3   :  { %7022 = vmatprep.subr.bf16.mxu1 %v7956_v19 }
 0x1e7   :  { %v410_v11 = vpop.f32.mrf.mxu0 }
 0x1e8   :  { %v8160_v12 = vmul.f32 0.25, %v410_v11 }
 0x1e9   :  { %v6960_v13 = vpop.f32.mrf.mxu0 }
 0x1ea   :  { %v777_v14 = vsel %vm776_vm3, %v8160_v12, -inf }
 0x1eb   :  { %778 = vmax.xlane.f32.xlu0 %v777_v14  ;;  %v413_v15 = vpop.f32.mrf.mxu0 }
 0x1ed   :  { %v6961_v16 = vpop.f32.mrf.mxu0 }
 0x259   :  { %v462_v20 = vpop.f32.mrf.mxu1  ;;  %v512_v21 = vpop.f32.mrf.mxu0 }
 0x25a   :  { %v769_v22 = vmul.f32 0.25, %v462_v20  ;;  %v770_v23 = vmul.f32 0.25, %v512_v21 }
 0x25b   :  { %v6966_v24 = vpop.f32.mrf.mxu1  ;;  %v6972_v25 = vpop.f32.mrf.mxu0 }
 0x25c   :  { %v780_v26 = vsel %vm776_vm3, %v769_v22, -inf  ;;  %v783_v27 = vsel %vm776_vm3, %v770_v23, -inf }
 0x25d   :  { %781 = vmax.xlane.f32.xlu1 %v780_v26  ;;  %v465_v28 = vpop.f32.mrf.mxu1  ;;  %784 = vmax.xlane.f32.xlu0 %v783_v27  ;;  %v515_v32 = vpop.f32.mrf.mxu0 }
 0x25f   :  { %v6967_v33 = vpop.f32.mrf.mxu1  ;;  %v6973_v34 = vpop.f32.mrf.mxu0 }
 0x261   :  { %v562_v35 = vpop.f32.mrf.mxu1 }
 0x262   :  { %v771_v36 = vmul.f32 0.25, %v562_v35 }
 0x263   :  { %v6978_v37 = vpop.f32.mrf.mxu1 }
 0x264   :  { %v786_v38 = vsel %vm776_vm3, %v771_v36, -inf }
 0x265   :  { %v565_v39 = vpop.f32.mrf.mxu1  ;;  %787 = vmax.xlane.f32.xlu0 %v786_v38  ;;  %v612_v40 = vpop.f32.mrf.mxu0 }
 0x266   :  { %v772_v41 = vmul.f32 0.25, %v612_v40 }
 0x267   :  { %v6979_v42 = vpop.f32.mrf.mxu1  ;;  %v6984_v43 = vpop.f32.mrf.mxu0 }
 0x268   :  { %v789_v44 = vsel %vm776_vm3, %v772_v41, -inf }
 0x269   :  { %v662_v45 = vpop.f32.mrf.mxu1  ;;  %790 = vmax.xlane.f32.xlu1 %v789_v44  ;;  %v615_v47 = vpop.f32.mrf.mxu0 }
 0x26a   :  { %v773_v48 = vmul.f32 0.25, %v662_v45 }
 0x26b   :  { %v6985_v49 = vpop.f32.mrf.mxu0  ;;  %v6990_v50 = vpop.f32.mrf.mxu1 }
 0x26c   :  { %v792_v51 = vsel %vm776_vm3, %v773_v48, -inf }
 0x26d   :  { %v665_v52 = vpop.f32.mrf.mxu1  ;;  %793 = vmax.xlane.f32.xlu0 %v792_v51  ;;  %v712_v53 = vpop.f32.mrf.mxu0 }
 0x26e   :  { %v774_v54 = vmul.f32 0.25, %v712_v53 }
 0x26f   :  { %v6991_v55 = vpop.f32.mrf.mxu1  ;;  %v6996_v56 = vpop.f32.mrf.mxu0 }
 0x270   :  { %v795_v57 = vsel %vm776_vm3, %v774_v54, -inf }
 0x271   :  { %v762_v59 = vpop.f32.mrf.mxu1  ;;  %796 = vmax.xlane.f32.xlu1 %v795_v57  ;;  %v715_v60 = vpop.f32.mrf.mxu0 }
 0x272   :  { %v8172_v61 = vmul.f32 0.25, %v762_v59 }
 0x273   :  { %v7002_v62 = vpop.f32.mrf.mxu1  ;;  %v6997_v63 = vpop.f32.mrf.mxu0 }
 0x274   :  { %v798_v1 = vsel %vm776_vm3, %v8172_v61, -inf  ;;  %v779_v4 = vpop.xlane.xlu0 %778 }
 0x275   :  { %v765_v2 = vpop.f32.mrf.mxu1  ;;  %799 = vmax.xlane.f32.xlu0 %v798_v1  ;;  %v801_v5 = vsub.f32 %v8160_v12, %v779_v4 }
 0x277   :  { %v7003_v3 = vpop.f32.mrf.mxu1  ;;  %v809_v6 = vmul.f32 1.442695, %v801_v5 }
 0x279   :  { %7750 = vpow2.f32 %v809_v6 }
 0x282   :  { %1017 = vrot.lane.b32.xlu1 %v8127_v58, %s7960_s17 }
 0x286   :  { %v8181_v7 = vpop.eup %7750 }
 0x287   :  { %v825_v8 = vsel %vm776_vm3, %v8181_v7, 0.0 }
 0x28b   :  { %967 = vrot.lane.b32.xlu0 %v8127_v58, %s7958_s30 }
 0x2a6   :  { %826 = vadd.xlane.f32.xlu1 %v825_v8 }
 0x2b7   :  { %1065 = vrot.lane.b32.xlu1 %v8127_v58, %s7946_s21 }
 0x2e6   :  { %v782_v9 = vpop.xlane.xlu1 %781  ;;  %v785_v10 = vpop.xlane.xlu0 %784 }
 0x2e7   :  { %v802_v11 = vsub.f32 %v769_v22, %v782_v9  ;;  %v803_v13 = vsub.f32 %v770_v23, %v785_v10 }
 0x2e9   :  { %v811_v14 = vmul.f32 1.442695, %v802_v11  ;;  %v813_v15 = vmul.f32 1.442695, %v803_v13 }
 0x2eb   :  { %7752 = vpow2.f32 %v811_v14 }
 0x2ec   :  { %7754 = vpow2.f32 %v813_v15 }
 0x2ee   :  { %v788_v12 = vpop.xlane.xlu0 %787 }
 0x2ef   :  { %v804_v16 = vsub.f32 %v771_v36, %v788_v12 }
 0x2f1   :  { %v815_v17 = vmul.f32 1.442695, %v804_v16 }
 0x2f2   :  { %v791_v18 = vpop.xlane.xlu1 %790 }
 0x2f3   :  { %7756 = vpow2.f32 %v815_v17  ;;  %v805_v20 = vsub.f32 %v772_v41, %v791_v18 }
 0x2f5   :  { %v817_v21 = vmul.f32 1.442695, %v805_v20 }
 0x2f6   :  { %v794_v24 = vpop.xlane.xlu0 %793 }
 0x2f7   :  { %7758 = vpow2.f32 %v817_v21  ;;  %v806_v25 = vsub.f32 %v773_v48, %v794_v24 }
 0x2f8   :  { %v7753_v26 = vpop.eup %7752 }
 0x2f9   :  { %v8187_v27 = vpop.eup %7754  ;;  %v819_v28 = vmul.f32 1.442695, %v806_v25  ;;  %v828_v22 = vsel %vm776_vm3, %v7753_v26, 0.0 }
 0x2fa   :  { %829 = vadd.xlane.f32.xlu0 %v828_v22  ;;  %v831_v23 = vsel %vm776_vm3, %v8187_v27, 0.0  ;;  %v797_v32 = vpop.xlane.xlu1 %796 }
 0x2fb   :  { %7760 = vpow2.f32 %v819_v28  ;;  %832 = vadd.xlane.f32.xlu1 %v831_v23  ;;  %v807_v33 = vsub.f32 %v774_v54, %v797_v32 }
 0x2fd   :  { %v821_v34 = vmul.f32 1.442695, %v807_v33 }
 0x2fe   :  { %v800_v43 = vpop.xlane.xlu0 %799  ;;  %v1018_v49 = vpop.permute.xlu1 %1017 }
 0x2ff   :  { %7762 = vpow2.f32 %v821_v34  ;;  %v808_v44 = vsub.f32 %v8172_v61, %v800_v43  ;;  %v1023_v3 = vsel %vm872_vm2, %v1018_v49, 0 }
 0x300   :  { %v7757_v35 = vpop.eup %7756 }
 0x301   :  { %v834_v36 = vsel %vm776_vm3, %v7757_v35, 0.0  ;;  %v823_v45 = vmul.f32 1.442695, %v808_v44  ;;  %v7415_v44 = vld [vmem:[#allocation4 + $0x30] sm:$0xff]  }
 0x302   :  { %835 = vadd.xlane.f32.xlu0 %v834_v36  ;;  %v968_v51 = vpop.permute.xlu0 %967 }
 0x303   :  { %7764 = vpow2.f32 %v823_v45  ;;  %v973_v63 = vsel %vm872_vm2, %v968_v51, 0 }
 0x304   :  { %v8193_v37 = vpop.eup %7758 }
 0x305   :  { %v837_v38 = vsel %vm776_vm3, %v8193_v37, 0.0 }
 0x306   :  { %838 = vadd.xlane.f32.xlu1 %v837_v38 }
 0x308   :  { %v8197_v39 = vpop.eup %7760 }
 0x309   :  { %v840_v40 = vsel %vm776_vm3, %v8197_v39, 0.0 }
 0x30a   :  { %841 = vadd.xlane.f32.xlu0 %v840_v40 }
 0x30c   :  { %v8201_v41 = vpop.eup %7762 }
 0x30d   :  { %v843_v42 = vsel %vm776_vm3, %v8201_v41, 0.0 }
 0x30e   :  { %844 = vadd.xlane.f32.xlu1 %v843_v42 }
 0x310   :  { %v8210_v47 = vpop.eup %7764 }
 0x311   :  { %v846_v48 = vsel %vm776_vm3, %v8210_v47, 0.0 }
 0x31f   :  { %1163 = vrot.lane.b32.xlu1 %v8127_v58, %s7962_s3 }
 0x320   :  { %1115 = vrot.lane.b32.xlu0 %v8127_v58, %s7961_s18 }
 0x32f   :  { %v827_v50 = vpop.xlane.xlu1 %826 }
 0x330   :  { %7766 = vrcp.f32 %v827_v50  ;;  %v7416_v50 = vld [vmem:[#allocation4 + $0x28] sm:$0xff]  }
 0x333   :  { %v1066_v52 = vpop.permute.xlu1 %1065 }
 0x334   :  { %v1071_v10 = vsel %vm872_vm2, %v1066_v52, 0 }
 0x33d   :  { %v7767_v56 = vpop.eup %7766 }
 0x33e   :  { %v857_v60 = vmul.f32 %v7767_v56, %v8181_v7 }
 0x33f   :  { %847 = vadd.xlane.f32.xlu0 %v846_v48 }
 0x355   :  { %1213 = vrot.lane.b32.xlu0 %v8127_v58, %s7953_s20 }
 0x383   :  { %v830_v53 = vpop.xlane.xlu0 %829 }
 0x384   :  { %7768 = vrcp.f32 %v830_v53  ;;  %v833_v54 = vpop.xlane.xlu1 %832 }
 0x385   :  { %7770 = vrcp.f32 %v833_v54 }
 0x38b   :  { %v836_v55 = vpop.xlane.xlu0 %835 }
 0x38c   :  { %7772 = vrcp.f32 %v836_v55  ;;  %v7417_v55 = vld [vmem:[#allocation4 + $0x20] sm:$0xff]  }
 0x38f   :  { %v839_v57 = vpop.xlane.xlu1 %838 }
 0x390   :  { %7774 = vrcp.f32 %v839_v57 }
 0x391   :  { %v7769_v59 = vpop.eup %7768 }
 0x392   :  { %v858_v61 = vmul.f32 %v7769_v59, %v7753_v26  ;;  %v7771_v2 = vpop.eup %7770 }
 0x393   :  { %v842_v62 = vpop.xlane.xlu0 %841  ;;  %v859_v5 = vmul.f32 %v7771_v2, %v8187_v27  ;;  %v7420_v2 = vld [vmem:[#allocation4 + $0x8] sm:$0xff]  }
 0x394   :  { %7776 = vrcp.f32 %v842_v62  ;;  %v865_v58 = vpack.c.bf16 %v858_v61, %v857_v60  ;;  %v7418_v61 = vld [vmem:[#allocation4 + $0x18] sm:$0xff]  }
 0x396   :  { %7007 = vmatmul.mubr.msk.bf16.vlgmr.msra.gmra.mxu0 %vm776_vm3, %v865_v58  ;;  %v917_v1 = vrot.slane %v865_v58, 4 }
 0x397   :  { %7017 = vmatpush3.bf16.msra.mxu0 %v973_v63  ;;  %7018 = vmatprep.mubr.msk.bf16.mxu0 %vm7957_vm0, %v7956_v19  ;;  %v1116_v8 = vpop.permute.xlu0 %1115  ;;  %v845_v9 = vpop.xlane.xlu1 %844 }
 0x398   :  { %7013 = vmatmul.mubr.msk.bf16.vlgmr.msra.gmra.mxu1 %vm776_vm3, %v917_v1  ;;  %7028 = vmatprep.subr.bf16.mxu0 %v7956_v19  ;;  %v1121_v14 = vsel %vm872_vm2, %v1116_v8, 0  ;;  %7778 = vrcp.f32 %v845_v9  ;;  %v7419_v1 = vld [vmem:[#allocation4 + $0x10] sm:$0xff]  }
 0x399   :  { %v7773_v4 = vpop.eup %7772  ;;  %7023 = vmatpush3.bf16.msra.mxu1 %v1023_v3  ;;  %7024 = vmatprep.mubr.msk.bf16.mxu1 %vm7957_vm0, %v7956_v19  ;;  %v7421_v3 = vld [vmem:[#allocation4] sm:$0xff]  }
 0x39a   :  { %v860_v6 = vmul.f32 %v7773_v4, %v7757_v35  ;;  %7034 = vmatprep.subr.bf16.mxu1 %v7956_v19 }
 0x39b   :  { %v1164_v17 = vpop.permute.xlu1 %1163 }
 0x39c   :  { %v866_v7 = vpack.c.bf16 %v860_v6, %v859_v5  ;;  %v1169_v20 = vsel %vm872_vm2, %v1164_v17, 0 }
 0x39d   :  { %v7775_v13 = vpop.eup %7774 }
 0x39e   :  { %7019 = vmatmul.mubr.msk.bf16.vlgmr.msra.gmra.mxu0 %vm776_vm3, %v866_v7  ;;  %v1016_v11 = vrot.slane %v866_v7, 4  ;;  %v861_v12 = vmul.f32 %v7775_v13, %v8193_v37 }
 0x39f   :  { %7029 = vmatpush3.bf16.msra.mxu0 %v1071_v10  ;;  %7030 = vmatprep.mubr.msk.bf16.mxu0 %vm7957_vm0, %v7956_v19 }
 0x3a0   :  { %7025 = vmatmul.mubr.msk.bf16.vlgmr.msra.gmra.mxu1 %vm776_vm3, %v1016_v11  ;;  %7040 = vmatprep.subr.bf16.mxu0 %v7956_v19 }
 0x3a1   :  { %v7777_v15 = vpop.eup %7776  ;;  %7035 = vmatpush3.bf16.msra.mxu1 %v1121_v14  ;;  %7036 = vmatprep.mubr.msk.bf16.mxu1 %vm7957_vm0, %v7956_v19 }
 0x3a2   :  { %v862_v16 = vmul.f32 %v7777_v15, %v8197_v39  ;;  %7046 = vmatprep.subr.bf16.mxu1 %v7956_v19 }
 0x3a4   :  { %v867_v18 = vpack.c.bf16 %v862_v16, %v861_v12 }
 0x3a5   :  { %v7779_v27 = vpop.eup %7778 }
 0x3a6   :  { %7031 = vmatmul.mubr.msk.bf16.vlgmr.msra.gmra.mxu0 %vm776_vm3, %v867_v18  ;;  %v1114_v21 = vrot.slane %v867_v18, 4  ;;  %v863_v22 = vmul.f32 %v7779_v27, %v8201_v41  ;;  %v7414_v41 = vld [vmem:[#allocation4 + $0x38] sm:$0xff]  }
 0x3a7   :  { %7041 = vmatpush3.bf16.msra.mxu0 %v1169_v20  ;;  %7042 = vmatprep.mubr.msk.bf16.mxu0 %vm7957_vm0, %v7956_v19 }
 0x3a8   :  { %7037 = vmatmul.mubr.msk.bf16.vlgmr.msra.gmra.mxu1 %vm776_vm3, %v1114_v21  ;;  %7052 = vmatprep.subr.bf16.mxu0 %v7956_v19 }
 0x3a9   :  { %7048 = vmatprep.mubr.msk.bf16.mxu1 %vm7957_vm0, %v7956_v19 }
 0x3c8   :  { %v848_v24 = vpop.xlane.xlu0 %847 }
 0x3c9   :  { %7780 = vrcp.f32 %v848_v24 }
 0x3cc   :  { %v1214_v25 = vpop.permute.xlu0 %1213 }
 0x3cd   :  { %v1219_v26 = vsel %vm872_vm2, %v1214_v25, 0 }
 0x3ce   :  { %7047 = vmatpush3.bf16.msra.mxu1 %v1219_v26 }
 0x3d6   :  { %v7781_v28 = vpop.eup %7780 }
 0x3d7   :  { %v864_v23 = vmul.f32 %v7781_v28, %v8210_v47 }
 0x3d9   :  { %v868_v32 = vpack.c.bf16 %v864_v23, %v863_v22  ;;  %v6306_v23 = vld [vmem:[%s8825_s4] ss:$0 sm:$0xff] }
 0x3db   :  { %7043 = vmatmul.mubr.msk.bf16.vlgmr.msra.gmra.mxu0 %vm776_vm3, %v868_v32  ;;  %v1212_v33 = vrot.slane %v868_v32, 4 }
 0x3dc   :  { %7068 = vmatprep.mubr.msk.bf16.mxu0 %vm7957_vm0, %v7956_v19  ;;  %7053 = vmatpush3.bf16.msra.mxu0 %v7414_v41  ;;  %v7425_v41 = vld [vmem:[#allocation6 + $0xe8] ss:$16 sps:$4 sm:$0xff]  }
 0x3dd   :  { %7049 = vmatmul.mubr.msk.bf16.vlgmr.msra.gmra.mxu1 %vm776_vm3, %v1212_v33  ;;  %7054 = vmatprep.subr.bf16.mxu0 %v7956_v19 }
 0x3de   :  { %1689 = vmatprep.mubr.bf16.mxu1 %v7955_v0 }
 0x3e0   :  { %7055 = vmatpush3.bf16.msra.mxu0 %v7415_v44  ;;  %v7433_v44 = vld [vmem:[#allocation6 + $0xcc] ss:$16 sps:$4 sm:$0xff]  }
 0x3e1   :  { %7056 = vmatprep.subr.bf16.mxu0 %v7956_v19 }
 0x3e4   :  { %7057 = vmatpush3.bf16.msra.mxu0 %v7416_v50 }
 0x3e5   :  { %7058 = vmatprep.subr.bf16.mxu0 %v7956_v19 }
 0x3e8   :  { %7059 = vmatpush3.bf16.msra.mxu0 %v7417_v55  ;;  %v7437_v55 = vld [vmem:[#allocation6 + $0xa8] ss:$16 sps:$4 sm:$0xff]  }
 0x3e9   :  { %7060 = vmatprep.subr.bf16.mxu0 %v7956_v19 }
 0x3ec   :  { %7061 = vmatpush3.bf16.msra.mxu0 %v7418_v61  ;;  %v7448_v61 = vld [vmem:[#allocation6 + $0x64] ss:$16 sps:$4 sm:$0xff]  }
 0x3ed   :  { %7062 = vmatprep.subr.bf16.mxu0 %v7956_v19 }
 0x3f0   :  { %7063 = vmatpush3.bf16.msra.mxu0 %v7419_v1  ;;  %v7454_v1 = vld [vmem:[#allocation6 + $0x44] ss:$16 sps:$4 sm:$0xff]  }
 0x3f1   :  { %7064 = vmatprep.subr.bf16.mxu0 %v7956_v19 }
 0x3f4   :  { %7065 = vmatpush3.bf16.msra.mxu0 %v7420_v2  ;;  %v7457_v2 = vld [vmem:[#allocation6 + $0x4c] ss:$16 sps:$4 sm:$0xff]  }
 0x3f5   :  { %7066 = vmatprep.subr.bf16.mxu0 %v7956_v19 }
 0x3f8   :  { %7067 = vmatpush3.bf16.msra.mxu0 %v7421_v3  ;;  %v7452_v3 = vld [vmem:[#allocation6 + $0x40] ss:$16 sps:$4 sm:$0xff]  }
 0x456   :  { %v8256_v34 = vpop.f32.mrf.mxu0 }
 0x458   :  { %v7008_v35 = vpop.f32.mrf.mxu0  ;;  %v961_v36 = vpop.f32.mrf.mxu1 }
 0x459   :  { %1262 = vrot.lane.b32.xlu1 %v961_v36, %s7953_s20  ;;  %v7858_v35 = vld [vmem:[%s8821_s0] sm:$0xff] }
 0x45a   :  { %v913_v37 = vpop.f32.mrf.mxu0  ;;  %v7014_v38 = vpop.f32.mrf.mxu1 }
 0x45c   :  { %v7009_v39 = vpop.f32.mrf.mxu0  ;;  %v964_v40 = vpop.f32.mrf.mxu1 }
 0x45d   :  { %v7422_v39 = vld [vmem:[#allocation6 + $0xe0] ss:$16 sps:$4 sm:$0xff]   ;;  %v7424_v40 = vld [vmem:[#allocation6 + $0xe4] ss:$16 sps:$4 sm:$0xff]  }
 0x45e   :  { %v7015_v42 = vpop.f32.mrf.mxu1  ;;  %v1009_v43 = vpop.f32.mrf.mxu0  ;;  %1657 = vmatprep.subr.bf16.mxu1 %v7424_v40  ;;  %v7483_v40 = vld [vmem:[#allocation7 + $0xe0] sm:$0xff]  }
 0x45f   :  { %1266 = vrot.lane.b32.xlu0 %v1009_v43, %s7962_s3  ;;  %v7427_v42 = vld [vmem:[#allocation6 + $0xec] ss:$16 sps:$4 sm:$0xff]   ;;  %v7430_v43 = vld [vmem:[#allocation6 + $0xc4] ss:$16 sps:$4 sm:$0xff]   ;;  %1658 = vmatpush1.bf16.msra.mxu1 %v7422_v39 }
 0x460   :  { %v7020_v45 = vpop.f32.mrf.mxu0  ;;  %v1059_v47 = vpop.f32.mrf.mxu1  ;;  %1698 = vmatprep.subr.bf16.mxu0 %v7427_v42  ;;  %1659 = vmatprep.subr.bf16.mxu1 %v7430_v43  ;;  %v7482_v39 = vld [vmem:[#allocation7 + $0x60] sm:$0xff]   ;;  %v7486_v43 = vld [vmem:[#allocation7 + $0x58] sm:$0xff]  }
 0x461   :  { %1270 = vrot.lane.b32.xlu1 %v1059_v47, %s7961_s18  ;;  %v7428_v45 = vld [vmem:[#allocation6 + $0xc0] ss:$16 sps:$4 sm:$0xff]   ;;  %v7431_v47 = vld [vmem:[#allocation6 + $0xc8] ss:$16 sps:$4 sm:$0xff]  }
 0x462   :  { %v1012_v48 = vpop.f32.mrf.mxu0  ;;  %v7026_v49 = vpop.f32.mrf.mxu1  ;;  %v7485_v42 = vld [vmem:[#allocation7 + $0xa0] sm:$0xff]  }
 0x463   :  { %1660 = vmatpush1.bf16.msra.mxu1 %v7428_v45  ;;  %v7488_v45 = vld [vmem:[#allocation7 + $0x18] sm:$0xff]  }
 0x464   :  { %v7021_v51 = vpop.f32.mrf.mxu0  ;;  %v1062_v52 = vpop.f32.mrf.mxu1 }
 0x465   :  { %v7436_v52 = vld [vmem:[#allocation6 + $0xa4] ss:$16 sps:$4 sm:$0xff]  }
 0x466   :  { %v7027_v53 = vpop.f32.mrf.mxu1  ;;  %v1107_v54 = vpop.f32.mrf.mxu0  ;;  %1661 = vmatprep.subr.bf16.mxu1 %v7436_v52  ;;  %v7494_v52 = vld [vmem:[#allocation7 + $0x48] sm:$0xff]  }
 0x467   :  { %1274 = vrot.lane.b32.xlu0 %v1107_v54, %s7946_s21  ;;  %v7439_v53 = vld [vmem:[#allocation6 + $0xac] ss:$16 sps:$4 sm:$0xff]   ;;  %v7434_v54 = vld [vmem:[#allocation6 + $0xa0] ss:$16 sps:$4 sm:$0xff]  }
 0x468   :  { %v7032_v56 = vpop.f32.mrf.mxu0  ;;  %v1157_v57 = vpop.f32.mrf.mxu1  ;;  %1662 = vmatpush1.bf16.msra.mxu1 %v7434_v54  ;;  %v7496_v54 = vld [vmem:[#allocation7 + $0x8] sm:$0xff]  }
 0x469   :  { %1278 = vrot.lane.b32.xlu1 %v1157_v57, %s7960_s17  ;;  %v7440_v56 = vld [vmem:[#allocation6 + $0x80] ss:$16 sps:$4 sm:$0xff]   ;;  %v7442_v57 = vld [vmem:[#allocation6 + $0x84] ss:$16 sps:$4 sm:$0xff]  }
 0x46a   :  { %v1110_v59 = vpop.f32.mrf.mxu0  ;;  %v7038_v60 = vpop.f32.mrf.mxu1  ;;  %1663 = vmatprep.subr.bf16.mxu1 %v7442_v57  ;;  %v7499_v57 = vld [vmem:[#allocation7 + $0xc0] sm:$0xff]  }
 0x46b   :  { %v7443_v59 = vld [vmem:[#allocation6 + $0x88] ss:$16 sps:$4 sm:$0xff]   ;;  %v7445_v60 = vld [vmem:[#allocation6 + $0x8c] ss:$16 sps:$4 sm:$0xff]  }
 0x46c   :  { %v7033_v62 = vpop.f32.mrf.mxu0  ;;  %v1160_v58 = vpop.f32.mrf.mxu1  ;;  %1664 = vmatpush1.bf16.msra.mxu1 %v7440_v56  ;;  %v7498_v56 = vld [vmem:[#allocation7 + $0x40] sm:$0xff]  }
 0x46d   :  { %v7451_v62 = vld [vmem:[#allocation6 + $0x6c] ss:$16 sps:$4 sm:$0xff]   ;;  %v7446_v58 = vld [vmem:[#allocation6 + $0x60] ss:$16 sps:$4 sm:$0xff]   ;;  %1665 = vmatprep.subr.bf16.mxu1 %v7448_v61 }
 0x46e   :  { %v7039_v63 = vpop.f32.mrf.mxu1  ;;  %v1475_v61 = vld [vmem:[%s8829_s8] sm:$0xf] }
 0x46f   :  { %v7449_v63 = vld [vmem:[#allocation6 + $0x68] ss:$16 sps:$4 sm:$0xff]  }
 0x470   :  { %1666 = vmatpush1.bf16.msra.mxu1 %v7446_v58  ;;  %v1480_v58 = vrot.slane %v1475_v61, %v8088_v31 }
 0x471   :  { %1667 = vmatprep.subr.bf16.mxu1 %v7454_v1  ;;  %v1484_v1 = vrot.slane %v1475_v61, %v8085_v30 }
 0x474   :  { %1668 = vmatpush1.bf16.msra.mxu1 %v7452_v3 }
 0x49b   :  { %v1205_v4 = vpop.f32.mrf.mxu0 }
 0x49c   :  { %1282 = vrot.lane.b32.xlu0 %v1205_v4, %s7958_s30  ;;  %v7455_v4 = vld [vmem:[#allocation6 + $0x48] ss:$16 sps:$4 sm:$0xff]  }
 0x49d   :  { %v7044_v5 = vpop.f32.mrf.mxu0  ;;  %v1255_v6 = vpop.f32.mrf.mxu1 }
 0x49e   :  { %1286 = vrot.lane.b32.xlu1 %v1255_v6, %s7959_s16  ;;  %v7460_v5 = vld [vmem:[#allocation6 + $0x24] ss:$16 sps:$4 sm:$0xff]   ;;  %v7463_v6 = vld [vmem:[#allocation6 + $0x2c] ss:$16 sps:$4 sm:$0xff]  }
 0x49f   :  { %v1208_v7 = vpop.f32.mrf.mxu0  ;;  %v7050_v8 = vpop.f32.mrf.mxu1  ;;  %1669 = vmatprep.subr.bf16.mxu1 %v7460_v5 }
 0x4a0   :  { %v7458_v7 = vld [vmem:[#allocation6 + $0x20] ss:$16 sps:$4 sm:$0xff]   ;;  %v7461_v8 = vld [vmem:[#allocation6 + $0x28] ss:$16 sps:$4 sm:$0xff]  }
 0x4a1   :  { %v7045_v9 = vpop.f32.mrf.mxu0  ;;  %v1258_v10 = vpop.f32.mrf.mxu1  ;;  %1670 = vmatpush1.bf16.msra.mxu1 %v7458_v7 }
 0x4a2   :  { %v7466_v9 = vld [vmem:[#allocation6 + $0x4] ss:$16 sps:$4 sm:$0xff]   ;;  %v7469_v10 = vld [vmem:[#allocation6 + $0xc] ss:$16 sps:$4 sm:$0xff]  }
 0x4a3   :  { %v7051_v11 = vpop.f32.mrf.mxu1  ;;  %1671 = vmatprep.subr.bf16.mxu1 %v7466_v9 }
 0x4a4   :  { %v7464_v11 = vld [vmem:[#allocation6] ss:$16 sps:$4 sm:$0xff]  }
 0x4a5   :  { %1672 = vmatpush1.bf16.msra.mxu1 %v7464_v11 }
 0x4cb   :  { %v1263_v13 = vpop.permute.xlu1 %1262 }
 0x4cc   :  { %v1289_v15 = vsel %vm369_vm1, %v8256_v34, %v1263_v13  ;;  %v7467_v13 = vld [vmem:[#allocation6 + $0x8] ss:$16 sps:$4 sm:$0xff]  }
 0x4d1   :  { %v1267_v14 = vpop.permute.xlu0 %1266 }
 0x4d2   :  { %v1291_v12 = vsel %vm1290_vm4, %v1289_v15, %v1267_v14  ;;  %v7470_v14 = vld [vmem:[#allocation7 + $0x78] sm:$0xff]  }
 0x4d3   :  { %v1271_v16 = vpop.permute.xlu1 %1270  ;;  %v7471_v15 = vld [vmem:[#allocation7 + $0xf8] sm:$0xff]   ;;  %6695 = vmatprep.subr.bf16.mxu1 %v7470_v14 }
 0x4d4   :  { %v1293_v18 = vsel %vm1292_vm5, %v1291_v12, %v1271_v16 }
 0x4d9   :  { %v1275_v17 = vpop.permute.xlu0 %1274 }
 0x4da   :  { %v1295_v20 = vsel %vm1294_vm6, %v1293_v18, %v1275_v17 }
 0x4db   :  { %v1279_v21 = vpop.permute.xlu1 %1278 }
 0x4dc   :  { %v1297_v24 = vsel %vm1296_vm7, %v1295_v20, %v1279_v21  ;;  %v6315_v20 = vld [vmem:[%s8826_s5] ss:$0 sm:$0xff] }
 0x50e   :  { %v1283_v25 = vpop.permute.xlu0 %1282 }
 0x50f   :  { %v1299_v26 = vsel %vm1298_vm8, %v1297_v24, %v1283_v25  ;;  %v6316_v24 = vld [vmem:[%s8827_s6] ss:$0 sm:$0xff] }
 0x510   :  { %v1287_v27 = vpop.permute.xlu1 %1286 }
 0x511   :  { %v1301_v28 = vsel %vm1300_vm9, %v1299_v26, %v1287_v27  ;;  %v7472_v27 = vld [vmem:[#allocation7 + $0x38] sm:$0xff]  }
 0x512   :  { %v1302_v22 = vpack.c.bf16 %v1301_v28, %v1301_v28  ;;  %v7473_v28 = vld [vmem:[#allocation7 + $0xb8] sm:$0xff]  }
 0x514   :  { %7069 = vmatmul.mubr.bf16.vlgmr.msra.gmra.mxu0 %v1302_v22 }
 0x515   :  { %1730 = vmatprep.mubr.bf16.mxu0 %v7955_v0  ;;  %1699 = vmatpush1.bf16.msra.mxu0 %v7425_v41  ;;  %v7484_v41 = vld [vmem:[#allocation7 + $0x20] sm:$0xff]  }
 0x516   :  { %1700 = vmatprep.subr.bf16.mxu0 %v7433_v44  ;;  %v7487_v44 = vld [vmem:[#allocation7 + $0xd8] sm:$0xff]  }
 0x519   :  { %1701 = vmatpush1.bf16.msra.mxu0 %v7431_v47  ;;  %v7489_v47 = vld [vmem:[#allocation7 + $0x98] sm:$0xff]  }
 0x51a   :  { %1702 = vmatprep.subr.bf16.mxu0 %v7439_v53  ;;  %v7495_v53 = vld [vmem:[#allocation7 + $0xc8] sm:$0xff]  }
 0x51d   :  { %1703 = vmatpush1.bf16.msra.mxu0 %v7437_v55  ;;  %v7497_v55 = vld [vmem:[#allocation7 + $0x88] sm:$0xff]  }
 0x51e   :  { %1704 = vmatprep.subr.bf16.mxu0 %v7445_v60  ;;  %v7501_v60 = vld [vmem:[#allocation7 + $0x80] sm:$0xff]  }
 0x521   :  { %1705 = vmatpush1.bf16.msra.mxu0 %v7443_v59  ;;  %v7500_v59 = vld [vmem:[#allocation7] sm:$0xff]  }
 0x522   :  { %1706 = vmatprep.subr.bf16.mxu0 %v7451_v62  ;;  %v8302_v62 = vsub.s32 3, %v8082_v29 }
 0x525   :  { %1707 = vmatpush1.bf16.msra.mxu0 %v7449_v63  ;;  %v1488_v63 = vrot.slane %v1475_v61, %v8115_v46 }
 0x526   :  { %1708 = vmatprep.subr.bf16.mxu0 %v7457_v2  ;;  %v1492_v2 = vrot.slane %v1475_v61, %v8302_v62  ;;  %v7524_v61 = vld [vmem:[#allocation2 + $0xf4] ss:$12 sps:$4 sm:$0xff]  }
 0x529   :  { %1709 = vmatpush1.bf16.msra.mxu0 %v7455_v4 }
 0x52a   :  { %1710 = vmatprep.subr.bf16.mxu0 %v7463_v6 }
 0x52d   :  { %1711 = vmatpush1.bf16.msra.mxu0 %v7461_v8 }
 0x52e   :  { %1712 = vmatprep.subr.bf16.mxu0 %v7469_v10 }
 0x531   :  { %1713 = vmatpush1.bf16.msra.mxu0 %v7467_v13 }
 0x532   :  { %6717 = vmatprep.subr.bf16.mxu0 %v7471_v15 }
 0x5d4   :  { %v1408_v32 = vpop.f32.mrf.mxu0 }
 0x5d5   :  { %v1409_v33 = vadd.f32 %v6306_v23, %v1408_v32  ;;  %v7474_v23 = vld [vmem:[#allocation7 + $0x70] sm:$0xff]  }
 0x5d6   :  { %v7070_v34 = vpop.f32.mrf.mxu0  ;;  %v7475_v32 = vld [vmem:[#allocation7 + $0xf0] sm:$0xff]  }
 0x5d7   :  { %v1414_v36 = vadd.f32 %v7858_v35, %v1409_v33  ;;  %v7476_v33 = vld [vmem:[#allocation7 + $0x30] sm:$0xff]   ;;  %v7478_v35 = vld [vmem:[#allocation7 + $0x68] sm:$0xff]  }
 0x5d8   :  { %v1411_v37 = vpop.f32.mrf.mxu0  ;;  %v7477_v34 = vld [vmem:[#allocation7 + $0xb0] sm:$0xff]  }
 0x5d9   :  { %1417 = vadd.xlane.f32.xlu0 %v1414_v36  ;;  %v7480_v37 = vld [vmem:[#allocation7 + $0x28] sm:$0xff]  }
 0x5da   :  { %v7071_v38 = vpop.f32.mrf.mxu0 }
 0x5db   :  { %v7481_v38 = vld [vmem:[#allocation7 + $0xa8] sm:$0xff]  }
 0x662   :  { %v1418_v48 = vpop.xlane.xlu0 %1417 }
 0x663   :  { %v1419_v49 = vmul.f32 0.0078125, %v1418_v48  ;;  %v7490_v48 = vld [vmem:[#allocation7 + $0x50] sm:$0xff]  }
 0x665   :  { %v1420_v50 = vsub.f32 %v1414_v36, %v1419_v49  ;;  %v7479_v36 = vld [vmem:[#allocation7 + $0xe8] sm:$0xff]   ;;  %v7491_v49 = vld [vmem:[#allocation7 + $0xd0] sm:$0xff]  }
 0x667   :  { %v1421_v51 = vmul.f32 %v1420_v50, %v1420_v50 }
 0x669   :  { %1422 = vadd.xlane.f32.xlu1 %v1421_v51  ;;  %v7493_v51 = vld [vmem:[#allocation7 + $0x90] sm:$0xff]  }
 0x6f2   :  { %v1423_v12 = vpop.xlane.xlu1 %1422 }
 0x6f3   :  { %v1424_v16 = vmul.f32 0.0078125, %v1423_v12 }
 0x6f5   :  { %v1425_v17 = vadd.f32 1e-05, %v1424_v16 }
 0x6f7   :  { %7782 = vrsqrt.f32 %v1425_v17 }
 0x704   :  { %v7783_v18 = vpop.eup %7782 }
 0x705   :  { %v1427_v21 = vmul.f32 %v7783_v18, %v1420_v50  ;;  %v7492_v50 = vld [vmem:[#allocation7 + $0x10] sm:$0xff]  }
 0x707   :  { %v1434_v25 = vmul.f32 %v6315_v20, %v1427_v21 }
 0x709   :  { %v8293_v26 = vadd.f32 %v6316_v24, %v1434_v25 }
 0x70b   :  { %v1442_v22 = vpack.c.bf16 %v8293_v26, %v8293_v26 }
 0x70d   :  { %1690 = vmatmul.mubr.bf16.vlgmr.msra.gmra.mxu1 %v1442_v22  ;;  %1731 = vmatmul.mubr.bf16.vlgmr.msra.gmra.mxu0 %v1442_v22 }
 0x70e   :  { %6696 = vmatpush3.bf16.msra.mxu1 %v7472_v27  ;;  %6718 = vmatpush3.bf16.msra.mxu0 %v7473_v28  ;;  %v6349_v28 = vld [vmem:[%s8831_s10] ss:$0 sm:$0xff] }
 0x70f   :  { %6697 = vmatprep.subr.bf16.mxu1 %v7474_v23  ;;  %6719 = vmatprep.subr.bf16.mxu0 %v7475_v32 }
 0x712   :  { %6698 = vmatpush3.bf16.msra.mxu1 %v7476_v33  ;;  %6720 = vmatpush3.bf16.msra.mxu0 %v7477_v34 }
 0x713   :  { %6699 = vmatprep.subr.bf16.mxu1 %v7478_v35  ;;  %6721 = vmatprep.subr.bf16.mxu0 %v7479_v36 }
 0x716   :  { %6700 = vmatpush3.bf16.msra.mxu1 %v7480_v37  ;;  %6722 = vmatpush3.bf16.msra.mxu0 %v7481_v38 }
 0x717   :  { %6701 = vmatprep.subr.bf16.mxu1 %v7482_v39  ;;  %6723 = vmatprep.subr.bf16.mxu0 %v7483_v40 }
 0x71a   :  { %6702 = vmatpush3.bf16.msra.mxu1 %v7484_v41  ;;  %6724 = vmatpush3.bf16.msra.mxu0 %v7485_v42  ;;  %v7502_v41 = vld [vmem:[#allocation2 + $0x168] ss:$12 sps:$4 sm:$0xff]   ;;  %v7504_v42 = vld [vmem:[#allocation2 + $0x16c] ss:$12 sps:$4 sm:$0xff]  }
 0x71b   :  { %6703 = vmatprep.subr.bf16.mxu1 %v7486_v43  ;;  %6725 = vmatprep.subr.bf16.mxu0 %v7487_v44  ;;  %v7505_v43 = vld [vmem:[#allocation2 + $0x170] ss:$12 sps:$4 sm:$0xff]   ;;  %v7508_v44 = vld [vmem:[#allocation2 + $0x154] ss:$12 sps:$4 sm:$0xff]  }
 0x71e   :  { %6704 = vmatpush3.bf16.msra.mxu1 %v7488_v45  ;;  %6726 = vmatpush3.bf16.msra.mxu0 %v7489_v47  ;;  %v7509_v45 = vld [vmem:[#allocation2 + $0x158] ss:$12 sps:$4 sm:$0xff]   ;;  %v7506_v47 = vld [vmem:[#allocation2 + $0x150] ss:$12 sps:$4 sm:$0xff]  }
 0x71f   :  { %6705 = vmatprep.subr.bf16.mxu1 %v7490_v48  ;;  %6727 = vmatprep.subr.bf16.mxu0 %v7491_v49 }
 0x722   :  { %6706 = vmatpush3.bf16.msra.mxu1 %v7492_v50  ;;  %6728 = vmatpush3.bf16.msra.mxu0 %v7493_v51  ;;  %v7512_v51 = vld [vmem:[#allocation2 + $0x13c] ss:$12 sps:$4 sm:$0xff]  }
 0x723   :  { %6707 = vmatprep.subr.bf16.mxu1 %v7494_v52  ;;  %6729 = vmatprep.subr.bf16.mxu0 %v7495_v53  ;;  %v7510_v52 = vld [vmem:[#allocation2 + $0x138] ss:$12 sps:$4 sm:$0xff]   ;;  %v7513_v53 = vld [vmem:[#allocation2 + $0x140] ss:$12 sps:$4 sm:$0xff]  }
 0x726   :  { %6708 = vmatpush3.bf16.msra.mxu1 %v7496_v54  ;;  %6730 = vmatpush3.bf16.msra.mxu0 %v7497_v55  ;;  %v7514_v54 = vld [vmem:[#allocation2 + $0x120] ss:$12 sps:$4 sm:$0xff]   ;;  %v7516_v55 = vld [vmem:[#allocation2 + $0x124] ss:$12 sps:$4 sm:$0xff]  }
 0x727   :  { %6709 = vmatprep.subr.bf16.mxu1 %v7498_v56  ;;  %6731 = vmatprep.subr.bf16.mxu0 %v7499_v57  ;;  %v7517_v56 = vld [vmem:[#allocation2 + $0x128] ss:$12 sps:$4 sm:$0xff]   ;;  %v7520_v57 = vld [vmem:[#allocation2 + $0x10c] ss:$12 sps:$4 sm:$0xff]  }
 0x72a   :  { %6710 = vmatpush3.bf16.msra.mxu1 %v7500_v59  ;;  %6732 = vmatpush3.bf16.msra.mxu0 %v7501_v60  ;;  %v7518_v59 = vld [vmem:[#allocation2 + $0x108] ss:$12 sps:$4 sm:$0xff]   ;;  %v7521_v60 = vld [vmem:[#allocation2 + $0x110] ss:$12 sps:$4 sm:$0xff]  }
 0x72b   :  { %7072 = vmatprep.subr.bf16.mxu0 %v7956_v19  ;;  %2298 = vmatprep.subr.bf16.mxu1 %v7504_v42 }
 0x7cd   :  { %v1691_v3 = vpop.f32.mrf.mxu1  ;;  %v1732_v4 = vpop.f32.mrf.mxu0 }
 0x7ce   :  { %v1692_v5 = vadd.f32 %v1691_v3, %v1480_v58  ;;  %v1733_v6 = vadd.f32 %v1732_v4, %v1488_v63  ;;  %v7522_v58 = vld [vmem:[#allocation2 + $0xf0] ss:$12 sps:$4 sm:$0xff]   ;;  %v7525_v63 = vld [vmem:[#allocation2 + $0xf8] ss:$12 sps:$4 sm:$0xff]   ;;  %v7529_v3 = vld [vmem:[#allocation2 + $0xe0] ss:$12 sps:$4 sm:$0xff]  }
 0x7cf   :  { %v1693_v7 = vpop.f32.mrf.mxu1  ;;  %v1734_v8 = vpop.f32.mrf.mxu0  ;;  %v7532_v4 = vld [vmem:[#allocation2 + $0xc4] ss:$12 sps:$4 sm:$0xff]  }
 0x7d0   :  { %v1694_v9 = vadd.f32 %v1693_v7, %v1484_v1  ;;  %v1735_v10 = vadd.f32 %v1734_v8, %v1492_v2  ;;  %v1739_v11 = vmax.f32 %v1692_v5, 0.0  ;;  %v1741_v13 = vmax.f32 %v1733_v6, 0.0  ;;  %v7528_v1 = vld [vmem:[#allocation2 + $0xdc] ss:$12 sps:$4 sm:$0xff]   ;;  %v7526_v2 = vld [vmem:[#allocation2 + $0xd8] ss:$12 sps:$4 sm:$0xff]  }
 0x7d1   :  { %v1695_v29 = vpop.f32.mrf.mxu1  ;;  %v1736_v14 = vpop.f32.mrf.mxu0  ;;  %v7530_v5 = vld [vmem:[#allocation2 + $0xc0] ss:$12 sps:$4 sm:$0xff]   ;;  %v7533_v6 = vld [vmem:[#allocation2 + $0xc8] ss:$12 sps:$4 sm:$0xff]  }
 0x7d2   :  { %v1740_v15 = vmax.f32 %v1694_v9, 0.0  ;;  %v1742_v12 = vmax.f32 %v1735_v10, 0.0  ;;  %v1743_v21 = vpack.c.bf16 %v1739_v11, %v1739_v11  ;;  %v1745_v24 = vpack.c.bf16 %v1741_v13, %v1741_v13  ;;  %v6382_v11 = vld [vmem:[%s8832_s11] ss:$0 sm:$0xff] }
 0x7d3   :  { %v1696_v16 = vpop.f32.mrf.mxu1  ;;  %v1737_v17 = vpop.f32.mrf.mxu0  ;;  %v6383_v29 = vld [vmem:[%s8833_s12] ss:$0 sm:$0xff] }
 0x7d4   :  { %v1744_v18 = vpack.c.bf16 %v1740_v15, %v1740_v15  ;;  %v1746_v20 = vpack.c.bf16 %v1742_v12, %v1742_v12  ;;  %v6384_v16 = vld [vmem:[%s8823_s2 + $0x3] sm:$0x7] }
 0x7d5   :  { %v2158_v17 = vrot.slane %v6384_v16, %v8088_v31 }
 0x7d6   :  { %2042 = vmatprep.mubr.bf16.mxu1 %v1744_v18  ;;  %2082 = vmatprep.mubr.bf16.mxu0 %v1746_v20  ;;  %v2162_v18 = vrot.slane %v6384_v16, %v8085_v30 }
 0x7d7   :  { %2043 = vmatmul.mubr.bf16.vlgmr.msra.gmra.mxu1 %v1743_v21  ;;  %2083 = vmatmul.mubr.bf16.vlgmr.msra.gmra.mxu0 %v1745_v24 }
 0x7d8   :  { %2330 = vmatprep.mubr.bf16.mxu1 %v7955_v0  ;;  %7088 = vmatprep.mubr.msk.bf16.mxu0 %vm7957_vm0, %v7956_v19 }
 0x7d9   :  { %7073 = vmatpush3.bf16.msra.mxu0 %v7505_v43  ;;  %2299 = vmatpush1.bf16.msra.mxu1 %v7502_v41 }
 0x7da   :  { %7074 = vmatprep.subr.bf16.mxu0 %v7956_v19  ;;  %2300 = vmatprep.subr.bf16.mxu1 %v7508_v44 }
 0x7dd   :  { %7075 = vmatpush3.bf16.msra.mxu0 %v7509_v45  ;;  %2301 = vmatpush1.bf16.msra.mxu1 %v7506_v47 }
 0x7de   :  { %7076 = vmatprep.subr.bf16.mxu0 %v7956_v19  ;;  %2302 = vmatprep.subr.bf16.mxu1 %v7512_v51 }
 0x7e1   :  { %2303 = vmatpush1.bf16.msra.mxu1 %v7510_v52  ;;  %7077 = vmatpush3.bf16.msra.mxu0 %v7513_v53 }
 0x7e2   :  { %7078 = vmatprep.subr.bf16.mxu0 %v7956_v19  ;;  %2304 = vmatprep.subr.bf16.mxu1 %v7516_v55 }
 0x7e5   :  { %2305 = vmatpush1.bf16.msra.mxu1 %v7514_v54  ;;  %7079 = vmatpush3.bf16.msra.mxu0 %v7517_v56 }
 0x7e6   :  { %2306 = vmatprep.subr.bf16.mxu1 %v7520_v57  ;;  %7080 = vmatprep.subr.bf16.mxu0 %v7956_v19 }
 0x7e9   :  { %2307 = vmatpush1.bf16.msra.mxu1 %v7518_v59  ;;  %7081 = vmatpush3.bf16.msra.mxu0 %v7521_v60 }
 0x7ea   :  { %2308 = vmatprep.subr.bf16.mxu1 %v7524_v61  ;;  %7082 = vmatprep.subr.bf16.mxu0 %v7956_v19 }
 0x7ed   :  { %2309 = vmatpush1.bf16.msra.mxu1 %v7522_v58  ;;  %7083 = vmatpush3.bf16.msra.mxu0 %v7525_v63 }
 0x7ee   :  { %2310 = vmatprep.subr.bf16.mxu1 %v7528_v1  ;;  %7084 = vmatprep.subr.bf16.mxu0 %v7956_v19 }
 0x7f1   :  { %2311 = vmatpush1.bf16.msra.mxu1 %v7526_v2  ;;  %7085 = vmatpush3.bf16.msra.mxu0 %v7529_v3 }
 0x7f2   :  { %2312 = vmatprep.subr.bf16.mxu1 %v7532_v4  ;;  %7086 = vmatprep.subr.bf16.mxu0 %v7956_v19 }
 0x7f5   :  { %2313 = vmatpush1.bf16.msra.mxu1 %v7530_v5  ;;  %7087 = vmatpush3.bf16.msra.mxu0 %v7533_v6 }
 0x7f6   :  { %7092 = vmatprep.subr.bf16.mxu1 %v7956_v19  ;;  %7116 = vmatprep.subr.bf16.mxu0 %v7956_v19 }
 0x897   :  { %v6711_v25 = vpop.f32.mrf.mxu1  ;;  %v6733_v27 = vpop.f32.mrf.mxu0 }
 0x899   :  { %v6712_v22 = vpop.f32.mrf.mxu1  ;;  %v6734_v23 = vpop.f32.mrf.mxu0 }
 0x89a   :  { %v6713_v32 = vadd.f32 %v6712_v22, %v6711_v25  ;;  %v6735_v36 = vadd.f32 %v6734_v23, %v6733_v27 }
 0x89b   :  { %v6714_v33 = vpop.f32.mrf.mxu1  ;;  %v6736_v34 = vpop.f32.mrf.mxu0 }
 0x89c   :  { %v2045_v35 = vadd.f32 %v6713_v32, %v6349_v28 }
 0x89d   :  { %v6715_v37 = vpop.f32.mrf.mxu1  ;;  %v6737_v38 = vpop.f32.mrf.mxu0 }
 0x89e   :  { %v2085_v39 = vadd.f32 %v6735_v36, %v2045_v35  ;;  %v2166_v37 = vrot.slane %v6384_v16, %v8115_v46 }
 0x8a0   :  { %v2090_v40 = vadd.f32 %v2085_v39, %v8293_v26 }
 0x8a2   :  { %2093 = vadd.xlane.f32.xlu0 %v2090_v40 }
 0x92b   :  { %v2094_v48 = vpop.xlane.xlu0 %2093 }
 0x92c   :  { %v2095_v49 = vmul.f32 0.0078125, %v2094_v48 }
 0x92e   :  { %v2096_v26 = vsub.f32 %v2090_v40, %v2095_v49 }
 0x930   :  { %v2097_v50 = vmul.f32 %v2096_v26, %v2096_v26 }
 0x932   :  { %2098 = vadd.xlane.f32.xlu0 %v2097_v50 }
 0x9bb   :  { %v2099_v7 = vpop.xlane.xlu0 %2098 }
 0x9bc   :  { %v2100_v8 = vmul.f32 0.0078125, %v2099_v7 }
 0x9be   :  { %v2101_v9 = vadd.f32 1e-05, %v2100_v8 }
 0x9c0   :  { %7784 = vrsqrt.f32 %v2101_v9 }
 0x9cd   :  { %v7785_v10 = vpop.eup %7784 }
 0x9ce   :  { %v2103_v13 = vmul.f32 %v7785_v10, %v2096_v26 }
 0x9d0   :  { %v2110_v14 = vmul.f32 %v6382_v11, %v2103_v13 }
 0x9d2   :  { %v8330_v15 = vadd.f32 %v6383_v29, %v2110_v14 }
 0x9d4   :  { %v2118_v12 = vpack.c.bf16 %v8330_v15, %v8330_v15 }
 0x9d6   :  { %2331 = vmatmul.mubr.bf16.vlgmr.msra.gmra.mxu1 %v2118_v12  ;;  %7089 = vmatmul.mubr.bf16.vlgmr.msra.gmra.mxu0 %v2118_v12 }
 0x9d7   :  { %7094 = vmatprep.mubr.msk.bf16.mxu1 %vm7957_vm0, %v7956_v19  ;;  %7118 = vmatprep.mubr.msk.bf16.mxu0 %vm7957_vm0, %v7956_v19 }
 0xa96   :  { %v2332_v20 = vpop.f32.mrf.mxu1  ;;  %v2373_v21 = vpop.f32.mrf.mxu0 }
 0xa97   :  { %v2333_v24 = vadd.f32 %v2332_v20, %v2158_v17  ;;  %v2374_v38 = vadd.f32 %v2373_v21, %v2166_v37 }
 0xa98   :  { %v2334_v25 = vpop.f32.mrf.mxu1  ;;  %v7090_v27 = vpop.f32.mrf.mxu0 }
 0xa99   :  { %v2379_v28 = vpack.c.bf16 %v2333_v24, %v2333_v24  ;;  %v2335_v22 = vadd.f32 %v2334_v25, %v2162_v18  ;;  %v8363_v39 = vpack.c.bf16 %v2374_v38, %v2374_v38 }
 0xa9a   :  { %v2336_v23 = vpop.f32.mrf.mxu1  ;;  %v2376_v32 = vpop.f32.mrf.mxu0 }
 0xa9b   :  { %v2380_v33 = vpack.c.bf16 %v2335_v22, %v2335_v22  ;;  %2429 = vrot.lane.b32.xlu0 %v2379_v28, %s7959_s16  ;;  %v2884_v57 = vsel %vm872_vm2, %v8363_v39, 0 }
 0xa9c   :  { %v2337_v34 = vpop.f32.mrf.mxu1  ;;  %v7091_v35 = vpop.f32.mrf.mxu0 }
 0xa9d   :  { %2432 = vrot.lane.b32.xlu1 %v2380_v33, %s7959_s16  ;;  %v2386_v36 = vsel %vm369_vm1, %v2380_v33, 0 }
 0xa9e   :  { %7093 = vmatpush3.bf16.xpose.msra.mxu1 %v2386_v36 }
 0xa9f   :  { %2532 = vrot.lane.b32.xlu0 %v2380_v33, %s7960_s17  ;;  %7098 = vmatprep.subr.bf16.mxu1 %v7956_v19 }
 0xaa1   :  { %2482 = vrot.lane.b32.xlu1 %v2380_v33, %s7958_s30 }
 0xaa3   :  { %2582 = vrot.lane.b32.xlu0 %v2380_v33, %s7946_s21 }
 0xaa5   :  { %2480 = vrot.lane.b32.xlu1 %v2379_v28, %s7958_s30  ;;  %7095 = vmatmul.mubr.msk.bf16.vlgmr.msra.gmra.mxu1 %vm369_vm1, %v2379_v28 }
 0xaa6   :  { %7100 = vmatprep.mubr.msk.bf16.mxu1 %vm7957_vm0, %v7956_v19 }
 0xaa7   :  { %2580 = vrot.lane.b32.xlu0 %v2379_v28, %s7946_s21 }
 0xaa9   :  { %2530 = vrot.lane.b32.xlu1 %v2379_v28, %s7960_s17 }
 0xaab   :  { %2682 = vrot.lane.b32.xlu0 %v2380_v33, %s7962_s3 }
 0xaad   :  { %2632 = vrot.lane.b32.xlu1 %v2380_v33, %s7961_s18 }
 0xaaf   :  { %2680 = vrot.lane.b32.xlu0 %v2379_v28, %s7962_s3 }
 0xab1   :  { %2630 = vrot.lane.b32.xlu1 %v2379_v28, %s7961_s18 }
 0xab5   :  { %2732 = vrot.lane.b32.xlu1 %v2380_v33, %s7953_s20 }
 0xab9   :  { %2730 = vrot.lane.b32.xlu1 %v2379_v28, %s7953_s20 }
 0xabd   :  { %2929 = vrot.lane.b32.xlu1 %v8363_v39, %s7959_s16 }
 0xb0d   :  { %v2430_v40 = vpop.permute.xlu0 %2429 }
 0xb0f   :  { %v2433_v41 = vpop.permute.xlu1 %2432 }
 0xb10   :  { %v2438_v42 = vsel %vm369_vm1, %v2433_v41, 0 }
 0xb11   :  { %v2533_v43 = vpop.permute.xlu0 %2532  ;;  %7099 = vmatpush3.bf16.xpose.msra.mxu1 %v2438_v42 }
 0xb12   :  { %7104 = vmatprep.subr.bf16.mxu1 %v7956_v19  ;;  %v2538_v54 = vsel %vm369_vm1, %v2533_v43, 0 }
 0xb13   :  { %v2483_v44 = vpop.permute.xlu1 %2482 }
 0xb14   :  { %v2488_v49 = vsel %vm369_vm1, %v2483_v44, 0 }
 0xb15   :  { %v2583_v45 = vpop.permute.xlu0 %2582 }
 0xb16   :  { %v2588_v47 = vsel %vm369_vm1, %v2583_v45, 0 }
 0xb17   :  { %v2481_v48 = vpop.permute.xlu1 %2480  ;;  %7117 = vmatpush3.bf16.xpose.msra.mxu0 %v2588_v47 }
 0xb18   :  { %7101 = vmatmul.mubr.msk.bf16.vlgmr.msra.gmra.mxu1 %vm369_vm1, %v2430_v40  ;;  %7128 = vmatprep.subr.bf16.mxu0 %v7956_v19 }
 0xb19   :  { %v2581_v26 = vpop.permute.xlu0 %2580  ;;  %7105 = vmatpush3.bf16.xpose.msra.mxu1 %v2488_v49  ;;  %7106 = vmatprep.mubr.msk.bf16.mxu1 %vm7957_vm0, %v7956_v19 }
 0xb1a   :  { %7110 = vmatprep.subr.bf16.mxu1 %v7956_v19 }
 0xb1b   :  { %v2531_v50 = vpop.permute.xlu1 %2530 }
 0xb1d   :  { %v2683_v51 = vpop.permute.xlu0 %2682 }
 0xb1e   :  { %v2688_v52 = vsel %vm369_vm1, %v2683_v51, 0  ;;  %7119 = vmatmul.mubr.msk.bf16.vlgmr.msra.gmra.mxu0 %vm369_vm1, %v2581_v26 }
 0xb1f   :  { %v2633_v53 = vpop.permute.xlu1 %2632  ;;  %7129 = vmatpush3.bf16.xpose.msra.mxu0 %v2688_v52  ;;  %7130 = vmatprep.mubr.msk.bf16.mxu0 %vm7957_vm0, %v7956_v19 }
 0xb20   :  { %7107 = vmatmul.mubr.msk.bf16.vlgmr.msra.gmra.mxu1 %vm369_vm1, %v2481_v48  ;;  %7140 = vmatprep.subr.bf16.mxu0 %v7956_v19  ;;  %v2638_v59 = vsel %vm369_vm1, %v2633_v53, 0 }
 0xb21   :  { %7111 = vmatpush3.bf16.xpose.msra.mxu1 %v2538_v54  ;;  %7112 = vmatprep.mubr.msk.bf16.mxu1 %vm7957_vm0, %v7956_v19  ;;  %v2681_v56 = vpop.permute.xlu0 %2680 }
 0xb22   :  { %7122 = vmatprep.subr.bf16.mxu1 %v7956_v19 }
 0xb23   :  { %v2631_v55 = vpop.permute.xlu1 %2630 }
 0xb26   :  { %7131 = vmatmul.mubr.msk.bf16.vlgmr.msra.gmra.mxu0 %vm369_vm1, %v2681_v56 }
 0xb27   :  { %7141 = vmatpush3.bf16.msra.mxu0 %v2884_v57  ;;  %7142 = vmatprep.mubr.msk.bf16.mxu0 %vm7957_vm0, %v7956_v19  ;;  %v2733_v60 = vpop.permute.xlu1 %2732 }
 0xb28   :  { %7113 = vmatmul.mubr.msk.bf16.vlgmr.msra.gmra.mxu1 %vm369_vm1, %v2531_v50  ;;  %7152 = vmatprep.subr.bf16.mxu0 %v7956_v19  ;;  %v2738_v58 = vsel %vm369_vm1, %v2733_v60, 0 }
 0xb29   :  { %7123 = vmatpush3.bf16.xpose.msra.mxu1 %v2638_v59  ;;  %7124 = vmatprep.mubr.msk.bf16.mxu1 %vm7957_vm0, %v7956_v19 }
 0xb2a   :  { %7134 = vmatprep.subr.bf16.mxu1 %v7956_v19 }
 0xb2b   :  { %v2731_v61 = vpop.permute.xlu1 %2730 }
 0xb2f   :  { %v2930_v63 = vpop.permute.xlu1 %2929 }
 0xb30   :  { %7125 = vmatmul.mubr.msk.bf16.vlgmr.msra.gmra.mxu1 %vm369_vm1, %v2631_v55  ;;  %v2935_v1 = vsel %vm872_vm2, %v2930_v63, 0 }
 0xb31   :  { %7135 = vmatpush3.bf16.xpose.msra.mxu1 %v2738_v58  ;;  %7136 = vmatprep.mubr.msk.bf16.mxu1 %vm7957_vm0, %v7956_v19 }
 0xb32   :  { %7146 = vmatprep.subr.bf16.mxu1 %v7956_v19 }
 0xb38   :  { %7137 = vmatmul.mubr.msk.bf16.vlgmr.msra.gmra.mxu1 %vm369_vm1, %v2731_v61 }
 0xb39   :  { %7147 = vmatpush3.bf16.msra.mxu1 %v2935_v1  ;;  %7148 = vmatprep.mubr.msk.bf16.mxu1 %vm7957_vm0, %v7956_v19 }
 0xb3a   :  { %7158 = vmatprep.subr.bf16.mxu1 %v7956_v19 }
 0xb65   :  { %v2422_v2 = vpop.f32.mrf.mxu1 }
 0xb66   :  { %v2780_v3 = vmul.f32 0.25, %v2422_v2 }
 0xb67   :  { %v7096_v4 = vpop.f32.mrf.mxu1 }
 0xb68   :  { %v2788_v5 = vsel %vm776_vm3, %v2780_v3, -inf }
 0xb69   :  { %2789 = vmax.xlane.f32.xlu0 %v2788_v5  ;;  %v2425_v6 = vpop.f32.mrf.mxu1 }
 0xb6b   :  { %v7097_v7 = vpop.f32.mrf.mxu1 }
 0xbd8   :  { %v2474_v8 = vpop.f32.mrf.mxu1 }
 0xbd9   :  { %v2781_v9 = vmul.f32 0.25, %v2474_v8 }
 0xbda   :  { %v7102_v10 = vpop.f32.mrf.mxu1 }
 0xbdb   :  { %v2791_v11 = vsel %vm776_vm3, %v2781_v9, -inf }
 0xbdc   :  { %2792 = vmax.xlane.f32.xlu1 %v2791_v11  ;;  %v2477_v13 = vpop.f32.mrf.mxu1 }
 0xbde   :  { %v7103_v29 = vpop.f32.mrf.mxu1  ;;  %v2624_v14 = vpop.f32.mrf.mxu0 }
 0xbdf   :  { %v2784_v12 = vmul.f32 0.25, %v2624_v14 }
 0xbe0   :  { %v2524_v16 = vpop.f32.mrf.mxu1  ;;  %v7120_v17 = vpop.f32.mrf.mxu0 }
 0xbe1   :  { %v2782_v18 = vmul.f32 0.25, %v2524_v16  ;;  %v2800_v20 = vsel %vm776_vm3, %v2784_v12, -inf }
 0xbe2   :  { %v2627_v21 = vpop.f32.mrf.mxu0  ;;  %2801 = vmax.xlane.f32.xlu1 %v2800_v20  ;;  %v7108_v24 = vpop.f32.mrf.mxu1 }
 0xbe3   :  { %v2794_v25 = vsel %vm776_vm3, %v2782_v18, -inf }
 0xbe4   :  { %v7121_v27 = vpop.f32.mrf.mxu0  ;;  %2795 = vmax.xlane.f32.xlu0 %v2794_v25  ;;  %v2527_v28 = vpop.f32.mrf.mxu1 }
 0xbe6   :  { %v7109_v22 = vpop.f32.mrf.mxu1  ;;  %v2724_v23 = vpop.f32.mrf.mxu0 }
 0xbe7   :  { %v8411_v32 = vmul.f32 0.25, %v2724_v23 }
 0xbe8   :  { %v2574_v33 = vpop.f32.mrf.mxu1  ;;  %v7132_v34 = vpop.f32.mrf.mxu0 }
 0xbe9   :  { %v2783_v35 = vmul.f32 0.25, %v2574_v33  ;;  %v2806_v36 = vsel %vm776_vm3, %v8411_v32, -inf }
 0xbea   :  { %v2727_v37 = vpop.f32.mrf.mxu0  ;;  %2807 = vmax.xlane.f32.xlu1 %v2806_v36  ;;  %v7114_v38 = vpop.f32.mrf.mxu1 }
 0xbeb   :  { %v2797_v40 = vsel %vm776_vm3, %v2783_v35, -inf }
 0xbec   :  { %v7133_v41 = vpop.f32.mrf.mxu0  ;;  %2798 = vmax.xlane.f32.xlu0 %v2797_v40  ;;  %v2577_v42 = vpop.f32.mrf.mxu1 }
 0xbee   :  { %v7115_v43 = vpop.f32.mrf.mxu1 }
 0xbf0   :  { %v2674_v44 = vpop.f32.mrf.mxu1 }
 0xbf1   :  { %v2785_v45 = vmul.f32 0.25, %v2674_v44 }
 0xbf2   :  { %v7126_v47 = vpop.f32.mrf.mxu1  ;;  %v2790_v56 = vpop.xlane.xlu0 %2789 }
 0xbf3   :  { %v2803_v48 = vsel %vm776_vm3, %v2785_v45, -inf  ;;  %v2812_v57 = vsub.f32 %v2780_v3, %v2790_v56 }
 0xbf4   :  { %2804 = vmax.xlane.f32.xlu0 %v2803_v48  ;;  %v2677_v49 = vpop.f32.mrf.mxu1 }
 0xbf5   :  { %v2820_v59 = vmul.f32 1.442695, %v2812_v57 }
 0xbf6   :  { %v7127_v26 = vpop.f32.mrf.mxu1 }
 0xbf7   :  { %7786 = vpow2.f32 %v2820_v59 }
 0xbf8   :  { %v2774_v50 = vpop.f32.mrf.mxu1 }
 0xbf9   :  { %v2787_v51 = vmul.f32 0.25, %v2774_v50 }
 0xbfa   :  { %v7138_v52 = vpop.f32.mrf.mxu1 }
 0xbfb   :  { %3027 = vrot.lane.b32.xlu1 %v8363_v39, %s7960_s17  ;;  %v2809_v53 = vsel %vm776_vm3, %v2787_v51, -inf }
 0xbfc   :  { %2810 = vmax.xlane.f32.xlu0 %v2809_v53  ;;  %v2777_v54 = vpop.f32.mrf.mxu1 }
 0xbfe   :  { %v7139_v55 = vpop.f32.mrf.mxu1 }
 0xc04   :  { %v8422_v60 = vpop.eup %7786 }
 0xc05   :  { %v2836_v61 = vsel %vm776_vm3, %v8422_v60, 0.0 }
 0xc12   :  { %2977 = vrot.lane.b32.xlu0 %v8363_v39, %s7958_s30 }
 0xc1f   :  { %2837 = vadd.xlane.f32.xlu1 %v2836_v61 }
 0xc65   :  { %v2793_v58 = vpop.xlane.xlu1 %2792 }
 0xc66   :  { %v2813_v63 = vsub.f32 %v2781_v9, %v2793_v58 }
 0xc68   :  { %v2822_v1 = vmul.f32 1.442695, %v2813_v63 }
 0xc6a   :  { %7788 = vpow2.f32 %v2822_v1 }
 0xc6b   :  { %v2802_v2 = vpop.xlane.xlu1 %2801 }
 0xc6c   :  { %v2816_v4 = vsub.f32 %v2784_v12, %v2802_v2 }
 0xc6d   :  { %v2796_v5 = vpop.xlane.xlu0 %2795 }
 0xc6e   :  { %v2828_v6 = vmul.f32 1.442695, %v2816_v4  ;;  %v2814_v3 = vsub.f32 %v2782_v18, %v2796_v5 }
 0xc70   :  { %7790 = vpow2.f32 %v2828_v6  ;;  %v2824_v7 = vmul.f32 1.442695, %v2814_v3 }
 0xc72   :  { %7792 = vpow2.f32 %v2824_v7 }
 0xc73   :  { %v2808_v28 = vpop.xlane.xlu1 %2807 }
 0xc74   :  { %v2818_v22 = vsub.f32 %v8411_v32, %v2808_v28 }
 0xc75   :  { %v2799_v8 = vpop.xlane.xlu0 %2798 }
 0xc76   :  { %v2815_v10 = vsub.f32 %v2783_v35, %v2799_v8  ;;  %v2832_v23 = vmul.f32 1.442695, %v2818_v22 }
 0xc77   :  { %v7789_v11 = vpop.eup %7788  ;;  %v3028_v40 = vpop.permute.xlu1 %3027 }
 0xc78   :  { %v2826_v13 = vmul.f32 1.442695, %v2815_v10  ;;  %v2839_v29 = vsel %vm776_vm3, %v7789_v11, 0.0  ;;  %v3033_v53 = vsel %vm872_vm2, %v3028_v40, 0 }
 0xc79   :  { %2840 = vadd.xlane.f32.xlu0 %v2839_v29 }
 0xc7a   :  { %7794 = vpow2.f32 %v2826_v13 }
 0xc7d   :  { %v8427_v14 = vpop.eup %7790  ;;  %v2805_v9 = vpop.xlane.xlu0 %2804 }
 0xc7e   :  { %v2817_v16 = vsub.f32 %v2785_v45, %v2805_v9  ;;  %v2848_v12 = vsel %vm776_vm3, %v8427_v14, 0.0 }
 0xc7f   :  { %v7793_v17 = vpop.eup %7792  ;;  %2849 = vadd.xlane.f32.xlu1 %v2848_v12 }
 0xc80   :  { %v2830_v18 = vmul.f32 1.442695, %v2817_v16  ;;  %v2842_v20 = vsel %vm776_vm3, %v7793_v17, 0.0 }
 0xc82   :  { %7796 = vpow2.f32 %v2830_v18 }
 0xc83   :  { %2843 = vadd.xlane.f32.xlu1 %v2842_v20  ;;  %7798 = vpow2.f32 %v2832_v23 }
 0xc85   :  { %v2811_v33 = vpop.xlane.xlu0 %2810 }
 0xc86   :  { %v2819_v34 = vsub.f32 %v2787_v51, %v2811_v33 }
 0xc87   :  { %v7795_v21 = vpop.eup %7794 }
 0xc88   :  { %v2845_v24 = vsel %vm776_vm3, %v7795_v21, 0.0  ;;  %v2834_v35 = vmul.f32 1.442695, %v2819_v34 }
 0xc89   :  { %2846 = vadd.xlane.f32.xlu0 %v2845_v24  ;;  %v2978_v41 = vpop.permute.xlu0 %2977 }
 0xc8a   :  { %7800 = vpow2.f32 %v2834_v35  ;;  %v2983_v52 = vsel %vm872_vm2, %v2978_v41, 0  ;;  %v7534_v35 = vld [vmem:[#allocation4 + $0x78] sm:$0xff]  }
 0xc8f   :  { %v8433_v25 = vpop.eup %7796 }
 0xc90   :  { %v2851_v27 = vsel %vm776_vm3, %v8433_v25, 0.0  ;;  %v8442_v36 = vpop.eup %7798 }
 0xc91   :  { %2852 = vadd.xlane.f32.xlu0 %v2851_v27  ;;  %v2854_v37 = vsel %vm776_vm3, %v8442_v36, 0.0 }
 0xc94   :  { %3075 = vrot.lane.b32.xlu1 %v8363_v39, %s7946_s21 }
 0xc97   :  { %v8446_v38 = vpop.eup %7800 }
 0xc98   :  { %v2857_v32 = vsel %vm776_vm3, %v8446_v38, 0.0 }
 0xca7   :  { %3125 = vrot.lane.b32.xlu0 %v8363_v39, %s7961_s18 }
 0xca8   :  { %v2838_v42 = vpop.xlane.xlu1 %2837 }
 0xca9   :  { %7802 = vrcp.f32 %v2838_v42  ;;  %v7536_v42 = vld [vmem:[#allocation4 + $0x68] sm:$0xff]  }
 0xcb6   :  { %v7803_v45 = vpop.eup %7802 }
 0xcb7   :  { %v2868_v49 = vmul.f32 %v7803_v45, %v8422_v60 }
 0xcb8   :  { %2855 = vadd.xlane.f32.xlu1 %v2854_v37  ;;  %v7535_v37 = vld [vmem:[#allocation4 + $0x70] sm:$0xff]  }
 0xcc6   :  { %2858 = vadd.xlane.f32.xlu0 %v2857_v32 }
 0xcc9   :  { %3173 = vrot.lane.b32.xlu1 %v8363_v39, %s7962_s3 }
 0xcdc   :  { %3223 = vrot.lane.b32.xlu0 %v8363_v39, %s7953_s20 }
 0xd02   :  { %v2841_v43 = vpop.xlane.xlu0 %2840 }
 0xd03   :  { %7804 = vrcp.f32 %v2841_v43 }
 0xd08   :  { %v2850_v44 = vpop.xlane.xlu1 %2849 }
 0xd0c   :  { %v2844_v47 = vpop.xlane.xlu1 %2843 }
 0xd0d   :  { %7806 = vrcp.f32 %v2844_v47 }
 0xd10   :  { %v7805_v48 = vpop.eup %7804  ;;  %v3076_v60 = vpop.permute.xlu1 %3075 }
 0xd11   :  { %v2869_v26 = vmul.f32 %v7805_v48, %v7789_v11  ;;  %v3081_v63 = vsel %vm872_vm2, %v3076_v60, 0  ;;  %v7537_v48 = vld [vmem:[#allocation4 + $0x60] sm:$0xff]  }
 0xd12   :  { %v2847_v50 = vpop.xlane.xlu0 %2846 }
 0xd13   :  { %7808 = vrcp.f32 %v2847_v50  ;;  %v2876_v51 = vpack.c.bf16 %v2869_v26, %v2868_v49 }
 0xd14   :  { %7810 = vrcp.f32 %v2850_v44 }
 0xd15   :  { %7143 = vmatmul.mubr.msk.bf16.vlgmr.msra.gmra.mxu0 %vm776_vm3, %v2876_v51  ;;  %v2927_v39 = vrot.slane %v2876_v51, 4 }
 0xd16   :  { %7153 = vmatpush3.bf16.msra.mxu0 %v2983_v52  ;;  %7154 = vmatprep.mubr.msk.bf16.mxu0 %vm7957_vm0, %v7956_v19  ;;  %v7538_v52 = vld [vmem:[#allocation4 + $0x58] sm:$0xff]  }
 0xd17   :  { %7149 = vmatmul.mubr.msk.bf16.vlgmr.msra.gmra.mxu1 %vm776_vm3, %v2927_v39  ;;  %7164 = vmatprep.subr.bf16.mxu0 %v7956_v19 }
 0xd18   :  { %7159 = vmatpush3.bf16.msra.mxu1 %v3033_v53  ;;  %7160 = vmatprep.mubr.msk.bf16.mxu1 %vm7957_vm0, %v7956_v19 }
 0xd19   :  { %7170 = vmatprep.subr.bf16.mxu1 %v7956_v19 }
 0xd1a   :  { %v2853_v54 = vpop.xlane.xlu0 %2852  ;;  %v7807_v55 = vpop.eup %7806 }
 0xd1b   :  { %7812 = vrcp.f32 %v2853_v54  ;;  %v2870_v57 = vmul.f32 %v7807_v55, %v7793_v17  ;;  %v7539_v55 = vld [vmem:[#allocation4 + $0x50] sm:$0xff]  }
 0xd1e   :  { %v3126_v58 = vpop.permute.xlu0 %3125 }
 0xd1f   :  { %v3131_v4 = vsel %vm872_vm2, %v3126_v58, 0 }
 0xd20   :  { %v7809_v56 = vpop.eup %7808 }
 0xd21   :  { %v2871_v59 = vmul.f32 %v7809_v56, %v7795_v21  ;;  %v7811_v2 = vpop.eup %7810  ;;  %v7540_v56 = vld [vmem:[#allocation4 + $0x48] sm:$0xff]  }
 0xd22   :  { %v2872_v6 = vmul.f32 %v7811_v2, %v8427_v14 }
 0xd23   :  { %v2877_v61 = vpack.c.bf16 %v2871_v59, %v2870_v57  ;;  %v7541_v57 = vld [vmem:[#allocation4 + $0x40] sm:$0xff]  }
 0xd25   :  { %7155 = vmatmul.mubr.msk.bf16.vlgmr.msra.gmra.mxu0 %vm776_vm3, %v2877_v61  ;;  %v3026_v1 = vrot.slane %v2877_v61, 4 }
 0xd26   :  { %7165 = vmatpush3.bf16.msra.mxu0 %v3081_v63  ;;  %7166 = vmatprep.mubr.msk.bf16.mxu0 %vm7957_vm0, %v7956_v19 }
 0xd27   :  { %7161 = vmatmul.mubr.msk.bf16.vlgmr.msra.gmra.mxu1 %vm776_vm3, %v3026_v1  ;;  %7176 = vmatprep.subr.bf16.mxu0 %v7956_v19 }
 0xd28   :  { %v7813_v5 = vpop.eup %7812  ;;  %7171 = vmatpush3.bf16.msra.mxu1 %v3131_v4  ;;  %7172 = vmatprep.mubr.msk.bf16.mxu1 %vm7957_vm0, %v7956_v19 }
 0xd29   :  { %v2873_v3 = vmul.f32 %v7813_v5, %v8433_v25  ;;  %7182 = vmatprep.subr.bf16.mxu1 %v7956_v19 }
 0xd2b   :  { %v2878_v7 = vpack.c.bf16 %v2873_v3, %v2872_v6 }
 0xd2d   :  { %7167 = vmatmul.mubr.msk.bf16.vlgmr.msra.gmra.mxu0 %vm776_vm3, %v2878_v7  ;;  %v3124_v8 = vrot.slane %v2878_v7, 4 }
 0xd2e   :  { %7178 = vmatprep.mubr.msk.bf16.mxu0 %vm7957_vm0, %v7956_v19 }
 0xd2f   :  { %7173 = vmatmul.mubr.msk.bf16.vlgmr.msra.gmra.mxu1 %vm776_vm3, %v3124_v8 }
 0xd30   :  { %7184 = vmatprep.mubr.msk.bf16.mxu1 %vm7957_vm0, %v7956_v19 }
 0xd41   :  { %v2856_v10 = vpop.xlane.xlu1 %2855 }
 0xd42   :  { %7814 = vrcp.f32 %v2856_v10 }
 0xd45   :  { %v3174_v11 = vpop.permute.xlu1 %3173 }
 0xd46   :  { %v3179_v13 = vsel %vm872_vm2, %v3174_v11, 0 }
 0xd47   :  { %7177 = vmatpush3.bf16.msra.mxu0 %v3179_v13 }
 0xd48   :  { %7188 = vmatprep.subr.bf16.mxu0 %v7956_v19 }
 0xd4f   :  { %v2859_v29 = vpop.xlane.xlu0 %2858  ;;  %v7815_v16 = vpop.eup %7814 }
 0xd50   :  { %7816 = vrcp.f32 %v2859_v29  ;;  %v2874_v17 = vmul.f32 %v7815_v16, %v8442_v36 }
 0xd53   :  { %v3224_v14 = vpop.permute.xlu0 %3223 }
 0xd54   :  { %v3229_v9 = vsel %vm872_vm2, %v3224_v14, 0 }
 0xd55   :  { %7183 = vmatpush3.bf16.msra.mxu1 %v3229_v9 }
 0xd5d   :  { %v7817_v12 = vpop.eup %7816 }
 0xd5e   :  { %v2875_v18 = vmul.f32 %v7817_v12, %v8446_v38 }
 0xd60   :  { %v2879_v20 = vpack.c.bf16 %v2875_v18, %v2874_v17 }
 0xd62   :  { %7179 = vmatmul.mubr.msk.bf16.vlgmr.msra.gmra.mxu0 %vm776_vm3, %v2879_v20  ;;  %v3222_v21 = vrot.slane %v2879_v20, 4  ;;  %v6426_v20 = vld [vmem:[%s8825_s4 + $0x1] ss:$0 sm:$0xff] }
 0xd63   :  { %7204 = vmatprep.mubr.msk.bf16.mxu0 %vm7957_vm0, %v7956_v19  ;;  %7189 = vmatpush3.bf16.msra.mxu0 %v7534_v35  ;;  %v7547_v35 = vld [vmem:[#allocation6 + $0x1ec] ss:$16 sps:$4 sm:$0xff]  }
 0xd64   :  { %7185 = vmatmul.mubr.msk.bf16.vlgmr.msra.gmra.mxu1 %vm776_vm3, %v3222_v21  ;;  %7190 = vmatprep.subr.bf16.mxu0 %v7956_v19 }
 0xd65   :  { %3699 = vmatprep.mubr.bf16.mxu1 %v7955_v0 }
 0xd67   :  { %7191 = vmatpush3.bf16.msra.mxu0 %v7535_v37  ;;  %v7553_v37 = vld [vmem:[#allocation6 + $0x1cc] ss:$16 sps:$4 sm:$0xff]  }
 0xd68   :  { %7192 = vmatprep.subr.bf16.mxu0 %v7956_v19 }
 0xd6b   :  { %7193 = vmatpush3.bf16.msra.mxu0 %v7536_v42 }
 0xd6c   :  { %7194 = vmatprep.subr.bf16.mxu0 %v7956_v19 }
 0xd6f   :  { %7195 = vmatpush3.bf16.msra.mxu0 %v7537_v48  ;;  %v7560_v48 = vld [vmem:[#allocation6 + $0x180] ss:$16 sps:$4 sm:$0xff]  }
 0xd70   :  { %7196 = vmatprep.subr.bf16.mxu0 %v7956_v19 }
 0xd73   :  { %7197 = vmatpush3.bf16.msra.mxu0 %v7538_v52  ;;  %v7571_v52 = vld [vmem:[#allocation6 + $0x16c] ss:$16 sps:$4 sm:$0xff]  }
 0xd74   :  { %7198 = vmatprep.subr.bf16.mxu0 %v7956_v19 }
 0xd77   :  { %7199 = vmatpush3.bf16.msra.mxu0 %v7539_v55  ;;  %v7577_v55 = vld [vmem:[#allocation6 + $0x14c] ss:$16 sps:$4 sm:$0xff]  }
 0xd78   :  { %7200 = vmatprep.subr.bf16.mxu0 %v7956_v19 }
 0xd7b   :  { %7201 = vmatpush3.bf16.msra.mxu0 %v7540_v56  ;;  %v7572_v56 = vld [vmem:[#allocation6 + $0x140] ss:$16 sps:$4 sm:$0xff]  }
 0xd7c   :  { %7202 = vmatprep.subr.bf16.mxu0 %v7956_v19 }
 0xd7f   :  { %7203 = vmatpush3.bf16.msra.mxu0 %v7541_v57  ;;  %v7575_v57 = vld [vmem:[#allocation6 + $0x148] ss:$16 sps:$4 sm:$0xff]  }
 0xd80   :  { %3708 = vmatprep.subr.bf16.mxu0 %v7547_v35  ;;  %v7605_v35 = vld [vmem:[#allocation7 + $0x1a0] sm:$0xff]  }
 0xdd5   :  { %v8493_v24 = vpop.f32.mrf.mxu0 }
 0xdd7   :  { %v7144_v25 = vpop.f32.mrf.mxu0  ;;  %v2971_v27 = vpop.f32.mrf.mxu1 }
 0xdd8   :  { %3272 = vrot.lane.b32.xlu1 %v2971_v27, %s7953_s20 }
 0xdd9   :  { %v2923_v28 = vpop.f32.mrf.mxu0  ;;  %v7150_v22 = vpop.f32.mrf.mxu1 }
 0xddb   :  { %v7145_v23 = vpop.f32.mrf.mxu0  ;;  %v2974_v33 = vpop.f32.mrf.mxu1 }
 0xddc   :  { %v7542_v23 = vld [vmem:[#allocation6 + $0x1e0] ss:$16 sps:$4 sm:$0xff]   ;;  %v7544_v33 = vld [vmem:[#allocation6 + $0x1e4] ss:$16 sps:$4 sm:$0xff]  }
 0xddd   :  { %v7151_v34 = vpop.f32.mrf.mxu1  ;;  %3667 = vmatprep.subr.bf16.mxu1 %v7544_v33  ;;  %v7603_v33 = vld [vmem:[#allocation7 + $0x1e0] sm:$0xff]  }
 0xdde   :  { %v7545_v34 = vld [vmem:[#allocation6 + $0x1e8] ss:$16 sps:$4 sm:$0xff]   ;;  %3668 = vmatpush1.bf16.msra.mxu1 %v7542_v23  ;;  %v7602_v23 = vld [vmem:[#allocation7 + $0x160] sm:$0xff]  }
 0xde5   :  { %v3019_v36 = vpop.f32.mrf.mxu0 }
 0xde6   :  { %3276 = vrot.lane.b32.xlu0 %v3019_v36, %s7962_s3  ;;  %v7550_v36 = vld [vmem:[#allocation6 + $0x1c4] ss:$16 sps:$4 sm:$0xff]  }
 0xde7   :  { %v7156_v38 = vpop.f32.mrf.mxu0  ;;  %v3069_v32 = vpop.f32.mrf.mxu1  ;;  %3669 = vmatprep.subr.bf16.mxu1 %v7550_v36  ;;  %v7606_v36 = vld [vmem:[#allocation7 + $0x158] sm:$0xff]  }
 0xde8   :  { %3280 = vrot.lane.b32.xlu1 %v3069_v32, %s7961_s18  ;;  %v7548_v38 = vld [vmem:[#allocation6 + $0x1c0] ss:$16 sps:$4 sm:$0xff]   ;;  %v7551_v32 = vld [vmem:[#allocation6 + $0x1c8] ss:$16 sps:$4 sm:$0xff]  }
 0xde9   :  { %v3022_v40 = vpop.f32.mrf.mxu0  ;;  %v7162_v41 = vpop.f32.mrf.mxu1  ;;  %3670 = vmatpush1.bf16.msra.mxu1 %v7548_v38  ;;  %v7608_v38 = vld [vmem:[#allocation7 + $0x118] sm:$0xff]  }
 0xdeb   :  { %v7157_v43 = vpop.f32.mrf.mxu0  ;;  %v3072_v44 = vpop.f32.mrf.mxu1 }
 0xdec   :  { %v7556_v43 = vld [vmem:[#allocation6 + $0x1a4] ss:$16 sps:$4 sm:$0xff]   ;;  %v7559_v44 = vld [vmem:[#allocation6 + $0x1ac] ss:$16 sps:$4 sm:$0xff]  }
 0xded   :  { %v7163_v45 = vpop.f32.mrf.mxu1  ;;  %v3117_v47 = vpop.f32.mrf.mxu0  ;;  %3671 = vmatprep.subr.bf16.mxu1 %v7556_v43  ;;  %v7614_v43 = vld [vmem:[#allocation7 + $0x148] sm:$0xff]  }
 0xdee   :  { %3284 = vrot.lane.b32.xlu0 %v3117_v47, %s7946_s21  ;;  %v7554_v45 = vld [vmem:[#allocation6 + $0x1a0] ss:$16 sps:$4 sm:$0xff]   ;;  %v7557_v47 = vld [vmem:[#allocation6 + $0x1a8] ss:$16 sps:$4 sm:$0xff]  }
 0xdef   :  { %v7168_v49 = vpop.f32.mrf.mxu0  ;;  %v3167_v26 = vpop.f32.mrf.mxu1  ;;  %3672 = vmatpush1.bf16.msra.mxu1 %v7554_v45  ;;  %v7616_v45 = vld [vmem:[#allocation7 + $0x108] sm:$0xff]  }
 0xdf0   :  { %3288 = vrot.lane.b32.xlu1 %v3167_v26, %s7960_s17  ;;  %v7562_v49 = vld [vmem:[#allocation6 + $0x184] ss:$16 sps:$4 sm:$0xff]   ;;  %v7563_v26 = vld [vmem:[#allocation6 + $0x188] ss:$16 sps:$4 sm:$0xff]  }
 0xdf1   :  { %v3120_v50 = vpop.f32.mrf.mxu0  ;;  %v7174_v51 = vpop.f32.mrf.mxu1  ;;  %3673 = vmatprep.subr.bf16.mxu1 %v7562_v49  ;;  %v7619_v49 = vld [vmem:[#allocation7 + $0x1c0] sm:$0xff]  }
 0xdf2   :  { %v7565_v50 = vld [vmem:[#allocation6 + $0x18c] ss:$16 sps:$4 sm:$0xff]   ;;  %v7568_v51 = vld [vmem:[#allocation6 + $0x164] ss:$16 sps:$4 sm:$0xff]  }
 0xdf3   :  { %v7169_v39 = vpop.f32.mrf.mxu0  ;;  %v3170_v53 = vpop.f32.mrf.mxu1  ;;  %3674 = vmatpush1.bf16.msra.mxu1 %v7560_v48  ;;  %v7618_v48 = vld [vmem:[#allocation7 + $0x140] sm:$0xff]  }
 0xdf4   :  { %v7566_v39 = vld [vmem:[#allocation6 + $0x160] ss:$16 sps:$4 sm:$0xff]   ;;  %v7569_v53 = vld [vmem:[#allocation6 + $0x168] ss:$16 sps:$4 sm:$0xff]   ;;  %3675 = vmatprep.subr.bf16.mxu1 %v7568_v51  ;;  %v6439_v51 = vld [vmem:[%s8829_s8 + $0x4] sm:$0xf] }
 0xdf5   :  { %v7175_v54 = vpop.f32.mrf.mxu1 }
 0xdf6   :  { %v7574_v54 = vld [vmem:[#allocation6 + $0x144] ss:$16 sps:$4 sm:$0xff]  }
 0xdf7   :  { %3676 = vmatpush1.bf16.msra.mxu1 %v7566_v39  ;;  %v3498_v39 = vrot.slane %v6439_v51, %v8115_v46 }
 0xdf8   :  { %3677 = vmatprep.subr.bf16.mxu1 %v7574_v54  ;;  %v3502_v54 = vrot.slane %v6439_v51, %v8302_v62 }
 0xdfb   :  { %3678 = vmatpush1.bf16.msra.mxu1 %v7572_v56 }
 0xe22   :  { %v3215_v59 = vpop.f32.mrf.mxu0 }
 0xe23   :  { %3292 = vrot.lane.b32.xlu0 %v3215_v59, %s7958_s30  ;;  %v7580_v59 = vld [vmem:[#allocation6 + $0x124] ss:$16 sps:$4 sm:$0xff]  }
 0xe24   :  { %v7180_v60 = vpop.f32.mrf.mxu0  ;;  %v3265_v61 = vpop.f32.mrf.mxu1  ;;  %3679 = vmatprep.subr.bf16.mxu1 %v7580_v59 }
 0xe25   :  { %3296 = vrot.lane.b32.xlu1 %v3265_v61, %s7959_s16  ;;  %v7583_v60 = vld [vmem:[#allocation6 + $0x12c] ss:$16 sps:$4 sm:$0xff]   ;;  %v7578_v61 = vld [vmem:[#allocation6 + $0x120] ss:$16 sps:$4 sm:$0xff]  }
 0xe26   :  { %v3218_v58 = vpop.f32.mrf.mxu0  ;;  %v7186_v63 = vpop.f32.mrf.mxu1  ;;  %3680 = vmatpush1.bf16.msra.mxu1 %v7578_v61 }
 0xe27   :  { %v7581_v58 = vld [vmem:[#allocation6 + $0x128] ss:$16 sps:$4 sm:$0xff]   ;;  %v7586_v63 = vld [vmem:[#allocation6 + $0x104] ss:$16 sps:$4 sm:$0xff]  }
 0xe28   :  { %v7181_v1 = vpop.f32.mrf.mxu0  ;;  %v3268_v2 = vpop.f32.mrf.mxu1  ;;  %3681 = vmatprep.subr.bf16.mxu1 %v7586_v63 }
 0xe29   :  { %v7589_v1 = vld [vmem:[#allocation6 + $0x10c] ss:$16 sps:$4 sm:$0xff]   ;;  %v7584_v2 = vld [vmem:[#allocation6 + $0x100] ss:$16 sps:$4 sm:$0xff]  }
 0xe2a   :  { %v7187_v4 = vpop.f32.mrf.mxu1  ;;  %3682 = vmatpush1.bf16.msra.mxu1 %v7584_v2 }
 0xe2b   :  { %v7587_v4 = vld [vmem:[#allocation6 + $0x108] ss:$16 sps:$4 sm:$0xff]  }
 0xe4a   :  { %v3273_v5 = vpop.permute.xlu1 %3272 }
 0xe4b   :  { %v3299_v3 = vsel %vm369_vm1, %v8493_v24, %v3273_v5  ;;  %v7590_v5 = vld [vmem:[#allocation7 + $0x178] sm:$0xff]  }
 0xe4c   :  { %6789 = vmatprep.subr.bf16.mxu1 %v7590_v5 }
 0xe58   :  { %v3277_v6 = vpop.permute.xlu0 %3276 }
 0xe59   :  { %v3300_v7 = vsel %vm1290_vm4, %v3299_v3, %v3277_v6  ;;  %v7591_v6 = vld [vmem:[#allocation7 + $0x1f8] sm:$0xff]  }
 0xe5a   :  { %v3281_v8 = vpop.permute.xlu1 %3280 }
 0xe5b   :  { %v3301_v11 = vsel %vm1292_vm5, %v3300_v7, %v3281_v8 }
 0xe60   :  { %v3285_v10 = vpop.permute.xlu0 %3284 }
 0xe61   :  { %v3302_v13 = vsel %vm1294_vm6, %v3301_v11, %v3285_v10  ;;  %v6437_v11 = vld [vmem:[%s8826_s5 + $0x1] ss:$0 sm:$0xff] }
 0xe62   :  { %v3289_v29 = vpop.permute.xlu1 %3288 }
 0xe63   :  { %v3303_v14 = vsel %vm1296_vm7, %v3302_v13, %v3289_v29  ;;  %v6438_v29 = vld [vmem:[%s8827_s6 + $0x1] ss:$0 sm:$0xff] }
 0xe95   :  { %v3293_v9 = vpop.permute.xlu0 %3292 }
 0xe96   :  { %v3304_v16 = vsel %vm1298_vm8, %v3303_v14, %v3293_v9 }
 0xe97   :  { %v3297_v12 = vpop.permute.xlu1 %3296 }
 0xe98   :  { %v3305_v17 = vsel %vm1300_vm9, %v3304_v16, %v3297_v12  ;;  %v7592_v16 = vld [vmem:[#allocation7 + $0x138] sm:$0xff]  }
 0xe99   :  { %v3306_v18 = vpack.c.bf16 %v3305_v17, %v3305_v17  ;;  %v7593_v12 = vld [vmem:[#allocation7 + $0x1b8] sm:$0xff]  }
 0xe9b   :  { %7205 = vmatmul.mubr.bf16.vlgmr.msra.gmra.mxu0 %v3306_v18  ;;  %v7594_v18 = vld [vmem:[#allocation7 + $0x170] sm:$0xff]  }
 0xe9c   :  { %3740 = vmatprep.mubr.bf16.mxu0 %v7955_v0  ;;  %3709 = vmatpush1.bf16.msra.mxu0 %v7545_v34  ;;  %v7604_v34 = vld [vmem:[#allocation7 + $0x120] sm:$0xff]  }
 0xe9d   :  { %3710 = vmatprep.subr.bf16.mxu0 %v7553_v37  ;;  %v7607_v37 = vld [vmem:[#allocation7 + $0x1d8] sm:$0xff]  }
 0xea0   :  { %3711 = vmatpush1.bf16.msra.mxu0 %v7551_v32  ;;  %v7609_v32 = vld [vmem:[#allocation7 + $0x198] sm:$0xff]  }
 0xea1   :  { %3712 = vmatprep.subr.bf16.mxu0 %v7559_v44  ;;  %v7615_v44 = vld [vmem:[#allocation7 + $0x1c8] sm:$0xff]  }
 0xea4   :  { %3713 = vmatpush1.bf16.msra.mxu0 %v7557_v47  ;;  %v7617_v47 = vld [vmem:[#allocation7 + $0x188] sm:$0xff]  }
 0xea5   :  { %3714 = vmatprep.subr.bf16.mxu0 %v7565_v50  ;;  %v7621_v50 = vld [vmem:[#allocation7 + $0x180] sm:$0xff]  }
 0xea8   :  { %3715 = vmatpush1.bf16.msra.mxu0 %v7563_v26  ;;  %v7620_v26 = vld [vmem:[#allocation7 + $0x100] sm:$0xff]  }
 0xea9   :  { %3716 = vmatprep.subr.bf16.mxu0 %v7571_v52  ;;  %v3490_v52 = vrot.slane %v6439_v51, %v8088_v31 }
 0xeac   :  { %3717 = vmatpush1.bf16.msra.mxu0 %v7569_v53  ;;  %v3494_v53 = vrot.slane %v6439_v51, %v8085_v30  ;;  %v7644_v51 = vld [vmem:[#allocation2 + $0x1b4] ss:$12 sps:$4 sm:$0xff]  }
 0xead   :  { %3718 = vmatprep.subr.bf16.mxu0 %v7577_v55 }
 0xeb0   :  { %3719 = vmatpush1.bf16.msra.mxu0 %v7575_v57 }
 0xeb1   :  { %3720 = vmatprep.subr.bf16.mxu0 %v7583_v60 }
 0xeb4   :  { %3721 = vmatpush1.bf16.msra.mxu0 %v7581_v58 }
 0xeb5   :  { %3722 = vmatprep.subr.bf16.mxu0 %v7589_v1 }
 0xeb8   :  { %3723 = vmatpush1.bf16.msra.mxu0 %v7587_v4 }
 0xeb9   :  { %6811 = vmatprep.subr.bf16.mxu0 %v7591_v6 }
 0xf5b   :  { %v3414_v21 = vpop.f32.mrf.mxu0 }
 0xf5c   :  { %v3415_v24 = vadd.f32 %v6426_v20, %v3414_v21  ;;  %v7595_v20 = vld [vmem:[#allocation7 + $0x1f0] sm:$0xff]  }
 0xf5d   :  { %v7206_v25 = vpop.f32.mrf.mxu0  ;;  %v7596_v21 = vld [vmem:[#allocation7 + $0x130] sm:$0xff]  }
 0xf5e   :  { %v3420_v27 = vadd.f32 %v3415_v24, %v8330_v15  ;;  %v7597_v24 = vld [vmem:[#allocation7 + $0x1b0] sm:$0xff]   ;;  %v7598_v25 = vld [vmem:[#allocation7 + $0x168] sm:$0xff]  }
 0xf5f   :  { %v3417_v28 = vpop.f32.mrf.mxu0 }
 0xf60   :  { %3425 = vadd.xlane.f32.xlu0 %v3420_v27  ;;  %v7600_v28 = vld [vmem:[#allocation7 + $0x128] sm:$0xff]  }
 0xf61   :  { %v7207_v22 = vpop.f32.mrf.mxu0 }
 0xf62   :  { %v7601_v22 = vld [vmem:[#allocation7 + $0x1a8] sm:$0xff]  }
 0xfe9   :  { %v3426_v15 = vpop.xlane.xlu0 %3425 }
 0xfea   :  { %v3427_v40 = vmul.f32 0.0078125, %v3426_v15  ;;  %v7610_v15 = vld [vmem:[#allocation7 + $0x150] sm:$0xff]  }
 0xfec   :  { %v3428_v41 = vsub.f32 %v3420_v27, %v3427_v40  ;;  %v7599_v27 = vld [vmem:[#allocation7 + $0x1e8] sm:$0xff]   ;;  %v7611_v40 = vld [vmem:[#allocation7 + $0x1d0] sm:$0xff]  }
 0xfee   :  { %v3429_v42 = vmul.f32 %v3428_v41, %v3428_v41 }
 0xff0   :  { %3430 = vadd.xlane.f32.xlu1 %v3429_v42  ;;  %v7613_v42 = vld [vmem:[#allocation7 + $0x190] sm:$0xff]  }
0x1079   :  { %v3431_v3 = vpop.xlane.xlu1 %3430 }
0x107a   :  { %v3432_v7 = vmul.f32 0.0078125, %v3431_v3 }
0x107c   :  { %v3433_v8 = vadd.f32 1e-05, %v3432_v7 }
0x107e   :  { %7818 = vrsqrt.f32 %v3433_v8 }
0x108b   :  { %v7819_v10 = vpop.eup %7818 }
0x108c   :  { %v3435_v13 = vmul.f32 %v7819_v10, %v3428_v41  ;;  %v7612_v41 = vld [vmem:[#allocation7 + $0x110] sm:$0xff]  }
0x108e   :  { %v3442_v14 = vmul.f32 %v6437_v11, %v3435_v13 }
0x1090   :  { %v8528_v9 = vadd.f32 %v6438_v29, %v3442_v14 }
0x1092   :  { %v3450_v17 = vpack.c.bf16 %v8528_v9, %v8528_v9 }
0x1094   :  { %3700 = vmatmul.mubr.bf16.vlgmr.msra.gmra.mxu1 %v3450_v17  ;;  %3741 = vmatmul.mubr.bf16.vlgmr.msra.gmra.mxu0 %v3450_v17 }
0x1095   :  { %6790 = vmatpush3.bf16.msra.mxu1 %v7592_v16  ;;  %6812 = vmatpush3.bf16.msra.mxu0 %v7593_v12  ;;  %v6473_v12 = vld [vmem:[%s8831_s10 + $0x1] ss:$0 sm:$0xff] }
0x1096   :  { %6791 = vmatprep.subr.bf16.mxu1 %v7594_v18  ;;  %6813 = vmatprep.subr.bf16.mxu0 %v7595_v20 }
0x1099   :  { %6792 = vmatpush3.bf16.msra.mxu1 %v7596_v21  ;;  %6814 = vmatpush3.bf16.msra.mxu0 %v7597_v24 }
0x109a   :  { %6793 = vmatprep.subr.bf16.mxu1 %v7598_v25  ;;  %6815 = vmatprep.subr.bf16.mxu0 %v7599_v27 }
0x109d   :  { %6794 = vmatpush3.bf16.msra.mxu1 %v7600_v28  ;;  %6816 = vmatpush3.bf16.msra.mxu0 %v7601_v22 }
0x109e   :  { %6795 = vmatprep.subr.bf16.mxu1 %v7602_v23  ;;  %6817 = vmatprep.subr.bf16.mxu0 %v7603_v33 }
0x10a1   :  { %6796 = vmatpush3.bf16.msra.mxu1 %v7604_v34  ;;  %6818 = vmatpush3.bf16.msra.mxu0 %v7605_v35  ;;  %v7622_v34 = vld [vmem:[#allocation2 + $0x228] ss:$12 sps:$4 sm:$0xff]   ;;  %v7624_v35 = vld [vmem:[#allocation2 + $0x22c] ss:$12 sps:$4 sm:$0xff]  }
0x10a2   :  { %6797 = vmatprep.subr.bf16.mxu1 %v7606_v36  ;;  %6819 = vmatprep.subr.bf16.mxu0 %v7607_v37  ;;  %v7625_v36 = vld [vmem:[#allocation2 + $0x230] ss:$12 sps:$4 sm:$0xff]   ;;  %v7628_v37 = vld [vmem:[#allocation2 + $0x214] ss:$12 sps:$4 sm:$0xff]  }
0x10a5   :  { %6798 = vmatpush3.bf16.msra.mxu1 %v7608_v38  ;;  %6820 = vmatpush3.bf16.msra.mxu0 %v7609_v32  ;;  %v7629_v38 = vld [vmem:[#allocation2 + $0x218] ss:$12 sps:$4 sm:$0xff]   ;;  %v7626_v32 = vld [vmem:[#allocation2 + $0x210] ss:$12 sps:$4 sm:$0xff]  }
0x10a6   :  { %6799 = vmatprep.subr.bf16.mxu1 %v7610_v15  ;;  %6821 = vmatprep.subr.bf16.mxu0 %v7611_v40 }
0x10a9   :  { %6800 = vmatpush3.bf16.msra.mxu1 %v7612_v41  ;;  %6822 = vmatpush3.bf16.msra.mxu0 %v7613_v42  ;;  %v7632_v42 = vld [vmem:[#allocation2 + $0x1fc] ss:$12 sps:$4 sm:$0xff]  }
0x10aa   :  { %6801 = vmatprep.subr.bf16.mxu1 %v7614_v43  ;;  %6823 = vmatprep.subr.bf16.mxu0 %v7615_v44  ;;  %v7630_v43 = vld [vmem:[#allocation2 + $0x1f8] ss:$12 sps:$4 sm:$0xff]   ;;  %v7633_v44 = vld [vmem:[#allocation2 + $0x200] ss:$12 sps:$4 sm:$0xff]  }
0x10ad   :  { %6802 = vmatpush3.bf16.msra.mxu1 %v7616_v45  ;;  %6824 = vmatpush3.bf16.msra.mxu0 %v7617_v47  ;;  %v7634_v45 = vld [vmem:[#allocation2 + $0x1e0] ss:$12 sps:$4 sm:$0xff]   ;;  %v7636_v47 = vld [vmem:[#allocation2 + $0x1e4] ss:$12 sps:$4 sm:$0xff]  }
0x10ae   :  { %6803 = vmatprep.subr.bf16.mxu1 %v7618_v48  ;;  %6825 = vmatprep.subr.bf16.mxu0 %v7619_v49  ;;  %v7637_v48 = vld [vmem:[#allocation2 + $0x1e8] ss:$12 sps:$4 sm:$0xff]   ;;  %v7640_v49 = vld [vmem:[#allocation2 + $0x1cc] ss:$12 sps:$4 sm:$0xff]  }
0x10b1   :  { %6804 = vmatpush3.bf16.msra.mxu1 %v7620_v26  ;;  %6826 = vmatpush3.bf16.msra.mxu0 %v7621_v50  ;;  %v7638_v26 = vld [vmem:[#allocation2 + $0x1c8] ss:$12 sps:$4 sm:$0xff]   ;;  %v7641_v50 = vld [vmem:[#allocation2 + $0x1d0] ss:$12 sps:$4 sm:$0xff]  }
0x10b2   :  { %7208 = vmatprep.subr.bf16.mxu0 %v7956_v19  ;;  %4312 = vmatprep.subr.bf16.mxu1 %v7624_v35 }
0x1154   :  { %v3701_v55 = vpop.f32.mrf.mxu1  ;;  %v3742_v56 = vpop.f32.mrf.mxu0 }
0x1155   :  { %v3702_v57 = vadd.f32 %v3701_v55, %v3490_v52  ;;  %v3743_v59 = vadd.f32 %v3742_v56, %v3498_v39  ;;  %v7642_v52 = vld [vmem:[#allocation2 + $0x1b0] ss:$12 sps:$4 sm:$0xff]   ;;  %v7645_v39 = vld [vmem:[#allocation2 + $0x1b8] ss:$12 sps:$4 sm:$0xff]   ;;  %v7649_v55 = vld [vmem:[#allocation2 + $0x1a0] ss:$12 sps:$4 sm:$0xff]  }
0x1156   :  { %v3703_v60 = vpop.f32.mrf.mxu1  ;;  %v3744_v61 = vpop.f32.mrf.mxu0  ;;  %v7652_v56 = vld [vmem:[#allocation2 + $0x184] ss:$12 sps:$4 sm:$0xff]  }
0x1157   :  { %v3704_v58 = vadd.f32 %v3703_v60, %v3494_v53  ;;  %v3745_v63 = vadd.f32 %v3744_v61, %v3502_v54  ;;  %v3749_v1 = vmax.f32 %v3702_v57, 0.0  ;;  %v3751_v2 = vmax.f32 %v3743_v59, 0.0  ;;  %v7648_v53 = vld [vmem:[#allocation2 + $0x19c] ss:$12 sps:$4 sm:$0xff]   ;;  %v7646_v54 = vld [vmem:[#allocation2 + $0x198] ss:$12 sps:$4 sm:$0xff]  }
0x1158   :  { %v3705_v4 = vpop.f32.mrf.mxu1  ;;  %v3746_v5 = vpop.f32.mrf.mxu0  ;;  %v7650_v57 = vld [vmem:[#allocation2 + $0x180] ss:$12 sps:$4 sm:$0xff]   ;;  %v7653_v59 = vld [vmem:[#allocation2 + $0x188] ss:$12 sps:$4 sm:$0xff]  }
0x1159   :  { %v3750_v6 = vmax.f32 %v3704_v58, 0.0  ;;  %v3752_v3 = vmax.f32 %v3745_v63, 0.0  ;;  %v3753_v13 = vpack.c.bf16 %v3749_v1, %v3749_v1  ;;  %v3755_v29 = vpack.c.bf16 %v3751_v2, %v3751_v2  ;;  %v6508_v1 = vld [vmem:[%s8832_s11 + $0x1] ss:$0 sm:$0xff] }
0x115a   :  { %v3706_v7 = vpop.f32.mrf.mxu1  ;;  %v3747_v8 = vpop.f32.mrf.mxu0  ;;  %v6509_v4 = vld [vmem:[%s8833_s12 + $0x1] ss:$0 sm:$0xff] }
0x115b   :  { %v3754_v10 = vpack.c.bf16 %v3750_v6, %v3750_v6  ;;  %v3756_v11 = vpack.c.bf16 %v3752_v3, %v3752_v3  ;;  %v6510_v7 = vld [vmem:[%s8823_s2 + $0x6] sm:$0x7] }
0x115c   :  { %v4172_v8 = vrot.slane %v6510_v7, %v8088_v31 }
0x115d   :  { %4054 = vmatprep.mubr.bf16.mxu1 %v3754_v10  ;;  %4094 = vmatprep.mubr.bf16.mxu0 %v3756_v11  ;;  %v4176_v10 = vrot.slane %v6510_v7, %v8085_v30 }
0x115e   :  { %4055 = vmatmul.mubr.bf16.vlgmr.msra.gmra.mxu1 %v3753_v13  ;;  %4095 = vmatmul.mubr.bf16.vlgmr.msra.gmra.mxu0 %v3755_v29 }
0x115f   :  { %4344 = vmatprep.mubr.bf16.mxu1 %v7955_v0  ;;  %7224 = vmatprep.mubr.msk.bf16.mxu0 %vm7957_vm0, %v7956_v19 }
0x1160   :  { %7209 = vmatpush3.bf16.msra.mxu0 %v7625_v36  ;;  %4313 = vmatpush1.bf16.msra.mxu1 %v7622_v34 }
0x1161   :  { %7210 = vmatprep.subr.bf16.mxu0 %v7956_v19  ;;  %4314 = vmatprep.subr.bf16.mxu1 %v7628_v37 }
0x1164   :  { %7211 = vmatpush3.bf16.msra.mxu0 %v7629_v38  ;;  %4315 = vmatpush1.bf16.msra.mxu1 %v7626_v32 }
0x1165   :  { %7212 = vmatprep.subr.bf16.mxu0 %v7956_v19  ;;  %4316 = vmatprep.subr.bf16.mxu1 %v7632_v42 }
0x1168   :  { %4317 = vmatpush1.bf16.msra.mxu1 %v7630_v43  ;;  %7213 = vmatpush3.bf16.msra.mxu0 %v7633_v44 }
0x1169   :  { %7214 = vmatprep.subr.bf16.mxu0 %v7956_v19  ;;  %4318 = vmatprep.subr.bf16.mxu1 %v7636_v47 }
0x116c   :  { %4319 = vmatpush1.bf16.msra.mxu1 %v7634_v45  ;;  %7215 = vmatpush3.bf16.msra.mxu0 %v7637_v48 }
0x116d   :  { %4320 = vmatprep.subr.bf16.mxu1 %v7640_v49  ;;  %7216 = vmatprep.subr.bf16.mxu0 %v7956_v19 }
0x1170   :  { %4321 = vmatpush1.bf16.msra.mxu1 %v7638_v26  ;;  %7217 = vmatpush3.bf16.msra.mxu0 %v7641_v50 }
0x1171   :  { %4322 = vmatprep.subr.bf16.mxu1 %v7644_v51  ;;  %7218 = vmatprep.subr.bf16.mxu0 %v7956_v19 }
0x1174   :  { %4323 = vmatpush1.bf16.msra.mxu1 %v7642_v52  ;;  %7219 = vmatpush3.bf16.msra.mxu0 %v7645_v39 }
0x1175   :  { %4324 = vmatprep.subr.bf16.mxu1 %v7648_v53  ;;  %7220 = vmatprep.subr.bf16.mxu0 %v7956_v19 }
0x1178   :  { %4325 = vmatpush1.bf16.msra.mxu1 %v7646_v54  ;;  %7221 = vmatpush3.bf16.msra.mxu0 %v7649_v55 }
0x1179   :  { %4326 = vmatprep.subr.bf16.mxu1 %v7652_v56  ;;  %7222 = vmatprep.subr.bf16.mxu0 %v7956_v19 }
0x117c   :  { %4327 = vmatpush1.bf16.msra.mxu1 %v7650_v57  ;;  %7223 = vmatpush3.bf16.msra.mxu0 %v7653_v59 }
0x117d   :  { %7228 = vmatprep.subr.bf16.mxu1 %v7956_v19  ;;  %7252 = vmatprep.subr.bf16.mxu0 %v7956_v19 }
0x121e   :  { %v6805_v14 = vpop.f32.mrf.mxu1  ;;  %v6827_v16 = vpop.f32.mrf.mxu0 }
0x1220   :  { %v6806_v17 = vpop.f32.mrf.mxu1  ;;  %v6828_v18 = vpop.f32.mrf.mxu0 }
0x1221   :  { %v6807_v20 = vadd.f32 %v6806_v17, %v6805_v14  ;;  %v6829_v27 = vadd.f32 %v6828_v18, %v6827_v16 }
0x1222   :  { %v6808_v21 = vpop.f32.mrf.mxu1  ;;  %v6830_v24 = vpop.f32.mrf.mxu0 }
0x1223   :  { %v4057_v25 = vadd.f32 %v6807_v20, %v6473_v12 }
0x1224   :  { %v6809_v28 = vpop.f32.mrf.mxu1  ;;  %v6831_v22 = vpop.f32.mrf.mxu0 }
0x1225   :  { %v4097_v23 = vadd.f32 %v6829_v27, %v4057_v25  ;;  %v4180_v28 = vrot.slane %v6510_v7, %v8115_v46 }
0x1227   :  { %v4102_v33 = vadd.f32 %v4097_v23, %v8528_v9 }
0x1229   :  { %4107 = vadd.xlane.f32.xlu0 %v4102_v33 }
0x12b2   :  { %v4108_v15 = vpop.xlane.xlu0 %4107 }
0x12b3   :  { %v4109_v40 = vmul.f32 0.0078125, %v4108_v15 }
0x12b5   :  { %v4110_v9 = vsub.f32 %v4102_v33, %v4109_v40 }
0x12b7   :  { %v4111_v41 = vmul.f32 %v4110_v9, %v4110_v9 }
0x12b9   :  { %4112 = vadd.xlane.f32.xlu0 %v4111_v41 }
0x1342   :  { %v4113_v60 = vpop.xlane.xlu0 %4112 }
0x1343   :  { %v4114_v61 = vmul.f32 0.0078125, %v4113_v60 }
0x1345   :  { %v4115_v58 = vadd.f32 1e-05, %v4114_v61 }
0x1347   :  { %7820 = vrsqrt.f32 %v4115_v58 }
0x1354   :  { %v7821_v63 = vpop.eup %7820 }
0x1355   :  { %v4117_v2 = vmul.f32 %v7821_v63, %v4110_v9 }
0x1357   :  { %v4124_v5 = vmul.f32 %v6508_v1, %v4117_v2 }
0x1359   :  { %v8562_v6 = vadd.f32 %v6509_v4, %v4124_v5 }
0x135b   :  { %v4132_v3 = vpack.c.bf16 %v8562_v6, %v8562_v6 }
0x135d   :  { %4345 = vmatmul.mubr.bf16.vlgmr.msra.gmra.mxu1 %v4132_v3  ;;  %7225 = vmatmul.mubr.bf16.vlgmr.msra.gmra.mxu0 %v4132_v3 }
0x135e   :  { %7230 = vmatprep.mubr.msk.bf16.mxu1 %vm7957_vm0, %v7956_v19  ;;  %7254 = vmatprep.mubr.msk.bf16.mxu0 %vm7957_vm0, %v7956_v19 }
0x141d   :  { %v4346_v11 = vpop.f32.mrf.mxu1  ;;  %v4387_v13 = vpop.f32.mrf.mxu0 }
0x141e   :  { %v4347_v29 = vadd.f32 %v4346_v11, %v4172_v8  ;;  %v4388_v22 = vadd.f32 %v4387_v13, %v4180_v28 }
0x141f   :  { %v4348_v14 = vpop.f32.mrf.mxu1  ;;  %v7226_v16 = vpop.f32.mrf.mxu0 }
0x1420   :  { %v4393_v12 = vpack.c.bf16 %v4347_v29, %v4347_v29  ;;  %v4349_v17 = vadd.f32 %v4348_v14, %v4176_v10  ;;  %v8595_v23 = vpack.c.bf16 %v4388_v22, %v4388_v22 }
0x1421   :  { %v4350_v18 = vpop.f32.mrf.mxu1  ;;  %v4390_v20 = vpop.f32.mrf.mxu0 }
0x1422   :  { %v4394_v21 = vpack.c.bf16 %v4349_v17, %v4349_v17  ;;  %4443 = vrot.lane.b32.xlu0 %v4393_v12, %s7959_s16  ;;  %v4898_v49 = vsel %vm872_vm2, %v8595_v23, 0 }
0x1423   :  { %v4351_v24 = vpop.f32.mrf.mxu1  ;;  %v7227_v25 = vpop.f32.mrf.mxu0 }
0x1424   :  { %4446 = vrot.lane.b32.xlu1 %v4394_v21, %s7959_s16  ;;  %v4400_v27 = vsel %vm369_vm1, %v4394_v21, 0 }
0x1425   :  { %7229 = vmatpush3.bf16.xpose.msra.mxu1 %v4400_v27 }
0x1426   :  { %4546 = vrot.lane.b32.xlu0 %v4394_v21, %s7960_s17  ;;  %7234 = vmatprep.subr.bf16.mxu1 %v7956_v19 }
0x1428   :  { %4496 = vrot.lane.b32.xlu1 %v4394_v21, %s7958_s30 }
0x142a   :  { %4596 = vrot.lane.b32.xlu0 %v4394_v21, %s7946_s21 }
0x142c   :  { %4494 = vrot.lane.b32.xlu1 %v4393_v12, %s7958_s30  ;;  %7231 = vmatmul.mubr.msk.bf16.vlgmr.msra.gmra.mxu1 %vm369_vm1, %v4393_v12 }
0x142d   :  { %7236 = vmatprep.mubr.msk.bf16.mxu1 %vm7957_vm0, %v7956_v19 }
0x142e   :  { %4594 = vrot.lane.b32.xlu0 %v4393_v12, %s7946_s21 }
0x1430   :  { %4544 = vrot.lane.b32.xlu1 %v4393_v12, %s7960_s17 }
0x1432   :  { %4696 = vrot.lane.b32.xlu0 %v4394_v21, %s7962_s3 }
0x1434   :  { %4646 = vrot.lane.b32.xlu1 %v4394_v21, %s7961_s18 }
0x1436   :  { %4694 = vrot.lane.b32.xlu0 %v4393_v12, %s7962_s3 }
0x1438   :  { %4644 = vrot.lane.b32.xlu1 %v4393_v12, %s7961_s18 }
0x143c   :  { %4746 = vrot.lane.b32.xlu1 %v4394_v21, %s7953_s20 }
0x1440   :  { %4744 = vrot.lane.b32.xlu1 %v4393_v12, %s7953_s20 }
0x1444   :  { %4943 = vrot.lane.b32.xlu1 %v8595_v23, %s7959_s16 }
0x1494   :  { %v4444_v33 = vpop.permute.xlu0 %4443 }
0x1496   :  { %v4447_v34 = vpop.permute.xlu1 %4446 }
0x1497   :  { %v4452_v35 = vsel %vm369_vm1, %v4447_v34, 0 }
0x1498   :  { %v4547_v36 = vpop.permute.xlu0 %4546  ;;  %7235 = vmatpush3.bf16.xpose.msra.mxu1 %v4452_v35 }
0x1499   :  { %7240 = vmatprep.subr.bf16.mxu1 %v7956_v19  ;;  %v4552_v45 = vsel %vm369_vm1, %v4547_v36, 0 }
0x149a   :  { %v4497_v37 = vpop.permute.xlu1 %4496 }
0x149b   :  { %v4502_v40 = vsel %vm369_vm1, %v4497_v37, 0 }
0x149c   :  { %v4597_v38 = vpop.permute.xlu0 %4596 }
0x149d   :  { %v4602_v32 = vsel %vm369_vm1, %v4597_v38, 0 }
0x149e   :  { %v4495_v15 = vpop.permute.xlu1 %4494  ;;  %7253 = vmatpush3.bf16.xpose.msra.mxu0 %v4602_v32 }
0x149f   :  { %7237 = vmatmul.mubr.msk.bf16.vlgmr.msra.gmra.mxu1 %vm369_vm1, %v4444_v33  ;;  %7264 = vmatprep.subr.bf16.mxu0 %v7956_v19 }
0x14a0   :  { %v4595_v9 = vpop.permute.xlu0 %4594  ;;  %7241 = vmatpush3.bf16.xpose.msra.mxu1 %v4502_v40  ;;  %7242 = vmatprep.mubr.msk.bf16.mxu1 %vm7957_vm0, %v7956_v19 }
0x14a1   :  { %7246 = vmatprep.subr.bf16.mxu1 %v7956_v19 }
0x14a2   :  { %v4545_v41 = vpop.permute.xlu1 %4544 }
0x14a4   :  { %v4697_v42 = vpop.permute.xlu0 %4696 }
0x14a5   :  { %v4702_v43 = vsel %vm369_vm1, %v4697_v42, 0  ;;  %7255 = vmatmul.mubr.msk.bf16.vlgmr.msra.gmra.mxu0 %vm369_vm1, %v4595_v9 }
0x14a6   :  { %v4647_v44 = vpop.permute.xlu1 %4646  ;;  %7265 = vmatpush3.bf16.xpose.msra.mxu0 %v4702_v43  ;;  %7266 = vmatprep.mubr.msk.bf16.mxu0 %vm7957_vm0, %v7956_v19 }
0x14a7   :  { %7243 = vmatmul.mubr.msk.bf16.vlgmr.msra.gmra.mxu1 %vm369_vm1, %v4495_v15  ;;  %7276 = vmatprep.subr.bf16.mxu0 %v7956_v19  ;;  %v4652_v26 = vsel %vm369_vm1, %v4647_v44, 0 }
0x14a8   :  { %7247 = vmatpush3.bf16.xpose.msra.mxu1 %v4552_v45  ;;  %7248 = vmatprep.mubr.msk.bf16.mxu1 %vm7957_vm0, %v7956_v19  ;;  %v4695_v48 = vpop.permute.xlu0 %4694 }
0x14a9   :  { %7258 = vmatprep.subr.bf16.mxu1 %v7956_v19 }
0x14aa   :  { %v4645_v47 = vpop.permute.xlu1 %4644 }
0x14ad   :  { %7267 = vmatmul.mubr.msk.bf16.vlgmr.msra.gmra.mxu0 %vm369_vm1, %v4695_v48 }
0x14ae   :  { %7277 = vmatpush3.bf16.msra.mxu0 %v4898_v49  ;;  %7278 = vmatprep.mubr.msk.bf16.mxu0 %vm7957_vm0, %v7956_v19  ;;  %v4747_v50 = vpop.permute.xlu1 %4746 }
0x14af   :  { %7249 = vmatmul.mubr.msk.bf16.vlgmr.msra.gmra.mxu1 %vm369_vm1, %v4545_v41  ;;  %7288 = vmatprep.subr.bf16.mxu0 %v7956_v19  ;;  %v4752_v52 = vsel %vm369_vm1, %v4747_v50, 0 }
0x14b0   :  { %7259 = vmatpush3.bf16.xpose.msra.mxu1 %v4652_v26  ;;  %7260 = vmatprep.mubr.msk.bf16.mxu1 %vm7957_vm0, %v7956_v19 }
0x14b1   :  { %7270 = vmatprep.subr.bf16.mxu1 %v7956_v19 }
0x14b2   :  { %v4745_v51 = vpop.permute.xlu1 %4744 }
0x14b6   :  { %v4944_v39 = vpop.permute.xlu1 %4943 }
0x14b7   :  { %7261 = vmatmul.mubr.msk.bf16.vlgmr.msra.gmra.mxu1 %vm369_vm1, %v4645_v47  ;;  %v4949_v53 = vsel %vm872_vm2, %v4944_v39, 0 }
0x14b8   :  { %7271 = vmatpush3.bf16.xpose.msra.mxu1 %v4752_v52  ;;  %7272 = vmatprep.mubr.msk.bf16.mxu1 %vm7957_vm0, %v7956_v19 }
0x14b9   :  { %7282 = vmatprep.subr.bf16.mxu1 %v7956_v19 }
0x14bf   :  { %7273 = vmatmul.mubr.msk.bf16.vlgmr.msra.gmra.mxu1 %vm369_vm1, %v4745_v51 }
0x14c0   :  { %7283 = vmatpush3.bf16.msra.mxu1 %v4949_v53  ;;  %7284 = vmatprep.mubr.msk.bf16.mxu1 %vm7957_vm0, %v7956_v19 }
0x14c1   :  { %7294 = vmatprep.subr.bf16.mxu1 %v7956_v19 }
0x14ec   :  { %v4436_v54 = vpop.f32.mrf.mxu1 }
0x14ed   :  { %v4794_v55 = vmul.f32 0.25, %v4436_v54 }
0x14ee   :  { %v7232_v56 = vpop.f32.mrf.mxu1 }
0x14ef   :  { %v4802_v57 = vsel %vm776_vm3, %v4794_v55, -inf }
0x14f0   :  { %4803 = vmax.xlane.f32.xlu0 %v4802_v57  ;;  %v4439_v59 = vpop.f32.mrf.mxu1 }
0x14f2   :  { %v7233_v60 = vpop.f32.mrf.mxu1 }
0x155f   :  { %v4488_v61 = vpop.f32.mrf.mxu1 }
0x1560   :  { %v4795_v58 = vmul.f32 0.25, %v4488_v61 }
0x1561   :  { %v7238_v63 = vpop.f32.mrf.mxu1 }
0x1562   :  { %v4805_v1 = vsel %vm776_vm3, %v4795_v58, -inf }
0x1563   :  { %4806 = vmax.xlane.f32.xlu1 %v4805_v1  ;;  %v4491_v2 = vpop.f32.mrf.mxu1 }
0x1565   :  { %v7239_v4 = vpop.f32.mrf.mxu1  ;;  %v4638_v5 = vpop.f32.mrf.mxu0 }
0x1566   :  { %v4798_v3 = vmul.f32 0.25, %v4638_v5 }
0x1567   :  { %v4538_v7 = vpop.f32.mrf.mxu1  ;;  %v7256_v8 = vpop.f32.mrf.mxu0 }
0x1568   :  { %v4796_v10 = vmul.f32 0.25, %v4538_v7  ;;  %v4814_v11 = vsel %vm776_vm3, %v4798_v3, -inf }
0x1569   :  { %v4641_v13 = vpop.f32.mrf.mxu0  ;;  %4815 = vmax.xlane.f32.xlu1 %v4814_v11  ;;  %v7244_v29 = vpop.f32.mrf.mxu1 }
0x156a   :  { %v4808_v14 = vsel %vm776_vm3, %v4796_v10, -inf }
0x156b   :  { %v7257_v16 = vpop.f32.mrf.mxu0  ;;  %4809 = vmax.xlane.f32.xlu0 %v4808_v14  ;;  %v4541_v12 = vpop.f32.mrf.mxu1 }
0x156d   :  { %v7245_v17 = vpop.f32.mrf.mxu1  ;;  %v4738_v18 = vpop.f32.mrf.mxu0 }
0x156e   :  { %v8643_v20 = vmul.f32 0.25, %v4738_v18 }
0x156f   :  { %v4588_v21 = vpop.f32.mrf.mxu1  ;;  %v7268_v24 = vpop.f32.mrf.mxu0 }
0x1570   :  { %v4797_v25 = vmul.f32 0.25, %v4588_v21  ;;  %v4820_v27 = vsel %vm776_vm3, %v8643_v20, -inf }
0x1571   :  { %v4741_v28 = vpop.f32.mrf.mxu0  ;;  %4821 = vmax.xlane.f32.xlu1 %v4820_v27  ;;  %v7250_v22 = vpop.f32.mrf.mxu1 }
0x1572   :  { %v4811_v33 = vsel %vm776_vm3, %v4797_v25, -inf }
0x1573   :  { %v7269_v34 = vpop.f32.mrf.mxu0  ;;  %4812 = vmax.xlane.f32.xlu0 %v4811_v33  ;;  %v4591_v35 = vpop.f32.mrf.mxu1 }
0x1575   :  { %v7251_v36 = vpop.f32.mrf.mxu1 }
0x1577   :  { %v4688_v37 = vpop.f32.mrf.mxu1 }
0x1578   :  { %v4799_v38 = vmul.f32 0.25, %v4688_v37 }
0x1579   :  { %v7262_v32 = vpop.f32.mrf.mxu1  ;;  %v4804_v48 = vpop.xlane.xlu0 %4803 }
0x157a   :  { %v4817_v15 = vsel %vm776_vm3, %v4799_v38, -inf  ;;  %v4826_v49 = vsub.f32 %v4794_v55, %v4804_v48 }
0x157b   :  { %4818 = vmax.xlane.f32.xlu0 %v4817_v15  ;;  %v4691_v40 = vpop.f32.mrf.mxu1 }
0x157c   :  { %v4834_v26 = vmul.f32 1.442695, %v4826_v49 }
0x157d   :  { %v7263_v9 = vpop.f32.mrf.mxu1 }
0x157e   :  { %7822 = vpow2.f32 %v4834_v26 }
0x157f   :  { %v4788_v41 = vpop.f32.mrf.mxu1 }
0x1580   :  { %v4801_v42 = vmul.f32 0.25, %v4788_v41 }
0x1581   :  { %v7274_v43 = vpop.f32.mrf.mxu1 }
0x1582   :  { %5041 = vrot.lane.b32.xlu1 %v8595_v23, %s7960_s17  ;;  %v4823_v44 = vsel %vm776_vm3, %v4801_v42, -inf }
0x1583   :  { %4824 = vmax.xlane.f32.xlu0 %v4823_v44  ;;  %v4791_v45 = vpop.f32.mrf.mxu1 }
0x1585   :  { %v7275_v47 = vpop.f32.mrf.mxu1 }
0x158b   :  { %v8654_v50 = vpop.eup %7822 }
0x158c   :  { %v4850_v51 = vsel %vm776_vm3, %v8654_v50, 0.0 }
0x1599   :  { %4991 = vrot.lane.b32.xlu0 %v8595_v23, %s7958_s30 }
0x15a6   :  { %4851 = vadd.xlane.f32.xlu1 %v4850_v51 }
0x15ec   :  { %v4807_v52 = vpop.xlane.xlu1 %4806 }
0x15ed   :  { %v4827_v39 = vsub.f32 %v4795_v58, %v4807_v52 }
0x15ef   :  { %v4836_v53 = vmul.f32 1.442695, %v4827_v39 }
0x15f1   :  { %7824 = vpow2.f32 %v4836_v53 }
0x15f2   :  { %v4816_v54 = vpop.xlane.xlu1 %4815 }
0x15f3   :  { %v4830_v56 = vsub.f32 %v4798_v3, %v4816_v54 }
0x15f4   :  { %v4810_v57 = vpop.xlane.xlu0 %4809 }
0x15f5   :  { %v4842_v59 = vmul.f32 1.442695, %v4830_v56  ;;  %v4828_v55 = vsub.f32 %v4796_v10, %v4810_v57 }
0x15f7   :  { %7826 = vpow2.f32 %v4842_v59  ;;  %v4838_v60 = vmul.f32 1.442695, %v4828_v55 }
0x15f9   :  { %7828 = vpow2.f32 %v4838_v60 }
0x15fa   :  { %v4822_v12 = vpop.xlane.xlu1 %4821 }
0x15fb   :  { %v4832_v17 = vsub.f32 %v8643_v20, %v4822_v12 }
0x15fc   :  { %v4813_v61 = vpop.xlane.xlu0 %4812 }
0x15fd   :  { %v4829_v63 = vsub.f32 %v4797_v25, %v4813_v61  ;;  %v4846_v18 = vmul.f32 1.442695, %v4832_v17 }
0x15fe   :  { %v7825_v1 = vpop.eup %7824  ;;  %v5042_v33 = vpop.permute.xlu1 %5041 }
0x15ff   :  { %v4840_v2 = vmul.f32 1.442695, %v4829_v63  ;;  %v4853_v4 = vsel %vm776_vm3, %v7825_v1, 0.0  ;;  %v5047_v44 = vsel %vm872_vm2, %v5042_v33, 0 }
0x1600   :  { %4854 = vadd.xlane.f32.xlu0 %v4853_v4 }
0x1601   :  { %7830 = vpow2.f32 %v4840_v2 }
0x1604   :  { %v8659_v5 = vpop.eup %7826  ;;  %v4819_v58 = vpop.xlane.xlu0 %4818 }
0x1605   :  { %v4831_v7 = vsub.f32 %v4799_v38, %v4819_v58  ;;  %v4862_v3 = vsel %vm776_vm3, %v8659_v5, 0.0 }
0x1606   :  { %v7829_v8 = vpop.eup %7828  ;;  %4863 = vadd.xlane.f32.xlu1 %v4862_v3 }
0x1607   :  { %v4844_v10 = vmul.f32 1.442695, %v4831_v7  ;;  %v4856_v11 = vsel %vm776_vm3, %v7829_v8, 0.0 }
0x1609   :  { %7832 = vpow2.f32 %v4844_v10 }
0x160a   :  { %4857 = vadd.xlane.f32.xlu1 %v4856_v11  ;;  %7834 = vpow2.f32 %v4846_v18 }
0x160c   :  { %v4825_v21 = vpop.xlane.xlu0 %4824 }
0x160d   :  { %v4833_v24 = vsub.f32 %v4801_v42, %v4825_v21 }
0x160e   :  { %v7831_v13 = vpop.eup %7830 }
0x160f   :  { %v4859_v29 = vsel %vm776_vm3, %v7831_v13, 0.0  ;;  %v4848_v25 = vmul.f32 1.442695, %v4833_v24 }
0x1610   :  { %4860 = vadd.xlane.f32.xlu0 %v4859_v29  ;;  %v4992_v34 = vpop.permute.xlu0 %4991 }
0x1611   :  { %7836 = vpow2.f32 %v4848_v25  ;;  %v4997_v43 = vsel %vm872_vm2, %v4992_v34, 0  ;;  %v7654_v25 = vld [vmem:[#allocation4 + $0xb8] sm:$0xff]  }
0x1616   :  { %v8665_v14 = vpop.eup %7832 }
0x1617   :  { %v4865_v16 = vsel %vm776_vm3, %v8665_v14, 0.0  ;;  %v8674_v27 = vpop.eup %7834 }
0x1618   :  { %4866 = vadd.xlane.f32.xlu0 %v4865_v16  ;;  %v4868_v28 = vsel %vm776_vm3, %v8674_v27, 0.0 }
0x161b   :  { %5089 = vrot.lane.b32.xlu1 %v8595_v23, %s7946_s21 }
0x161e   :  { %v8678_v22 = vpop.eup %7836 }
0x161f   :  { %v4871_v20 = vsel %vm776_vm3, %v8678_v22, 0.0 }
0x162e   :  { %5139 = vrot.lane.b32.xlu0 %v8595_v23, %s7961_s18 }
0x162f   :  { %v4852_v35 = vpop.xlane.xlu1 %4851 }
0x1630   :  { %7838 = vrcp.f32 %v4852_v35  ;;  %v7656_v35 = vld [vmem:[#allocation4 + $0xa8] sm:$0xff]  }
0x163d   :  { %v7839_v38 = vpop.eup %7838 }
0x163e   :  { %v4882_v40 = vmul.f32 %v7839_v38, %v8654_v50 }
0x163f   :  { %4869 = vadd.xlane.f32.xlu1 %v4868_v28  ;;  %v7655_v28 = vld [vmem:[#allocation4 + $0xb0] sm:$0xff]  }
0x164d   :  { %4872 = vadd.xlane.f32.xlu0 %v4871_v20 }
0x1650   :  { %5187 = vrot.lane.b32.xlu1 %v8595_v23, %s7962_s3 }
0x1663   :  { %5237 = vrot.lane.b32.xlu0 %v8595_v23, %s7953_s20 }
0x1689   :  { %v4855_v36 = vpop.xlane.xlu0 %4854 }
0x168a   :  { %7840 = vrcp.f32 %v4855_v36 }
0x168f   :  { %v4864_v37 = vpop.xlane.xlu1 %4863 }
0x1693   :  { %v4858_v32 = vpop.xlane.xlu1 %4857 }
0x1694   :  { %7842 = vrcp.f32 %v4858_v32 }
0x1697   :  { %v7841_v15 = vpop.eup %7840  ;;  %v5090_v50 = vpop.permute.xlu1 %5089 }
0x1698   :  { %v4883_v9 = vmul.f32 %v7841_v15, %v7825_v1  ;;  %v5095_v39 = vsel %vm872_vm2, %v5090_v50, 0  ;;  %v7657_v15 = vld [vmem:[#allocation4 + $0xa0] sm:$0xff]  }
0x1699   :  { %v4861_v41 = vpop.xlane.xlu0 %4860 }
0x169a   :  { %7844 = vrcp.f32 %v4861_v41  ;;  %v4890_v42 = vpack.c.bf16 %v4883_v9, %v4882_v40 }
0x169b   :  { %7846 = vrcp.f32 %v4864_v37 }
0x169c   :  { %7279 = vmatmul.mubr.msk.bf16.vlgmr.msra.gmra.mxu0 %vm776_vm3, %v4890_v42  ;;  %v4941_v23 = vrot.slane %v4890_v42, 4 }
0x169d   :  { %7289 = vmatpush3.bf16.msra.mxu0 %v4997_v43  ;;  %7290 = vmatprep.mubr.msk.bf16.mxu0 %vm7957_vm0, %v7956_v19  ;;  %v7658_v43 = vld [vmem:[#allocation4 + $0x98] sm:$0xff]  }
0x169e   :  { %7285 = vmatmul.mubr.msk.bf16.vlgmr.msra.gmra.mxu1 %vm776_vm3, %v4941_v23  ;;  %7300 = vmatprep.subr.bf16.mxu0 %v7956_v19 }
0x169f   :  { %7295 = vmatpush3.bf16.msra.mxu1 %v5047_v44  ;;  %7296 = vmatprep.mubr.msk.bf16.mxu1 %vm7957_vm0, %v7956_v19 }
0x16a0   :  { %7306 = vmatprep.subr.bf16.mxu1 %v7956_v19 }
0x16a1   :  { %v4867_v45 = vpop.xlane.xlu0 %4866  ;;  %v7843_v47 = vpop.eup %7842 }
0x16a2   :  { %7848 = vrcp.f32 %v4867_v45  ;;  %v4884_v49 = vmul.f32 %v7843_v47, %v7829_v8  ;;  %v7659_v47 = vld [vmem:[#allocation4 + $0x90] sm:$0xff]  }
0x16a5   :  { %v5140_v52 = vpop.permute.xlu0 %5139 }
0x16a6   :  { %v5145_v56 = vsel %vm872_vm2, %v5140_v52, 0 }
0x16a7   :  { %v7845_v48 = vpop.eup %7844 }
0x16a8   :  { %v4885_v26 = vmul.f32 %v7845_v48, %v7831_v13  ;;  %v7847_v54 = vpop.eup %7846  ;;  %v7660_v48 = vld [vmem:[#allocation4 + $0x88] sm:$0xff]  }
0x16a9   :  { %v4886_v59 = vmul.f32 %v7847_v54, %v8659_v5 }
0x16aa   :  { %v4891_v51 = vpack.c.bf16 %v4885_v26, %v4884_v49  ;;  %v7661_v49 = vld [vmem:[#allocation4 + $0x80] sm:$0xff]  }
0x16ac   :  { %7291 = vmatmul.mubr.msk.bf16.vlgmr.msra.gmra.mxu0 %vm776_vm3, %v4891_v51  ;;  %v5040_v53 = vrot.slane %v4891_v51, 4 }
0x16ad   :  { %7301 = vmatpush3.bf16.msra.mxu0 %v5095_v39  ;;  %7302 = vmatprep.mubr.msk.bf16.mxu0 %vm7957_vm0, %v7956_v19 }
0x16ae   :  { %7297 = vmatmul.mubr.msk.bf16.vlgmr.msra.gmra.mxu1 %vm776_vm3, %v5040_v53  ;;  %7312 = vmatprep.subr.bf16.mxu0 %v7956_v19 }
0x16af   :  { %v7849_v57 = vpop.eup %7848  ;;  %7307 = vmatpush3.bf16.msra.mxu1 %v5145_v56  ;;  %7308 = vmatprep.mubr.msk.bf16.mxu1 %vm7957_vm0, %v7956_v19 }
0x16b0   :  { %v4887_v55 = vmul.f32 %v7849_v57, %v8665_v14  ;;  %7318 = vmatprep.subr.bf16.mxu1 %v7956_v19 }
0x16b2   :  { %v4892_v60 = vpack.c.bf16 %v4887_v55, %v4886_v59 }
0x16b4   :  { %7303 = vmatmul.mubr.msk.bf16.vlgmr.msra.gmra.mxu0 %vm776_vm3, %v4892_v60  ;;  %v5138_v61 = vrot.slane %v4892_v60, 4 }
0x16b5   :  { %7314 = vmatprep.mubr.msk.bf16.mxu0 %vm7957_vm0, %v7956_v19 }
0x16b6   :  { %7309 = vmatmul.mubr.msk.bf16.vlgmr.msra.gmra.mxu1 %vm776_vm3, %v5138_v61 }
0x16b7   :  { %7320 = vmatprep.mubr.msk.bf16.mxu1 %vm7957_vm0, %v7956_v19 }
0x16c8   :  { %v4870_v63 = vpop.xlane.xlu1 %4869 }
0x16c9   :  { %7850 = vrcp.f32 %v4870_v63 }
0x16cc   :  { %v5188_v1 = vpop.permute.xlu1 %5187 }
0x16cd   :  { %v5193_v2 = vsel %vm872_vm2, %v5188_v1, 0 }
0x16ce   :  { %7313 = vmatpush3.bf16.msra.mxu0 %v5193_v2 }
0x16cf   :  { %7324 = vmatprep.subr.bf16.mxu0 %v7956_v19 }
0x16d6   :  { %v4873_v4 = vpop.xlane.xlu0 %4872  ;;  %v7851_v7 = vpop.eup %7850 }
0x16d7   :  { %7852 = vrcp.f32 %v4873_v4  ;;  %v4888_v8 = vmul.f32 %v7851_v7, %v8674_v27 }
0x16da   :  { %v5238_v5 = vpop.permute.xlu0 %5237 }
0x16db   :  { %v5243_v58 = vsel %vm872_vm2, %v5238_v5, 0 }
0x16dc   :  { %7319 = vmatpush3.bf16.msra.mxu1 %v5243_v58 }
0x16e4   :  { %v7853_v3 = vpop.eup %7852 }
0x16e5   :  { %v4889_v10 = vmul.f32 %v7853_v3, %v8678_v22 }
0x16e7   :  { %v4893_v11 = vpack.c.bf16 %v4889_v10, %v4888_v8 }
0x16e9   :  { %7315 = vmatmul.mubr.msk.bf16.vlgmr.msra.gmra.mxu0 %vm776_vm3, %v4893_v11  ;;  %v5236_v13 = vrot.slane %v4893_v11, 4  ;;  %v6552_v11 = vld [vmem:[%s8825_s4 + $0x2] ss:$0 sm:$0xff] }
0x16ea   :  { %7340 = vmatprep.mubr.msk.bf16.mxu0 %vm7957_vm0, %v7956_v19  ;;  %7325 = vmatpush3.bf16.msra.mxu0 %v7654_v25  ;;  %v7667_v25 = vld [vmem:[#allocation6 + $0x2ec] ss:$16 sps:$4 sm:$0xff]  }
0x16eb   :  { %7321 = vmatmul.mubr.msk.bf16.vlgmr.msra.gmra.mxu1 %vm776_vm3, %v5236_v13  ;;  %7326 = vmatprep.subr.bf16.mxu0 %v7956_v19 }
0x16ec   :  { %5713 = vmatprep.mubr.bf16.mxu1 %v7955_v0 }
0x16ee   :  { %7327 = vmatpush3.bf16.msra.mxu0 %v7655_v28  ;;  %v7673_v28 = vld [vmem:[#allocation6 + $0x2cc] ss:$16 sps:$4 sm:$0xff]  }
0x16ef   :  { %7328 = vmatprep.subr.bf16.mxu0 %v7956_v19 }
0x16f2   :  { %7329 = vmatpush3.bf16.msra.mxu0 %v7656_v35  ;;  %v7676_v35 = vld [vmem:[#allocation6 + $0x2a4] ss:$16 sps:$4 sm:$0xff]  }
0x16f3   :  { %7330 = vmatprep.subr.bf16.mxu0 %v7956_v19 }
0x16f6   :  { %7331 = vmatpush3.bf16.msra.mxu0 %v7657_v15  ;;  %v7685_v15 = vld [vmem:[#allocation6 + $0x28c] ss:$16 sps:$4 sm:$0xff]  }
0x16f7   :  { %7332 = vmatprep.subr.bf16.mxu0 %v7956_v19 }
0x16fa   :  { %7333 = vmatpush3.bf16.msra.mxu0 %v7658_v43  ;;  %v7686_v43 = vld [vmem:[#allocation6 + $0x260] ss:$16 sps:$4 sm:$0xff]  }
0x16fb   :  { %7334 = vmatprep.subr.bf16.mxu0 %v7956_v19 }
0x16fe   :  { %7335 = vmatpush3.bf16.msra.mxu0 %v7659_v47  ;;  %v7692_v47 = vld [vmem:[#allocation6 + $0x240] ss:$16 sps:$4 sm:$0xff]  }
0x16ff   :  { %7336 = vmatprep.subr.bf16.mxu0 %v7956_v19 }
0x1702   :  { %7337 = vmatpush3.bf16.msra.mxu0 %v7660_v48  ;;  %v7695_v48 = vld [vmem:[#allocation6 + $0x248] ss:$16 sps:$4 sm:$0xff]  }
0x1703   :  { %7338 = vmatprep.subr.bf16.mxu0 %v7956_v19 }
0x1706   :  { %7339 = vmatpush3.bf16.msra.mxu0 %v7661_v49  ;;  %v7700_v49 = vld [vmem:[#allocation6 + $0x224] ss:$16 sps:$4 sm:$0xff]  }
0x1707   :  { %5722 = vmatprep.subr.bf16.mxu0 %v7667_v25  ;;  %v7726_v25 = vld [vmem:[#allocation7 + $0x258] sm:$0xff]  }
0x175c   :  { %v8725_v29 = vpop.f32.mrf.mxu0 }
0x175e   :  { %v7280_v14 = vpop.f32.mrf.mxu0  ;;  %v4985_v16 = vpop.f32.mrf.mxu1 }
0x175f   :  { %5286 = vrot.lane.b32.xlu1 %v4985_v16, %s7953_s20 }
0x1760   :  { %v4937_v12 = vpop.f32.mrf.mxu0  ;;  %v7286_v17 = vpop.f32.mrf.mxu1 }
0x1762   :  { %v7281_v18 = vpop.f32.mrf.mxu0  ;;  %v4988_v21 = vpop.f32.mrf.mxu1 }
0x1763   :  { %v7662_v18 = vld [vmem:[#allocation6 + $0x2e0] ss:$16 sps:$4 sm:$0xff]   ;;  %v7664_v21 = vld [vmem:[#allocation6 + $0x2e4] ss:$16 sps:$4 sm:$0xff]  }
0x1764   :  { %v7287_v24 = vpop.f32.mrf.mxu1  ;;  %5681 = vmatprep.subr.bf16.mxu1 %v7664_v21  ;;  %v7724_v21 = vld [vmem:[#allocation7 + $0x220] sm:$0xff]  }
0x1765   :  { %v7665_v24 = vld [vmem:[#allocation6 + $0x2e8] ss:$16 sps:$4 sm:$0xff]   ;;  %5682 = vmatpush1.bf16.msra.mxu1 %v7662_v18  ;;  %v7723_v18 = vld [vmem:[#allocation7 + $0x2e0] sm:$0xff]  }
0x176c   :  { %v5033_v27 = vpop.f32.mrf.mxu0 }
0x176d   :  { %5290 = vrot.lane.b32.xlu0 %v5033_v27, %s7962_s3  ;;  %v7670_v27 = vld [vmem:[#allocation6 + $0x2c4] ss:$16 sps:$4 sm:$0xff]  }
0x176e   :  { %v7292_v22 = vpop.f32.mrf.mxu0  ;;  %v5083_v20 = vpop.f32.mrf.mxu1  ;;  %5683 = vmatprep.subr.bf16.mxu1 %v7670_v27  ;;  %v7727_v27 = vld [vmem:[#allocation7 + $0x2d8] sm:$0xff]  }
0x176f   :  { %5294 = vrot.lane.b32.xlu1 %v5083_v20, %s7961_s18  ;;  %v7671_v22 = vld [vmem:[#allocation6 + $0x2c8] ss:$16 sps:$4 sm:$0xff]  }
0x1770   :  { %v5036_v33 = vpop.f32.mrf.mxu0  ;;  %v7298_v34 = vpop.f32.mrf.mxu1 }
0x1772   :  { %v7293_v36 = vpop.f32.mrf.mxu0  ;;  %v5086_v37 = vpop.f32.mrf.mxu1 }
0x1773   :  { %v7679_v36 = vld [vmem:[#allocation6 + $0x2ac] ss:$16 sps:$4 sm:$0xff]   ;;  %v7674_v37 = vld [vmem:[#allocation6 + $0x2a0] ss:$16 sps:$4 sm:$0xff]  }
0x1774   :  { %v7299_v38 = vpop.f32.mrf.mxu1  ;;  %v5131_v32 = vpop.f32.mrf.mxu0 }
0x1775   :  { %5298 = vrot.lane.b32.xlu0 %v5131_v32, %s7946_s21  ;;  %v7677_v38 = vld [vmem:[#allocation6 + $0x2a8] ss:$16 sps:$4 sm:$0xff]   ;;  %v7682_v32 = vld [vmem:[#allocation6 + $0x284] ss:$16 sps:$4 sm:$0xff]  }
0x1776   :  { %v7304_v40 = vpop.f32.mrf.mxu0  ;;  %v5181_v9 = vpop.f32.mrf.mxu1 }
0x1777   :  { %5302 = vrot.lane.b32.xlu1 %v5181_v9, %s7960_s17  ;;  %v7680_v40 = vld [vmem:[#allocation6 + $0x280] ss:$16 sps:$4 sm:$0xff]   ;;  %v7683_v9 = vld [vmem:[#allocation6 + $0x288] ss:$16 sps:$4 sm:$0xff]  }
0x1778   :  { %v5134_v41 = vpop.f32.mrf.mxu0  ;;  %v7310_v42 = vpop.f32.mrf.mxu1 }
0x1779   :  { %v7688_v41 = vld [vmem:[#allocation6 + $0x264] ss:$16 sps:$4 sm:$0xff]   ;;  %v7691_v42 = vld [vmem:[#allocation6 + $0x26c] ss:$16 sps:$4 sm:$0xff]  }
0x177a   :  { %v7305_v23 = vpop.f32.mrf.mxu0  ;;  %v5184_v44 = vpop.f32.mrf.mxu1 }
0x177b   :  { %v7689_v23 = vld [vmem:[#allocation6 + $0x268] ss:$16 sps:$4 sm:$0xff]   ;;  %v7694_v44 = vld [vmem:[#allocation6 + $0x244] ss:$16 sps:$4 sm:$0xff]  }
0x177c   :  { %v7311_v45 = vpop.f32.mrf.mxu1 }
0x177d   :  { %v7697_v45 = vld [vmem:[#allocation6 + $0x24c] ss:$16 sps:$4 sm:$0xff]  }
0x17a9   :  { %v5229_v26 = vpop.f32.mrf.mxu0 }
0x17aa   :  { %5306 = vrot.lane.b32.xlu0 %v5229_v26, %s7958_s30  ;;  %v7703_v26 = vld [vmem:[#allocation6 + $0x22c] ss:$16 sps:$4 sm:$0xff]  }
0x17ab   :  { %v7316_v50 = vpop.f32.mrf.mxu0  ;;  %v5279_v51 = vpop.f32.mrf.mxu1 }
0x17ac   :  { %5310 = vrot.lane.b32.xlu1 %v5279_v51, %s7959_s16  ;;  %v7698_v50 = vld [vmem:[#allocation6 + $0x220] ss:$16 sps:$4 sm:$0xff]   ;;  %v7701_v51 = vld [vmem:[#allocation6 + $0x228] ss:$16 sps:$4 sm:$0xff]  }
0x17ad   :  { %v5232_v52 = vpop.f32.mrf.mxu0  ;;  %v7322_v39 = vpop.f32.mrf.mxu1 }
0x17ae   :  { %v7706_v52 = vld [vmem:[#allocation6 + $0x204] ss:$16 sps:$4 sm:$0xff]   ;;  %v7709_v39 = vld [vmem:[#allocation6 + $0x20c] ss:$16 sps:$4 sm:$0xff]  }
0x17af   :  { %v7317_v53 = vpop.f32.mrf.mxu0  ;;  %v5282_v54 = vpop.f32.mrf.mxu1 }
0x17b0   :  { %v7704_v53 = vld [vmem:[#allocation6 + $0x200] ss:$16 sps:$4 sm:$0xff]   ;;  %v7707_v54 = vld [vmem:[#allocation6 + $0x208] ss:$16 sps:$4 sm:$0xff]  }
0x17b1   :  { %v7323_v56 = vpop.f32.mrf.mxu1 }
0x17b2   :  { %v7710_v56 = vld [vmem:[#allocation7 + $0x278] sm:$0xff]  }
0x17d1   :  { %v5287_v57 = vpop.permute.xlu1 %5286 }
0x17d2   :  { %v5313_v55 = vsel %vm369_vm1, %v8725_v29, %v5287_v57  ;;  %v7711_v57 = vld [vmem:[#allocation7 + $0x2f8] sm:$0xff]  }
0x17df   :  { %v5291_v59 = vpop.permute.xlu0 %5290 }
0x17e0   :  { %v5314_v60 = vsel %vm1290_vm4, %v5313_v55, %v5291_v59 }
0x17e1   :  { %v5295_v61 = vpop.permute.xlu1 %5294 }
0x17e2   :  { %v5315_v1 = vsel %vm1292_vm5, %v5314_v60, %v5295_v61 }
0x17e7   :  { %v5299_v63 = vpop.permute.xlu0 %5298 }
0x17e8   :  { %v5316_v2 = vsel %vm1294_vm6, %v5315_v1, %v5299_v63  ;;  %v6563_v63 = vld [vmem:[%s8826_s5 + $0x2] ss:$0 sm:$0xff] }
0x17e9   :  { %v5303_v4 = vpop.permute.xlu1 %5302 }
0x17ea   :  { %v5317_v5 = vsel %vm1296_vm7, %v5316_v2, %v5303_v4  ;;  %v6564_v2 = vld [vmem:[%s8827_s6 + $0x2] ss:$0 sm:$0xff] }
0x181c   :  { %v5307_v58 = vpop.permute.xlu0 %5306 }
0x181d   :  { %v5318_v7 = vsel %vm1298_vm8, %v5317_v5, %v5307_v58  ;;  %v7712_v58 = vld [vmem:[#allocation7 + $0x238] sm:$0xff]  }
0x181e   :  { %v5311_v3 = vpop.permute.xlu1 %5310 }
0x181f   :  { %v5319_v8 = vsel %vm1300_vm9, %v5318_v7, %v5311_v3  ;;  %v7713_v7 = vld [vmem:[#allocation7 + $0x2b8] sm:$0xff]  }
0x1820   :  { %v5320_v10 = vpack.c.bf16 %v5319_v8, %v5319_v8  ;;  %v7714_v8 = vld [vmem:[#allocation7 + $0x270] sm:$0xff]  }
0x1822   :  { %7341 = vmatmul.mubr.bf16.vlgmr.msra.gmra.mxu0 %v5320_v10  ;;  %v7715_v10 = vld [vmem:[#allocation7 + $0x2f0] sm:$0xff]  }
0x1823   :  { %5754 = vmatprep.mubr.bf16.mxu0 %v7955_v0  ;;  %v7668_v0 = vld [vmem:[#allocation6 + $0x2c0] ss:$16 sps:$4 sm:$0xff]   ;;  %5723 = vmatpush1.bf16.msra.mxu0 %v7665_v24 }
0x1824   :  { %5724 = vmatprep.subr.bf16.mxu0 %v7673_v28  ;;  %5684 = vmatpush1.bf16.msra.mxu1 %v7668_v0  ;;  %v7725_v24 = vld [vmem:[#allocation7 + $0x2a0] sm:$0xff]   ;;  %v7728_v28 = vld [vmem:[#allocation7 + $0x218] sm:$0xff]  }
0x1825   :  { %5685 = vmatprep.subr.bf16.mxu1 %v7676_v35  ;;  %v7729_v0 = vld [vmem:[#allocation7 + $0x298] sm:$0xff]   ;;  %v7735_v35 = vld [vmem:[#allocation7 + $0x2c8] sm:$0xff]  }
0x1827   :  { %5725 = vmatpush1.bf16.msra.mxu0 %v7671_v22  ;;  %v7730_v22 = vld [vmem:[#allocation7 + $0x250] sm:$0xff]  }
0x1828   :  { %5726 = vmatprep.subr.bf16.mxu0 %v7679_v36  ;;  %5686 = vmatpush1.bf16.msra.mxu1 %v7674_v37  ;;  %v7736_v36 = vld [vmem:[#allocation7 + $0x208] sm:$0xff]  }
0x1829   :  { %5687 = vmatprep.subr.bf16.mxu1 %v7682_v32  ;;  %v7737_v37 = vld [vmem:[#allocation7 + $0x288] sm:$0xff]   ;;  %v7739_v32 = vld [vmem:[#allocation7 + $0x2c0] sm:$0xff]  }
0x182b   :  { %5727 = vmatpush1.bf16.msra.mxu0 %v7677_v38  ;;  %v7738_v38 = vld [vmem:[#allocation7 + $0x240] sm:$0xff]  }
0x182c   :  { %5728 = vmatprep.subr.bf16.mxu0 %v7685_v15  ;;  %5688 = vmatpush1.bf16.msra.mxu1 %v7680_v40  ;;  %v7740_v15 = vld [vmem:[#allocation7 + $0x200] sm:$0xff]  }
0x182d   :  { %5689 = vmatprep.subr.bf16.mxu1 %v7688_v41  ;;  %v7741_v40 = vld [vmem:[#allocation7 + $0x280] sm:$0xff]  }
0x182f   :  { %5729 = vmatpush1.bf16.msra.mxu0 %v7683_v9  ;;  %v6565_v9 = vld [vmem:[%s8829_s8 + $0x8] sm:$0xf] }
0x1830   :  { %5730 = vmatprep.subr.bf16.mxu0 %v7691_v42  ;;  %5690 = vmatpush1.bf16.msra.mxu1 %v7686_v43  ;;  %v5504_v41 = vrot.slane %v6565_v9, %v8088_v31  ;;  %v5512_v42 = vrot.slane %v6565_v9, %v8115_v46  ;;  %v5508_v43 = vrot.slane %v6565_v9, %v8085_v30 }
0x1831   :  { %5691 = vmatprep.subr.bf16.mxu1 %v7694_v44 }
0x1833   :  { %5731 = vmatpush1.bf16.msra.mxu0 %v7689_v23  ;;  %v5516_v23 = vrot.slane %v6565_v9, %v8302_v62 }
0x1834   :  { %5732 = vmatprep.subr.bf16.mxu0 %v7697_v45  ;;  %5692 = vmatpush1.bf16.msra.mxu1 %v7692_v47 }
0x1835   :  { %5693 = vmatprep.subr.bf16.mxu1 %v7700_v49 }
0x1837   :  { %5733 = vmatpush1.bf16.msra.mxu0 %v7695_v48 }
0x1838   :  { %5734 = vmatprep.subr.bf16.mxu0 %v7703_v26  ;;  %5694 = vmatpush1.bf16.msra.mxu1 %v7698_v50 }
0x1839   :  { %5695 = vmatprep.subr.bf16.mxu1 %v7706_v52 }
0x183b   :  { %5735 = vmatpush1.bf16.msra.mxu0 %v7701_v51 }
0x183c   :  { %5736 = vmatprep.subr.bf16.mxu0 %v7709_v39  ;;  %5696 = vmatpush1.bf16.msra.mxu1 %v7704_v53 }
0x183d   :  { %6883 = vmatprep.subr.bf16.mxu1 %v7710_v56 }
0x183f   :  { %5737 = vmatpush1.bf16.msra.mxu0 %v7707_v54 }
0x1840   :  { %6905 = vmatprep.subr.bf16.mxu0 %v7711_v57 }
0x18e2   :  { %v5428_v13 = vpop.f32.mrf.mxu0 }
0x18e3   :  { %v5429_v29 = vadd.f32 %v6552_v11, %v5428_v13  ;;  %v7716_v11 = vld [vmem:[#allocation7 + $0x230] sm:$0xff]  }
0x18e4   :  { %v7342_v14 = vpop.f32.mrf.mxu0  ;;  %v7717_v13 = vld [vmem:[#allocation7 + $0x2b0] sm:$0xff]  }
0x18e5   :  { %v5434_v16 = vadd.f32 %v5429_v29, %v8562_v6  ;;  %v7718_v29 = vld [vmem:[#allocation7 + $0x268] sm:$0xff]  }
0x18e6   :  { %v5431_v12 = vpop.f32.mrf.mxu0  ;;  %v7719_v14 = vld [vmem:[#allocation7 + $0x2e8] sm:$0xff]  }
0x18e7   :  { %5439 = vadd.xlane.f32.xlu0 %v5434_v16  ;;  %v7721_v12 = vld [vmem:[#allocation7 + $0x2a8] sm:$0xff]  }
0x18e8   :  { %v7343_v17 = vpop.f32.mrf.mxu0 }
0x18e9   :  { %v7722_v17 = vld [vmem:[#allocation7 + $0x260] sm:$0xff]  }
0x1970   :  { %v5440_v6 = vpop.xlane.xlu0 %5439 }
0x1971   :  { %v5441_v20 = vmul.f32 0.0078125, %v5440_v6  ;;  %v7731_v6 = vld [vmem:[#allocation7 + $0x2d0] sm:$0xff]  }
0x1973   :  { %v5442_v33 = vsub.f32 %v5434_v16, %v5441_v20  ;;  %v7720_v16 = vld [vmem:[#allocation7 + $0x228] sm:$0xff]   ;;  %v7732_v20 = vld [vmem:[#allocation7 + $0x210] sm:$0xff]  }
0x1975   :  { %v5443_v34 = vmul.f32 %v5442_v33, %v5442_v33 }
0x1977   :  { %5444 = vadd.xlane.f32.xlu1 %v5443_v34  ;;  %v7734_v34 = vld [vmem:[#allocation7 + $0x248] sm:$0xff]  }
0x1a00   :  { %v5445_v59 = vpop.xlane.xlu1 %5444 }
0x1a01   :  { %v5446_v55 = vmul.f32 0.0078125, %v5445_v59 }
0x1a03   :  { %v5447_v60 = vadd.f32 1e-05, %v5446_v55 }
0x1a05   :  { %7854 = vrsqrt.f32 %v5447_v60 }
0x1a12   :  { %v7855_v61 = vpop.eup %7854 }
0x1a13   :  { %v5449_v1 = vmul.f32 %v7855_v61, %v5442_v33  ;;  %v7733_v33 = vld [vmem:[#allocation7 + $0x290] sm:$0xff]  }
0x1a15   :  { %v5456_v4 = vmul.f32 %v6563_v63, %v5449_v1  ;;  %v6599_v63 = vld [vmem:[%s8831_s10 + $0x2] ss:$0 sm:$0xff] }
0x1a17   :  { %v8760_v5 = vadd.f32 %v6564_v2, %v5456_v4 }
0x1a19   :  { %v5464_v3 = vpack.c.bf16 %v8760_v5, %v8760_v5 }
0x1a1b   :  { %5714 = vmatmul.mubr.bf16.vlgmr.msra.gmra.mxu1 %v5464_v3  ;;  %5755 = vmatmul.mubr.bf16.vlgmr.msra.gmra.mxu0 %v5464_v3 }
0x1a1c   :  { %6884 = vmatpush3.bf16.msra.mxu1 %v7712_v58  ;;  %6906 = vmatpush3.bf16.msra.mxu0 %v7713_v7 }
0x1a1d   :  { %6885 = vmatprep.subr.bf16.mxu1 %v7714_v8  ;;  %6907 = vmatprep.subr.bf16.mxu0 %v7715_v10 }
0x1a20   :  { %6886 = vmatpush3.bf16.msra.mxu1 %v7716_v11  ;;  %6908 = vmatpush3.bf16.msra.mxu0 %v7717_v13 }
0x1a21   :  { %6887 = vmatprep.subr.bf16.mxu1 %v7718_v29  ;;  %6909 = vmatprep.subr.bf16.mxu0 %v7719_v14  ;;  %v7742_v14 = vld [vmem:[%s8834_s13 + $0x38] sm:$0xff]  }
0x1a24   :  { %6888 = vmatpush3.bf16.msra.mxu1 %v7720_v16  ;;  %6910 = vmatpush3.bf16.msra.mxu0 %v7721_v12  ;;  %v7743_v16 = vld [vmem:[%s8834_s13 + $0x30] sm:$0xff]  }
0x1a25   :  { %6889 = vmatprep.subr.bf16.mxu1 %v7722_v17  ;;  %6911 = vmatprep.subr.bf16.mxu0 %v7723_v18 }
0x1a28   :  { %6890 = vmatpush3.bf16.msra.mxu1 %v7724_v21  ;;  %6912 = vmatpush3.bf16.msra.mxu0 %v7725_v24  ;;  %v7745_v24 = vld [vmem:[%s8834_s13 + $0x20] sm:$0xff]  }
0x1a29   :  { %6891 = vmatprep.subr.bf16.mxu1 %v7726_v25  ;;  %6913 = vmatprep.subr.bf16.mxu0 %v7727_v27  ;;  %v7746_v25 = vld [vmem:[%s8834_s13 + $0x18] sm:$0xff]   ;;  %v7747_v27 = vld [vmem:[%s8834_s13 + $0x10] sm:$0xff]  }
0x1a2c   :  { %6892 = vmatpush3.bf16.msra.mxu1 %v7728_v28  ;;  %6914 = vmatpush3.bf16.msra.mxu0 %v7729_v0  ;;  %v7748_v28 = vld [vmem:[%s8834_s13 + $0x8] sm:$0xff]   ;;  %v7749_v0 = vld [vmem:[%s8834_s13] sm:$0xff]  }
0x1a2d   :  { %6893 = vmatprep.subr.bf16.mxu1 %v7730_v22  ;;  %6915 = vmatprep.subr.bf16.mxu0 %v7731_v6 }
0x1a30   :  { %6894 = vmatpush3.bf16.msra.mxu1 %v7732_v20  ;;  %6916 = vmatpush3.bf16.msra.mxu0 %v7733_v33 }
0x1a31   :  { %6895 = vmatprep.subr.bf16.mxu1 %v7734_v34  ;;  %6917 = vmatprep.subr.bf16.mxu0 %v7735_v35  ;;  %v6634_v34 = vld [vmem:[%s8832_s11 + $0x2] ss:$0 sm:$0xff] }
0x1a34   :  { %6896 = vmatpush3.bf16.msra.mxu1 %v7736_v36  ;;  %6918 = vmatpush3.bf16.msra.mxu0 %v7737_v37  ;;  %v6635_v36 = vld [vmem:[%s8833_s12 + $0x2] ss:$0 sm:$0xff] }
0x1a35   :  { %6897 = vmatprep.subr.bf16.mxu1 %v7738_v38  ;;  %6919 = vmatprep.subr.bf16.mxu0 %v7739_v32 }
0x1a38   :  { %6898 = vmatpush3.bf16.msra.mxu1 %v7740_v15  ;;  %6920 = vmatpush3.bf16.msra.mxu0 %v7741_v40 }
0x1a39   :  { %7344 = vmatprep.subr.bf16.mxu1 %v7956_v19 }
0x1adb   :  { %v5715_v44 = vpop.f32.mrf.mxu1  ;;  %v5756_v45 = vpop.f32.mrf.mxu0 }
0x1adc   :  { %v5716_v47 = vadd.f32 %v5715_v44, %v5504_v41  ;;  %v5757_v48 = vadd.f32 %v5756_v45, %v5512_v42 }
0x1add   :  { %v5717_v49 = vpop.f32.mrf.mxu1  ;;  %v5758_v26 = vpop.f32.mrf.mxu0 }
0x1ade   :  { %v5718_v50 = vadd.f32 %v5717_v49, %v5508_v43  ;;  %v5759_v51 = vadd.f32 %v5758_v26, %v5516_v23  ;;  %v5763_v52 = vmax.f32 %v5716_v47, 0.0  ;;  %v5765_v39 = vmax.f32 %v5757_v48, 0.0 }
0x1adf   :  { %v5719_v53 = vpop.f32.mrf.mxu1  ;;  %v5760_v54 = vpop.f32.mrf.mxu0 }
0x1ae0   :  { %v5764_v56 = vmax.f32 %v5718_v50, 0.0  ;;  %v5766_v31 = vmax.f32 %v5759_v51, 0.0  ;;  %v5767_v55 = vpack.c.bf16 %v5763_v52, %v5763_v52  ;;  %v5769_v62 = vpack.c.bf16 %v5765_v39, %v5765_v39 }
0x1ae1   :  { %v5720_v57 = vpop.f32.mrf.mxu1  ;;  %v5761_v46 = vpop.f32.mrf.mxu0 }
0x1ae2   :  { %v5768_v59 = vpack.c.bf16 %v5764_v56, %v5764_v56  ;;  %v5770_v30 = vpack.c.bf16 %v5766_v31, %v5766_v31 }
0x1ae4   :  { %6068 = vmatprep.mubr.bf16.mxu1 %v5768_v59  ;;  %6108 = vmatprep.mubr.bf16.mxu0 %v5770_v30 }
0x1ae5   :  { %6069 = vmatmul.mubr.bf16.vlgmr.msra.gmra.mxu1 %v5767_v55  ;;  %6109 = vmatmul.mubr.bf16.vlgmr.msra.gmra.mxu0 %v5769_v62 }
0x1ae6   :  { %7360 = vmatprep.mubr.msk.bf16.mxu1 %vm7957_vm0, %v7956_v19  ;;  %7345 = vmatpush3.bf16.msra.mxu1 %v7742_v14 }
0x1ae7   :  { %7346 = vmatprep.subr.bf16.mxu1 %v7956_v19 }
0x1aea   :  { %7347 = vmatpush3.bf16.msra.mxu1 %v7743_v16 }
0x1aeb   :  { %7348 = vmatprep.subr.bf16.mxu1 %v7956_v19 }
0x1ba5   :  { %v6899_v60 = vpop.f32.mrf.mxu1  ;;  %v6921_v61 = vpop.f32.mrf.mxu0 }
0x1ba7   :  { %v6900_v1 = vpop.f32.mrf.mxu1  ;;  %v6922_v2 = vpop.f32.mrf.mxu0 }
0x1ba8   :  { %v6901_v4 = vadd.f32 %v6900_v1, %v6899_v60  ;;  %v6923_v8 = vadd.f32 %v6922_v2, %v6921_v61 }
0x1ba9   :  { %v6902_v58 = vpop.f32.mrf.mxu1  ;;  %v6924_v7 = vpop.f32.mrf.mxu0 }
0x1baa   :  { %v6071_v3 = vadd.f32 %v6901_v4, %v6599_v63 }
0x1bab   :  { %v6903_v10 = vpop.f32.mrf.mxu1  ;;  %v6925_v11 = vpop.f32.mrf.mxu0 }
0x1bac   :  { %v6111_v13 = vadd.f32 %v6923_v8, %v6071_v3 }
0x1bae   :  { %v6116_v29 = vadd.f32 %v6111_v13, %v8760_v5  ;;  %v7744_v5 = vld [vmem:[%s8834_s13 + $0x28] sm:$0xff]  }
0x1baf   :  { %7349 = vmatpush3.bf16.msra.mxu1 %v7744_v5 }
0x1bb0   :  { %6121 = vadd.xlane.f32.xlu0 %v6116_v29  ;;  %7350 = vmatprep.subr.bf16.mxu1 %v7956_v19 }
0x1bb3   :  { %7351 = vmatpush3.bf16.msra.mxu1 %v7745_v24 }
0x1bb4   :  { %7352 = vmatprep.subr.bf16.mxu1 %v7956_v19 }
0x1bb7   :  { %7353 = vmatpush3.bf16.msra.mxu1 %v7746_v25 }
0x1bb8   :  { %7354 = vmatprep.subr.bf16.mxu1 %v7956_v19 }
0x1bbb   :  { %7355 = vmatpush3.bf16.msra.mxu1 %v7747_v27 }
0x1bbc   :  { %7356 = vmatprep.subr.bf16.mxu1 %v7956_v19 }
0x1bbf   :  { %7357 = vmatpush3.bf16.msra.mxu1 %v7748_v28 }
0x1bc0   :  { %7358 = vmatprep.subr.bf16.mxu1 %v7956_v19  ;;  %v6636_v19 = vld [vmem:[%s8835_s14] ss:$0 sm:$0xff] }
0x1bc3   :  { %7359 = vmatpush3.bf16.msra.mxu1 %v7749_v0 }
0x1c39   :  { %v6122_v12 = vpop.xlane.xlu0 %6121 }
0x1c3a   :  { %v6123_v17 = vmul.f32 0.0078125, %v6122_v12 }
0x1c3c   :  { %v6124_v18 = vsub.f32 %v6116_v29, %v6123_v17 }
0x1c3e   :  { %v6125_v21 = vmul.f32 %v6124_v18, %v6124_v18 }
0x1c40   :  { %6126 = vadd.xlane.f32.xlu0 %v6125_v21 }
0x1cc9   :  { %v6127_v22 = vpop.xlane.xlu0 %6126 }
0x1cca   :  { %v6128_v6 = vmul.f32 0.0078125, %v6127_v22 }
0x1ccc   :  { %v6129_v20 = vadd.f32 1e-05, %v6128_v6 }
0x1cce   :  { %7856 = vrsqrt.f32 %v6129_v20 }
0x1cdb   :  { %v7857_v33 = vpop.eup %7856 }
0x1cdc   :  { %v6131_v35 = vmul.f32 %v7857_v33, %v6124_v18 }
0x1cde   :  { %v6138_v37 = vmul.f32 %v6634_v34, %v6131_v35 }
0x1ce0   :  { %v6145_v38 = vadd.f32 %v6635_v36, %v6138_v37 }
0x1ce2   :  { %v6146_v32 = vpack.c.bf16 %v6145_v38, %v6145_v38 }
0x1ce4   :  { %7361 = vmatmul.mubr.bf16.vlgmr.msra.gmra.mxu1 %v6146_v32 }
0x1da4   :  { %v6252_v15 = vpop.f32.mrf.mxu1 }
0x1da5   :  { %v6253_v40 = vadd.f32 %v6636_v19, %v6252_v15 }
0x1da6   :  { %v7362_v9 = vpop.f32.mrf.mxu1 }
0x1da7   :  { %6258 = vst [vmem:[%s8836_s15] sm:$0xff] %v6253_v40 }
0x1da8   :  { %v6255_v41 = vpop.f32.mrf.mxu1 }
0x1daa   :  { %v7363_v42 = vpop.f32.mrf.mxu1 }
0x1dab   :  { %6263 = vsyncpa [#allocation3], 1 }
0x1dac   :  { %6264 = vsyncpa [#allocation5], 1 }
0x1dad   :  { %6265 = vsyncpa [#allocation8], 1 }

</bundles_post_ra>
